<compile_context>
chip_gen: v7x
topology: tpu7x:2x2x1
jax: 0.10.0
libtpu: 0.0.40
codegen_flags: <defaults>
</compile_context>

<pallas_src>
import functools

import jax
import jax.numpy as jnp
from jax.experimental import pallas as pl
from jax.experimental.pallas import tpu as pltpu

INITIAL_SIGMA = 0.5
SCALE_FACTOR = 64.0

_TM_MAX = 512  # fits comfortably in scoped VMEM on v5e/v6e/v7x for this net's K/Cout


# ----------------------------------------------------------------------------
# Pallas kernels
# ----------------------------------------------------------------------------
def _mm_kernel(a_ref, b_ref, *rest, has_bn_relu, has_residual):
    """One (tm,K)@(K,Cout) MXU matmul tile with optional fused epilogue:
       BN(eval)+ReLU (per-output-channel scale/bias) and/or residual add."""
    acc = jnp.dot(a_ref[...], b_ref[...], preferred_element_type=jnp.float32)
    idx = 0
    if has_bn_relu:
        s_ref = rest[idx]
        bb_ref = rest[idx + 1]
        idx += 2
        acc = jnp.maximum(acc * s_ref[...] + bb_ref[...], 0.0)
    if has_residual:
        r_ref = rest[idx]
        idx += 1
        acc = acc + r_ref[...]
    o_ref = rest[idx]
    o_ref[...] = acc


def _bn_relu_kernel(x_ref, s_ref, b_ref, o_ref):
    o_ref[...] = jnp.maximum(x_ref[...] * s_ref[...] + b_ref[...], 0.0)


def _bn_relu_mean_kernel(x_ref, s_ref, b_ref, o_ref):
    # x_ref: (H*W, C) for one sample; fused eval-BN + ReLU + spatial mean.
    act = jnp.maximum(x_ref[...] * s_ref[...] + b_ref[...], 0.0)
    o_ref[...] = jnp.mean(act, axis=0, keepdims=True)


# ----------------------------------------------------------------------------
# Pallas wrappers
# ----------------------------------------------------------------------------
def matmul_fused(a, b, *, scale=None, bias=None, residual=None):
    """(M,K)@(K,Cout) with optional fused bn/relu + residual epilogue.
    Tiled over M (parallel grid axis); K and Cout kept as full blocks (both are
    small in this network, so no K-reduction axis / accumulator is needed)."""
    M, K = a.shape
    K2, Cout = b.shape
    assert K == K2
    a = a.astype(jnp.bfloat16)
    b = b.astype(jnp.bfloat16)
    tm = M if M <= _TM_MAX else _TM_MAX
    grid = (pl.cdiv(M, tm),)

    has_bn_relu = scale is not None
    has_residual = residual is not None

    in_specs = [
        pl.BlockSpec((tm, K), lambda i: (i, 0)),
        pl.BlockSpec((K, Cout), lambda i: (0, 0)),
    ]
    args = [a, b]
    if has_bn_relu:
        in_specs += [pl.BlockSpec((1, Cout), lambda i: (0, 0)),
                     pl.BlockSpec((1, Cout), lambda i: (0, 0))]
        args += [jnp.reshape(scale, (1, Cout)).astype(jnp.float32),
                 jnp.reshape(bias, (1, Cout)).astype(jnp.float32)]
    if has_residual:
        in_specs.append(pl.BlockSpec((tm, Cout), lambda i: (i, 0)))
        args.append(residual.astype(jnp.float32))

    kernel = functools.partial(_mm_kernel, has_bn_relu=has_bn_relu,
                               has_residual=has_residual)
    return pl.pallas_call(
        kernel,
        out_shape=jax.ShapeDtypeStruct((M, Cout), jnp.float32),
        grid=grid,
        in_specs=in_specs,
        out_specs=pl.BlockSpec((tm, Cout), lambda i: (i, 0)),
        compiler_params=pltpu.CompilerParams(dimension_semantics=("parallel",)),
    )(*args)


def batched_matmul_fused(a, b, *, scale=None, bias=None, residual=None):
    """Per-sample matmul: (B,M,K)@(B,K,Cout) in a single pallas_call with the
    batch as a (squeezed) parallel grid axis.  Used for the hypernetwork convs
    (per-sample generated weights).  If `residual` has a smaller batch rb that
    divides B, the same residual block is re-read per replica via n % rb
    (instead of materializing B/rb copies in HBM)."""
    B, M, K = a.shape
    _, K2, Cout = b.shape
    assert K == K2
    a = a.astype(jnp.bfloat16)
    b = b.astype(jnp.bfloat16)

    has_bn_relu = scale is not None
    has_residual = residual is not None

    in_specs = [
        pl.BlockSpec((None, M, K), lambda n: (n, 0, 0)),
        pl.BlockSpec((None, K, Cout), lambda n: (n, 0, 0)),
    ]
    args = [a, b]
    if has_bn_relu:
        in_specs += [pl.BlockSpec((1, Cout), lambda n: (0, 0)),
                     pl.BlockSpec((1, Cout), lambda n: (0, 0))]
        args += [jnp.reshape(scale, (1, Cout)).astype(jnp.float32),
                 jnp.reshape(bias, (1, Cout)).astype(jnp.float32)]
    if has_residual:
        rb = residual.shape[0]
        if rb == B:
            in_specs.append(pl.BlockSpec((None, M, Cout), lambda n: (n, 0, 0)))
        else:
            assert B % rb == 0
            in_specs.append(
                pl.BlockSpec((None, M, Cout), lambda n, rb=rb: (n % rb, 0, 0)))
        args.append(residual.astype(jnp.float32))

    kernel = functools.partial(_mm_kernel, has_bn_relu=has_bn_relu,
                               has_residual=has_residual)
    return pl.pallas_call(
        kernel,
        out_shape=jax.ShapeDtypeStruct((B, M, Cout), jnp.float32),
        grid=(B,),
        in_specs=in_specs,
        out_specs=pl.BlockSpec((None, M, Cout), lambda n: (n, 0, 0)),
        compiler_params=pltpu.CompilerParams(dimension_semantics=("parallel",)),
    )(*args)


def _bn_fold(gamma, beta, mean, var, eps=1e-5):
    scale = gamma / jnp.sqrt(var + eps)
    bias = beta - mean * scale
    return scale.astype(jnp.float32), bias.astype(jnp.float32)


def bn_relu(x_nhwc, gamma, beta, mean, var, eps=1e-5):
    """Standalone fused eval-BatchNorm2d + ReLU (block-entry bn1); f32 VPU math."""
    N, H, W, C = x_nhwc.shape
    scale, bias = _bn_fold(gamma, beta, mean, var, eps)
    M = N * H * W
    x2 = x_nhwc.reshape(M, C).astype(jnp.float32)
    tm = M if M <= 1024 else 1024
    out = pl.pallas_call(
        _bn_relu_kernel,
        out_shape=jax.ShapeDtypeStruct((M, C), jnp.float32),
        grid=(pl.cdiv(M, tm),),
        in_specs=[pl.BlockSpec((tm, C), lambda i: (i, 0)),
                  pl.BlockSpec((1, C), lambda i: (0, 0)),
                  pl.BlockSpec((1, C), lambda i: (0, 0))],
        out_specs=pl.BlockSpec((tm, C), lambda i: (i, 0)),
        compiler_params=pltpu.CompilerParams(dimension_semantics=("parallel",)),
    )(x2, scale.reshape(1, C), bias.reshape(1, C))
    return out.reshape(N, H, W, C)


def bn_relu_mean(x_nhwc, gamma, beta, mean, var, eps=1e-5):
    """Fused final bn1 + ReLU + adaptive-avg-pool((1,1)) -> (N, C)."""
    N, H, W, C = x_nhwc.shape
    scale, bias = _bn_fold(gamma, beta, mean, var, eps)
    x3 = x_nhwc.reshape(N, H * W, C).astype(jnp.float32)
    out = pl.pallas_call(
        _bn_relu_mean_kernel,
        out_shape=jax.ShapeDtypeStruct((N, 1, C), jnp.float32),
        grid=(N,),
        in_specs=[pl.BlockSpec((None, H * W, C), lambda n: (n, 0, 0)),
                  pl.BlockSpec((1, C), lambda n: (0, 0)),
                  pl.BlockSpec((1, C), lambda n: (0, 0))],
        out_specs=pl.BlockSpec((None, 1, C), lambda n: (n, 0, 0)),
        compiler_params=pltpu.CompilerParams(dimension_semantics=("parallel",)),
    )(x3, scale.reshape(1, C), bias.reshape(1, C))
    return out.reshape(N, C)


# ----------------------------------------------------------------------------
# Conv via im2col + fused Pallas matmul
# ----------------------------------------------------------------------------
def _im2col(x, kh, kw, stride, pad):
    """x: (N,H,W,C) -> patches (N*Ho*Wo, C*kh*kw); column order c*kh*kw + i*kw + j
    matches the PyTorch (Cout, Cin, kh, kw) weight flattening."""
    N, H, W, C = x.shape
    xp = jnp.pad(x, ((0, 0), (pad, pad), (pad, pad), (0, 0)))
    Ho = (H + 2 * pad - kh) // stride + 1
    Wo = (W + 2 * pad - kw) // stride + 1
    cols = []
    for i in range(kh):
        for j in range(kw):
            cols.append(xp[:, i:i + stride * Ho:stride, j:j + stride * Wo:stride, :])
    patches = jnp.stack(cols, axis=-1)              # (N,Ho,Wo,C,kh*kw)
    patches = patches.reshape(N, Ho, Wo, C * kh * kw)
    return patches.reshape(N * Ho * Wo, C * kh * kw), (N, Ho, Wo)
    # TODO(synk): im2col still materializes a kh*kw-expanded patch tensor in HBM;
    # a shift-and-accumulate conv kernel would cut activation read traffic to ~1x.


def conv2d(x_nhwc, w_torch, stride, pad, *, bn_params=None, residual=None):
    """x: NHWC, w_torch: (Cout, Cin, kh, kw) PyTorch layout, no conv bias.
    Optional fused epilogue: eval-BN+ReLU and/or residual add."""
    Cout, Cin, kh, kw = w_torch.shape
    patches, (N, Ho, Wo) = _im2col(x_nhwc, kh, kw, stride, pad)
    wmat = w_torch.reshape(Cout, Cin * kh * kw).T
    scale = bias = None
    if bn_params is not None:
        scale, bias = _bn_fold(**bn_params)
    res2 = None
    if residual is not None:
        res2 = residual.reshape(N * Ho * Wo, Cout)
    out = matmul_fused(patches, wmat, scale=scale, bias=bias, residual=res2)
    return out.reshape(N, Ho, Wo, Cout)


# ----------------------------------------------------------------------------
# Blocks (eval-mode semantics: dropout = identity, BN = running stats)
# ----------------------------------------------------------------------------
def wide_basic_block_v2(x, p):
    stride = p['stride']
    a = bn_relu(x, **p['bn1'])
    sc = conv2d(x, p['shortcut'], stride, 0) if 'shortcut' in p else x
    out = conv2d(a, p['conv1'], stride, 1, bn_params=p['bn2'])   # conv1 + bn2 + relu fused
    out = conv2d(out, p['conv2'], 1, 1, residual=sc)             # conv2 + shortcut add fused
    return out


def _hyper_h_transform(h):
    # eval-mode: (h > 1e-4)*INITIAL_SIGMA + h/SCALE_FACTOR
    return (h > 0.0001).astype(jnp.float32) * INITIAL_SIGMA + h / SCALE_FACTOR


def wide_hyper_basic_block_pair(x, p, h0_in, h1_in):
    """Applies the hyper block to x for BOTH decision branches (sigma_0 and
    sigma_1), sharing bn1+relu, the first im2col and the shortcut conv, and
    batching all per-sample hypernet convolutions into single pallas_calls."""
    stride, inp, outp = p['stride'], p['in'], p['out']
    N = x.shape[0]

    a = bn_relu(x, **p['bn1'])
    sc = conv2d(x, p['shortcut'], stride, 0) if 'shortcut' in p else x   # (N,Ho,Wo,outp)

    h0 = _hyper_h_transform(h0_in)   # (N,1)
    h1 = _hyper_h_transform(h1_in)

    # ---- hypernet weight generation (tiny matmuls -> plain XLA) -------------
    W1, b1 = p['hyperconv1']['w'], p['hyperconv1']['b']   # (outp*inp*9, 1), (outp*inp*9,)
    tot1_0 = h0 @ W1.T + b1[None, :]                      # (N, outp*inp*9)
    tot1_1 = h1 @ W1.T + b1[None, :]

    def to_mat(tot, cin):
        # (N, Cout, cin*9) -> (N, K, Cout); K order = cin*9 + i*3 + j (matches im2col)
        return tot.reshape(N, outp, cin * 9).transpose(0, 2, 1)

    w1_cat = jnp.concatenate([to_mat(tot1_0, inp), to_mat(tot1_1, inp)], axis=-1)  # (N,K,2*outp)

    # ---- conv1 for both branches in one batched matmul (shared patches) -----
    patches1, (_, Ho, Wo) = _im2col(a, 3, 3, stride, 1)
    M = Ho * Wo
    patches1 = patches1.reshape(N, M, inp * 9)

    s2, bb2 = _bn_fold(**p['bn2'])
    scale_cat = jnp.concatenate([s2, s2])[None, :]     # (1, 2*outp)
    bias_cat = jnp.concatenate([bb2, bb2])[None, :]
    out_cat = batched_matmul_fused(patches1, w1_cat, scale=scale_cat, bias=bias_cat)
    out0 = out_cat[..., :outp].reshape(N, Ho, Wo, outp)
    out1 = out_cat[..., outp:].reshape(N, Ho, Wo, outp)

    # ---- conv2: both branches stacked along the batch axis ------------------
    W2, b2 = p['hyperconv2']['w'], p['hyperconv2']['b']   # (outp*outp*9, 1)
    tot2_0 = h0 @ W2.T + b2[None, :]
    tot2_1 = h1 @ W2.T + b2[None, :]
    w2_0 = tot2_0.reshape(N, outp, outp * 9).transpose(0, 2, 1)   # (N, K2, outp)
    w2_1 = tot2_1.reshape(N, outp, outp * 9).transpose(0, 2, 1)
    wmats2 = jnp.concatenate([w2_0, w2_1], axis=0)                # (2N, K2, outp)

    p2_0, _ = _im2col(out0, 3, 3, 1, 1)
    p2_1, _ = _im2col(out1, 3, 3, 1, 1)
    patches2 = jnp.concatenate([p2_0.reshape(N, M, outp * 9),
                                p2_1.reshape(N, M, outp * 9)], axis=0)  # (2N, M, K2)

    # Shortcut residual: one (N, M, outp) slab read by both branches (n % N map).
    sc2 = sc.reshape(N, M, outp)
    out2 = batched_matmul_fused(patches2, wmats2, residual=sc2)   # (2N, M, outp)
    x0 = out2[:N].reshape(N, Ho, Wo, outp)
    x1 = out2[N:].reshape(N, Ho, Wo, outp)
    return x0, x1


def embedding_binary_selection(x, p):
    # TODO(synk): EmbeddingBinarySelectionLayer source not provided; implemented as
    # global-avg-pool -> Linear(C,2) -> softmax -> hard-threshold binarization (eval).
    pooled = jnp.mean(x, axis=(1, 2))                    # (N, C)
    logits = pooled @ p['w'].T + p['b'][None, :]         # tiny -> plain XLA
    sigma_r = jax.nn.softmax(logits, axis=-1)
    sigma_b_r = sigma_r[:, 1]
    sigma_b = (sigma_b_r > 0.5).astype(jnp.float32)
    return sigma_r, sigma_b, sigma_b_r


# ----------------------------------------------------------------------------
# Parameter initialization (deterministic, synthetic)
# ----------------------------------------------------------------------------
def _kaiming_conv(key, cout, cin, kh, kw):
    fan_out = cout * kh * kw
    std = (2.0 / fan_out) ** 0.5
    return std * jax.random.normal(key, (cout, cin, kh, kw), jnp.float32)


def _bn_params(c):
    return dict(gamma=jnp.ones(c, jnp.float32), beta=jnp.zeros(c, jnp.float32),
                mean=jnp.zeros(c, jnp.float32), var=jnp.ones(c, jnp.float32))


def _linear_params(key, in_f, out_f):
    k1, k2 = jax.random.split(key)
    bound = 1.0 / (in_f ** 0.5)
    return dict(w=jax.random.uniform(k1, (out_f, in_f), jnp.float32, -bound, bound),
                b=jax.random.uniform(k2, (out_f,), jnp.float32, -bound, bound))


def _hyper_linear_params(key, in_f, out_f, cout):
    # scaled so the generated conv kernels have a kaiming-ish magnitude
    k1, k2 = jax.random.split(key)
    std = (2.0 / (cout * 9)) ** 0.5
    return dict(w=std * jax.random.normal(k1, (out_f, in_f), jnp.float32),
                b=std * jax.random.normal(k2, (out_f,), jnp.float32))


def init_params(key, depth=10, k=1, num_classes=10, num_in_channels=3):
    n = int((depth - 4) / 6)
    stage = [16, 16 * k, 32 * k, 64 * k]
    keys = iter(jax.random.split(key, 128))
    params = {}
    params['conv1'] = _kaiming_conv(next(keys), stage[0], num_in_channels, 3, 3)

    def make_basic(inp, outp, stride):
        p = dict(type='basic', stride=stride,
                 bn1=_bn_params(inp),
                 conv1=_kaiming_conv(next(keys), outp, inp, 3, 3),
                 bn2=_bn_params(outp),
                 conv2=_kaiming_conv(next(keys), outp, outp, 3, 3))
        if stride != 1 or inp != outp:
            p['shortcut'] = _kaiming_conv(next(keys), outp, inp, 1, 1)
        return p

    # layer1
    layer1, inp = [], 16
    for s in [1] + [1] * (n - 1):
        layer1.append(make_basic(inp, stage[1], s))
        inp = stage[1]
    params['layer1'] = layer1

    # layer2 (first block is the hyper block)
    strides = [2] + [1] * (n - 1)
    inp, outp = stage[1], stage[2]
    hp = dict(type='hyper', stride=strides[0], **{'in': inp, 'out': outp},
              bn1=_bn_params(inp),
              hyperconv1=_hyper_linear_params(next(keys), 1, inp * outp * 9, outp),
              bn2=_bn_params(outp),
              hyperconv2=_hyper_linear_params(next(keys), 1, outp * outp * 9, outp))
    if strides[0] != 1 or inp != outp:
        hp['shortcut'] = _kaiming_conv(next(keys), outp, inp, 1, 1)
    layer2 = [hp]
    inp = outp
    for s in strides[1:]:
        layer2.append(make_basic(inp, outp, s))
        inp = outp
    params['layer2'] = layer2

    # layer3
    layer3, outp = [], stage[3]
    for s in [2] + [1] * (n - 1):
        layer3.append(make_basic(inp, outp, s))
        inp = outp
    params['layer3'] = layer3

    params['bn1'] = _bn_params(stage[3])
    params['fc'] = _linear_params(next(keys), stage[3], num_classes)
    params['sel1'] = _linear_params(next(keys), stage[1], 2)
    return params


# ----------------------------------------------------------------------------
# Full forward (eval mode, binarize path as in model.eval())
# ----------------------------------------------------------------------------
def wide_resnet_hyperdecisionet_forward(params, x_nchw):
    x = jnp.transpose(x_nchw, (0, 2, 3, 1)).astype(jnp.float32)   # NCHW -> NHWC
    x = conv2d(x, params['conv1'], 1, 1)

    for blk in params['layer1']:
        x = wide_basic_block_v2(x, blk)

    sigma_r, sigma_b, sigma_b_r = embedding_binary_selection(x, params['sel1'])
    sigma_0 = (1.0 - sigma_b)[:, None]       # eval-mode create_sigmas
    sigma_1 = sigma_b[:, None]

    layer2 = params['layer2']
    x0, x1 = wide_hyper_basic_block_pair(x, layer2[0], sigma_0, sigma_1)
    if len(layer2) > 1:
        # Remaining layer2 blocks share weights across both decision branches:
        # run them once on a doubled batch (halves launches, doubles M tile).
        N = x0.shape[0]
        xb = jnp.concatenate([x0, x1], axis=0)
        for blk in layer2[1:]:
            xb = wide_basic_block_v2(xb, blk)
        x = xb[:N] + xb[N:]
    else:
        x = x0 + x1

    for blk in params['layer3']:
        x = wide_basic_block_v2(x, blk)

    pooled = bn_relu_mean(x, **params['bn1'])                      # fused bn+relu+avgpool
    logits = pooled @ params['fc']['w'].T + params['fc']['b'][None, :]   # tiny -> XLA
    return logits, sigma_b, sigma_r, sigma_b_r


if __name__ == "__main__":
    key = jax.random.PRNGKey(0)
    pkey, xkey = jax.random.split(key)
    # depth=10, k=1  ->  n=1 block per stage, stages [16,16,32,64]
    params = init_params(pkey, depth=10, k=1, num_classes=10, num_in_channels=3)
    x = jax.random.normal(xkey, (2, 3, 16, 16), jnp.float32)       # NCHW like PyTorch

    fwd = jax.jit(lambda inp: wide_resnet_hyperdecisionet_forward(params, inp))
    out = fwd(x)
    jax.block_until_ready(out)
    logits, sigma_b, sigma_r, sigma_b_r = out
    assert logits.shape == (2, 10) and sigma_r.shape == (2, 2)
    assert sigma_b.shape == (2,) and sigma_b_r.shape == (2,)
    assert bool(jnp.all(jnp.isfinite(logits)))
    print("KERNEL_OK")
</pallas_src>

<mosaic_0001>
module attributes {stable_mosaic.version = 11 : i64} {
  func.func @_mm_kernel(%arg0: i32, %arg1: memref<512x27xbf16, #tpu.memory_space<vmem>>, %arg2: memref<27x16xbf16, #tpu.memory_space<vmem>>, %arg3: memref<512x16xf32, #tpu.memory_space<vmem>>) attributes {dimension_semantics = [#tpu.dimension_semantics<parallel>], iteration_bounds = array<i64: 1>, scalar_prefetch = 0 : i64, scratch_operands = 0 : i64, tpu.core_type = #tpu.core_type<tc>, window_params = [{transform_indices = @transform_0, window_bounds = array<i64: 512, 27>}, {pipeline_mode = #tpu.pipeline_mode<synchronous>, transform_indices = @transform_1, window_bounds = array<i64: 27, 16>}, {transform_indices = @transform_2, window_bounds = array<i64: 512, 16>}]} {
    %c0 = arith.constant 0 : index
    %c0_0 = arith.constant 0 : index
    %0 = vector.load %arg1[%c0, %c0_0] : memref<512x27xbf16, #tpu.memory_space<vmem>>, vector<512x27xbf16>
    %c0_1 = arith.constant 0 : index
    %c0_2 = arith.constant 0 : index
    %1 = vector.load %arg2[%c0_1, %c0_2] : memref<27x16xbf16, #tpu.memory_space<vmem>>, vector<27x16xbf16>
    %cst = arith.constant dense<0.000000e+00> : vector<512x16xf32>
    %2 = tpu.matmul %0, %1, %cst {dimension_numbers = #tpu.dot_dimension_numbers<[1], [0], [0], [1], [0, 0, 1, 1], [], []>} : vector<512x27xbf16>, vector<27x16xbf16>, vector<512x16xf32> -> vector<512x16xf32>
    %c0_3 = arith.constant 0 : index
    %c0_4 = arith.constant 0 : index
    %3 = vector.load %arg3[%c0_3, %c0_4] : memref<512x16xf32, #tpu.memory_space<vmem>>, vector<512x16xf32>
    tpu.vector_store %arg3[%c0_3, %c0_4], %2 {strides = array<i32>} : memref<512x16xf32, #tpu.memory_space<vmem>>, vector<512x16xf32>,
    return
  }
  func.func @transform_0(%arg0: i32) -> (i32, i32) {
    %c0_i32 = arith.constant 0 : i32
    %c0_i32_0 = arith.constant 0 : i32
    return %arg0, %c0_i32 : i32, i32
  }
  func.func @transform_1(%arg0: i32) -> (i32, i32) {
    %c0_i32 = arith.constant 0 : i32
    %c0_i32_0 = arith.constant 0 : i32
    %c0_i32_1 = arith.constant 0 : i32
    return %c0_i32, %c0_i32_0 : i32, i32
  }
  func.func @transform_2(%arg0: i32) -> (i32, i32) {
    %c0_i32 = arith.constant 0 : i32
    %c0_i32_0 = arith.constant 0 : i32
    return %arg0, %c0_i32 : i32, i32
  }
}

module attributes {stable_mosaic.version = 11 : i64} {
  func.func @_bn_relu_kernel(%arg0: i32, %arg1: memref<512x16xf32, #tpu.memory_space<vmem>>, %arg2: memref<1x16xf32, #tpu.memory_space<vmem>>, %arg3: memref<1x16xf32, #tpu.memory_space<vmem>>, %arg4: memref<512x16xf32, #tpu.memory_space<vmem>>) attributes {dimension_semantics = [#tpu.dimension_semantics<parallel>], iteration_bounds = array<i64: 1>, scalar_prefetch = 0 : i64, scratch_operands = 0 : i64, tpu.core_type = #tpu.core_type<tc>, window_params = [{transform_indices = @transform_0, window_bounds = array<i64: 512, 16>}, {pipeline_mode = #tpu.pipeline_mode<synchronous>, transform_indices = @transform_1, window_bounds = array<i64: 1, 16>}, {pipeline_mode = #tpu.pipeline_mode<synchronous>, transform_indices = @transform_2, window_bounds = array<i64: 1, 16>}, {transform_indices = @transform_3, window_bounds = array<i64: 512, 16>}]} {
    %c0 = arith.constant 0 : index
    %c0_0 = arith.constant 0 : index
    %0 = vector.load %arg1[%c0, %c0_0] : memref<512x16xf32, #tpu.memory_space<vmem>>, vector<512x16xf32>
    %c0_1 = arith.constant 0 : index
    %c0_2 = arith.constant 0 : index
    %1 = vector.load %arg2[%c0_1, %c0_2] : memref<1x16xf32, #tpu.memory_space<vmem>>, vector<1x16xf32>
    %2 = vector.broadcast %1 : vector<1x16xf32> to vector<512x16xf32>
    %3 = arith.mulf %0, %2 : vector<512x16xf32>
    %c0_3 = arith.constant 0 : index
    %c0_4 = arith.constant 0 : index
    %4 = vector.load %arg3[%c0_3, %c0_4] : memref<1x16xf32, #tpu.memory_space<vmem>>, vector<1x16xf32>
    %5 = vector.broadcast %4 : vector<1x16xf32> to vector<512x16xf32>
    %6 = arith.addf %3, %5 : vector<512x16xf32>
    %cst = arith.constant 0.000000e+00 : f32
    %7 = vector.broadcast %cst : f32 to vector<512x16xf32>
    %8 = arith.maximumf %6, %7 : vector<512x16xf32>
    %c0_5 = arith.constant 0 : index
    %c0_6 = arith.constant 0 : index
    %9 = vector.load %arg4[%c0_5, %c0_6] : memref<512x16xf32, #tpu.memory_space<vmem>>, vector<512x16xf32>
    tpu.vector_store %arg4[%c0_5, %c0_6], %8 {strides = array<i32>} : memref<512x16xf32, #tpu.memory_space<vmem>>, vector<512x16xf32>,
    return
  }
  func.func @transform_0(%arg0: i32) -> (i32, i32) {
    %c0_i32 = arith.constant 0 : i32
    %c0_i32_0 = arith.constant 0 : i32
    return %arg0, %c0_i32 : i32, i32
  }
  func.func @transform_1(%arg0: i32) -> (i32, i32) {
    %c0_i32 = arith.constant 0 : i32
    %c0_i32_0 = arith.constant 0 : i32
    %c0_i32_1 = arith.constant 0 : i32
    return %c0_i32, %c0_i32_0 : i32, i32
  }
  func.func @transform_2(%arg0: i32) -> (i32, i32) {
    %c0_i32 = arith.constant 0 : i32
    %c0_i32_0 = arith.constant 0 : i32
    %c0_i32_1 = arith.constant 0 : i32
    return %c0_i32, %c0_i32_0 : i32, i32
  }
  func.func @transform_3(%arg0: i32) -> (i32, i32) {
    %c0_i32 = arith.constant 0 : i32
    %c0_i32_0 = arith.constant 0 : i32
    return %arg0, %c0_i32 : i32, i32
  }
}

module attributes {stable_mosaic.version = 11 : i64} {
  func.func @_mm_kernel(%arg0: i32, %arg1: memref<512x144xbf16, #tpu.memory_space<vmem>>, %arg2: memref<144x16xbf16, #tpu.memory_space<vmem>>, %arg3: memref<512x16xf32, #tpu.memory_space<vmem>>, %arg4: memref<512x16xf32, #tpu.memory_space<vmem>>) attributes {dimension_semantics = [#tpu.dimension_semantics<parallel>], iteration_bounds = array<i64: 1>, scalar_prefetch = 0 : i64, scratch_operands = 0 : i64, tpu.core_type = #tpu.core_type<tc>, window_params = [{transform_indices = @transform_0, window_bounds = array<i64: 512, 144>}, {pipeline_mode = #tpu.pipeline_mode<synchronous>, transform_indices = @transform_1, window_bounds = array<i64: 144, 16>}, {transform_indices = @transform_2, window_bounds = array<i64: 512, 16>}, {transform_indices = @transform_3, window_bounds = array<i64: 512, 16>}]} {
    %c0 = arith.constant 0 : index
    %c0_0 = arith.constant 0 : index
    %0 = vector.load %arg1[%c0, %c0_0] : memref<512x144xbf16, #tpu.memory_space<vmem>>, vector<512x144xbf16>
    %c0_1 = arith.constant 0 : index
    %c0_2 = arith.constant 0 : index
    %1 = vector.load %arg2[%c0_1, %c0_2] : memref<144x16xbf16, #tpu.memory_space<vmem>>, vector<144x16xbf16>
    %cst = arith.constant dense<0.000000e+00> : vector<512x16xf32>
    %2 = tpu.matmul %0, %1, %cst {dimension_numbers = #tpu.dot_dimension_numbers<[1], [0], [0], [1], [0, 0, 1, 1], [], []>} : vector<512x144xbf16>, vector<144x16xbf16>, vector<512x16xf32> -> vector<512x16xf32>
    %c0_3 = arith.constant 0 : index
    %c0_4 = arith.constant 0 : index
    %3 = vector.load %arg3[%c0_3, %c0_4] : memref<512x16xf32, #tpu.memory_space<vmem>>, vector<512x16xf32>
    %4 = arith.addf %2, %3 : vector<512x16xf32>
    %c0_5 = arith.constant 0 : index
    %c0_6 = arith.constant 0 : index
    %5 = vector.load %arg4[%c0_5, %c0_6] : memref<512x16xf32, #tpu.memory_space<vmem>>, vector<512x16xf32>
    tpu.vector_store %arg4[%c0_5, %c0_6], %4 {strides = array<i32>} : memref<512x16xf32, #tpu.memory_space<vmem>>, vector<512x16xf32>,
    return
  }
  func.func @transform_0(%arg0: i32) -> (i32, i32) {
    %c0_i32 = arith.constant 0 : i32
    %c0_i32_0 = arith.constant 0 : i32
    return %arg0, %c0_i32 : i32, i32
  }
  func.func @transform_1(%arg0: i32) -> (i32, i32) {
    %c0_i32 = arith.constant 0 : i32
    %c0_i32_0 = arith.constant 0 : i32
    %c0_i32_1 = arith.constant 0 : i32
    return %c0_i32, %c0_i32_0 : i32, i32
  }
  func.func @transform_2(%arg0: i32) -> (i32, i32) {
    %c0_i32 = arith.constant 0 : i32
    %c0_i32_0 = arith.constant 0 : i32
    return %arg0, %c0_i32 : i32, i32
  }
  func.func @transform_3(%arg0: i32) -> (i32, i32) {
    %c0_i32 = arith.constant 0 : i32
    %c0_i32_0 = arith.constant 0 : i32
    return %arg0, %c0_i32 : i32, i32
  }
}

module attributes {stable_mosaic.version = 11 : i64} {
  func.func @_mm_kernel(%arg0: i32, %arg1: memref<512x144xbf16, #tpu.memory_space<vmem>>, %arg2: memref<144x16xbf16, #tpu.memory_space<vmem>>, %arg3: memref<1x16xf32, #tpu.memory_space<vmem>>, %arg4: memref<1x16xf32, #tpu.memory_space<vmem>>, %arg5: memref<512x16xf32, #tpu.memory_space<vmem>>) attributes {dimension_semantics = [#tpu.dimension_semantics<parallel>], iteration_bounds = array<i64: 1>, scalar_prefetch = 0 : i64, scratch_operands = 0 : i64, tpu.core_type = #tpu.core_type<tc>, window_params = [{transform_indices = @transform_0, window_bounds = array<i64: 512, 144>}, {pipeline_mode = #tpu.pipeline_mode<synchronous>, transform_indices = @transform_1, window_bounds = array<i64: 144, 16>}, {pipeline_mode = #tpu.pipeline_mode<synchronous>, transform_indices = @transform_2, window_bounds = array<i64: 1, 16>}, {pipeline_mode = #tpu.pipeline_mode<synchronous>, transform_indices = @transform_3, window_bounds = array<i64: 1, 16>}, {transform_indices = @transform_4, window_bounds = array<i64: 512, 16>}]} {
    %c0 = arith.constant 0 : index
    %c0_0 = arith.constant 0 : index
    %0 = vector.load %arg1[%c0, %c0_0] : memref<512x144xbf16, #tpu.memory_space<vmem>>, vector<512x144xbf16>
    %c0_1 = arith.constant 0 : index
    %c0_2 = arith.constant 0 : index
    %1 = vector.load %arg2[%c0_1, %c0_2] : memref<144x16xbf16, #tpu.memory_space<vmem>>, vector<144x16xbf16>
    %cst = arith.constant dense<0.000000e+00> : vector<512x16xf32>
    %2 = tpu.matmul %0, %1, %cst {dimension_numbers = #tpu.dot_dimension_numbers<[1], [0], [0], [1], [0, 0, 1, 1], [], []>} : vector<512x144xbf16>, vector<144x16xbf16>, vector<512x16xf32> -> vector<512x16xf32>
    %c0_3 = arith.constant 0 : index
    %c0_4 = arith.constant 0 : index
    %3 = vector.load %arg3[%c0_3, %c0_4] : memref<1x16xf32, #tpu.memory_space<vmem>>, vector<1x16xf32>
    %4 = vector.broadcast %3 : vector<1x16xf32> to vector<512x16xf32>
    %5 = arith.mulf %2, %4 : vector<512x16xf32>
    %c0_5 = arith.constant 0 : index
    %c0_6 = arith.constant 0 : index
    %6 = vector.load %arg4[%c0_5, %c0_6] : memref<1x16xf32, #tpu.memory_space<vmem>>, vector<1x16xf32>
    %7 = vector.broadcast %6 : vector<1x16xf32> to vector<512x16xf32>
    %8 = arith.addf %5, %7 : vector<512x16xf32>
    %cst_7 = arith.constant 0.000000e+00 : f32
    %9 = vector.broadcast %cst_7 : f32 to vector<512x16xf32>
    %10 = arith.maximumf %8, %9 : vector<512x16xf32>
    %c0_8 = arith.constant 0 : index
    %c0_9 = arith.constant 0 : index
    %11 = vector.load %arg5[%c0_8, %c0_9] : memref<512x16xf32, #tpu.memory_space<vmem>>, vector<512x16xf32>
    tpu.vector_store %arg5[%c0_8, %c0_9], %10 {strides = array<i32>} : memref<512x16xf32, #tpu.memory_space<vmem>>, vector<512x16xf32>,
    return
  }
  func.func @transform_0(%arg0: i32) -> (i32, i32) {
    %c0_i32 = arith.constant 0 : i32
    %c0_i32_0 = arith.constant 0 : i32
    return %arg0, %c0_i32 : i32, i32
  }
  func.func @transform_1(%arg0: i32) -> (i32, i32) {
    %c0_i32 = arith.constant 0 : i32
    %c0_i32_0 = arith.constant 0 : i32
    %c0_i32_1 = arith.constant 0 : i32
    return %c0_i32, %c0_i32_0 : i32, i32
  }
  func.func @transform_2(%arg0: i32) -> (i32, i32) {
    %c0_i32 = arith.constant 0 : i32
    %c0_i32_0 = arith.constant 0 : i32
    %c0_i32_1 = arith.constant 0 : i32
    return %c0_i32, %c0_i32_0 : i32, i32
  }
  func.func @transform_3(%arg0: i32) -> (i32, i32) {
    %c0_i32 = arith.constant 0 : i32
    %c0_i32_0 = arith.constant 0 : i32
    %c0_i32_1 = arith.constant 0 : i32
    return %c0_i32, %c0_i32_0 : i32, i32
  }
  func.func @transform_4(%arg0: i32) -> (i32, i32) {
    %c0_i32 = arith.constant 0 : i32
    %c0_i32_0 = arith.constant 0 : i32
    return %arg0, %c0_i32 : i32, i32
  }
}

module attributes {stable_mosaic.version = 11 : i64} {
  func.func @_mm_kernel(%arg0: i32, %arg1: memref<128x16xbf16, #tpu.memory_space<vmem>>, %arg2: memref<16x32xbf16, #tpu.memory_space<vmem>>, %arg3: memref<128x32xf32, #tpu.memory_space<vmem>>) attributes {dimension_semantics = [#tpu.dimension_semantics<parallel>], iteration_bounds = array<i64: 1>, scalar_prefetch = 0 : i64, scratch_operands = 0 : i64, tpu.core_type = #tpu.core_type<tc>, window_params = [{transform_indices = @transform_0, window_bounds = array<i64: 128, 16>}, {pipeline_mode = #tpu.pipeline_mode<synchronous>, transform_indices = @transform_1, window_bounds = array<i64: 16, 32>}, {transform_indices = @transform_2, window_bounds = array<i64: 128, 32>}]} {
    %c0 = arith.constant 0 : index
    %c0_0 = arith.constant 0 : index
    %0 = vector.load %arg1[%c0, %c0_0] : memref<128x16xbf16, #tpu.memory_space<vmem>>, vector<128x16xbf16>
    %c0_1 = arith.constant 0 : index
    %c0_2 = arith.constant 0 : index
    %1 = vector.load %arg2[%c0_1, %c0_2] : memref<16x32xbf16, #tpu.memory_space<vmem>>, vector<16x32xbf16>
    %cst = arith.constant dense<0.000000e+00> : vector<128x32xf32>
    %2 = tpu.matmul %0, %1, %cst {dimension_numbers = #tpu.dot_dimension_numbers<[1], [0], [0], [1], [0, 0, 1, 1], [], []>} : vector<128x16xbf16>, vector<16x32xbf16>, vector<128x32xf32> -> vector<128x32xf32>
    %c0_3 = arith.constant 0 : index
    %c0_4 = arith.constant 0 : index
    %3 = vector.load %arg3[%c0_3, %c0_4] : memref<128x32xf32, #tpu.memory_space<vmem>>, vector<128x32xf32>
    tpu.vector_store %arg3[%c0_3, %c0_4], %2 {strides = array<i32>} : memref<128x32xf32, #tpu.memory_space<vmem>>, vector<128x32xf32>,
    return
  }
  func.func @transform_0(%arg0: i32) -> (i32, i32) {
    %c0_i32 = arith.constant 0 : i32
    %c0_i32_0 = arith.constant 0 : i32
    return %arg0, %c0_i32 : i32, i32
  }
  func.func @transform_1(%arg0: i32) -> (i32, i32) {
    %c0_i32 = arith.constant 0 : i32
    %c0_i32_0 = arith.constant 0 : i32
    %c0_i32_1 = arith.constant 0 : i32
    return %c0_i32, %c0_i32_0 : i32, i32
  }
  func.func @transform_2(%arg0: i32) -> (i32, i32) {
    %c0_i32 = arith.constant 0 : i32
    %c0_i32_0 = arith.constant 0 : i32
    return %arg0, %c0_i32 : i32, i32
  }
}

module attributes {stable_mosaic.version = 11 : i64} {
  func.func @_mm_kernel(%arg0: i32, %arg1: memref<1x64x144xbf16, #tpu.memory_space<vmem>>, %arg2: memref<1x144x64xbf16, #tpu.memory_space<vmem>>, %arg3: memref<1x64xf32, #tpu.memory_space<vmem>>, %arg4: memref<1x64xf32, #tpu.memory_space<vmem>>, %arg5: memref<1x64x64xf32, #tpu.memory_space<vmem>>) attributes {dimension_semantics = [#tpu.dimension_semantics<parallel>], iteration_bounds = array<i64: 2>, scalar_prefetch = 0 : i64, scratch_operands = 0 : i64, tpu.core_type = #tpu.core_type<tc>, window_params = [{transform_indices = @transform_0, window_bounds = array<i64: 1, 64, 144>}, {transform_indices = @transform_1, window_bounds = array<i64: 1, 144, 64>}, {pipeline_mode = #tpu.pipeline_mode<synchronous>, transform_indices = @transform_2, window_bounds = array<i64: 1, 64>}, {pipeline_mode = #tpu.pipeline_mode<synchronous>, transform_indices = @transform_3, window_bounds = array<i64: 1, 64>}, {transform_indices = @transform_4, window_bounds = array<i64: 1, 64, 64>}]} {
    %c0 = arith.constant 0 : index
    %c0_0 = arith.constant 0 : index
    %c0_1 = arith.constant 0 : index
    %0 = vector.load %arg1[%c0, %c0_0, %c0_1] : memref<1x64x144xbf16, #tpu.memory_space<vmem>>, vector<1x64x144xbf16>
    %1 = vector.shape_cast %0 : vector<1x64x144xbf16> to vector<64x144xbf16>
    %c0_2 = arith.constant 0 : index
    %c0_3 = arith.constant 0 : index
    %c0_4 = arith.constant 0 : index
    %2 = vector.load %arg2[%c0_2, %c0_3, %c0_4] : memref<1x144x64xbf16, #tpu.memory_space<vmem>>, vector<1x144x64xbf16>
    %3 = vector.shape_cast %2 : vector<1x144x64xbf16> to vector<144x64xbf16>
    %cst = arith.constant dense<0.000000e+00> : vector<64x64xf32>
    %4 = tpu.matmul %1, %3, %cst {dimension_numbers = #tpu.dot_dimension_numbers<[1], [0], [0], [1], [0, 0, 1, 1], [], []>} : vector<64x144xbf16>, vector<144x64xbf16>, vector<64x64xf32> -> vector<64x64xf32>
    %c0_5 = arith.constant 0 : index
    %c0_6 = arith.constant 0 : index
    %5 = vector.load %arg3[%c0_5, %c0_6] : memref<1x64xf32, #tpu.memory_space<vmem>>, vector<1x64xf32>
    %6 = vector.broadcast %5 : vector<1x64xf32> to vector<64x64xf32>
    %7 = arith.mulf %4, %6 : vector<64x64xf32>
    %c0_7 = arith.constant 0 : index
    %c0_8 = arith.constant 0 : index
    %8 = vector.load %arg4[%c0_7, %c0_8] : memref<1x64xf32, #tpu.memory_space<vmem>>, vector<1x64xf32>
    %9 = vector.broadcast %8 : vector<1x64xf32> to vector<64x64xf32>
    %10 = arith.addf %7, %9 : vector<64x64xf32>
    %cst_9 = arith.constant 0.000000e+00 : f32
    %11 = vector.broadcast %cst_9 : f32 to vector<64x64xf32>
    %12 = arith.maximumf %10, %11 : vector<64x64xf32>
    %c0_10 = arith.constant 0 : index
    %c0_11 = arith.constant 0 : index
    %c0_12 = arith.constant 0 : index
    %13 = vector.load %arg5[%c0_10, %c0_11, %c0_12] : memref<1x64x64xf32, #tpu.memory_space<vmem>>, vector<1x64x64xf32>
    %14 = vector.shape_cast %13 : vector<1x64x64xf32> to vector<64x64xf32>
    %15 = vector.shape_cast %12 : vector<64x64xf32> to vector<1x64x64xf32>
    tpu.vector_store %arg5[%c0_10, %c0_11, %c0_12], %15 {strides = array<i32>} : memref<1x64x64xf32, #tpu.memory_space<vmem>>, vector<1x64x64xf32>,
    return
  }
  func.func @transform_0(%arg0: i32) -> (i32, i32, i32) {
    %c0_i32 = arith.constant 0 : i32
    %c0_i32_0 = arith.constant 0 : i32
    %c0_i32_1 = arith.constant 0 : i32
    return %arg0, %c0_i32, %c0_i32_0 : i32, i32, i32
  }
  func.func @transform_1(%arg0: i32) -> (i32, i32, i32) {
    %c0_i32 = arith.constant 0 : i32
    %c0_i32_0 = arith.constant 0 : i32
    %c0_i32_1 = arith.constant 0 : i32
    return %arg0, %c0_i32, %c0_i32_0 : i32, i32, i32
  }
  func.func @transform_2(%arg0: i32) -> (i32, i32) {
    %c0_i32 = arith.constant 0 : i32
    %c0_i32_0 = arith.constant 0 : i32
    %c0_i32_1 = arith.constant 0 : i32
    return %c0_i32, %c0_i32_0 : i32, i32
  }
  func.func @transform_3(%arg0: i32) -> (i32, i32) {
    %c0_i32 = arith.constant 0 : i32
    %c0_i32_0 = arith.constant 0 : i32
    %c0_i32_1 = arith.constant 0 : i32
    return %c0_i32, %c0_i32_0 : i32, i32
  }
  func.func @transform_4(%arg0: i32) -> (i32, i32, i32) {
    %c0_i32 = arith.constant 0 : i32
    %c0_i32_0 = arith.constant 0 : i32
    %c0_i32_1 = arith.constant 0 : i32
    return %arg0, %c0_i32, %c0_i32_0 : i32, i32, i32
  }
}

module attributes {stable_mosaic.version = 11 : i64} {
  func.func @_mm_kernel(%arg0: i32, %arg1: memref<1x64x288xbf16, #tpu.memory_space<vmem>>, %arg2: memref<1x288x32xbf16, #tpu.memory_space<vmem>>, %arg3: memref<1x64x32xf32, #tpu.memory_space<vmem>>, %arg4: memref<1x64x32xf32, #tpu.memory_space<vmem>>) attributes {dimension_semantics = [#tpu.dimension_semantics<parallel>], iteration_bounds = array<i64: 4>, scalar_prefetch = 0 : i64, scratch_operands = 0 : i64, tpu.core_type = #tpu.core_type<tc>, window_params = [{transform_indices = @transform_0, window_bounds = array<i64: 1, 64, 288>}, {transform_indices = @transform_1, window_bounds = array<i64: 1, 288, 32>}, {transform_indices = @transform_2, window_bounds = array<i64: 1, 64, 32>}, {transform_indices = @transform_3, window_bounds = array<i64: 1, 64, 32>}]} {
    %c0 = arith.constant 0 : index
    %c0_0 = arith.constant 0 : index
    %c0_1 = arith.constant 0 : index
    %0 = vector.load %arg1[%c0, %c0_0, %c0_1] : memref<1x64x288xbf16, #tpu.memory_space<vmem>>, vector<1x64x288xbf16>
    %1 = vector.shape_cast %0 : vector<1x64x288xbf16> to vector<64x288xbf16>
    %c0_2 = arith.constant 0 : index
    %c0_3 = arith.constant 0 : index
    %c0_4 = arith.constant 0 : index
    %2 = vector.load %arg2[%c0_2, %c0_3, %c0_4] : memref<1x288x32xbf16, #tpu.memory_space<vmem>>, vector<1x288x32xbf16>
    %3 = vector.shape_cast %2 : vector<1x288x32xbf16> to vector<288x32xbf16>
    %cst = arith.constant dense<0.000000e+00> : vector<64x32xf32>
    %4 = tpu.matmul %1, %3, %cst {dimension_numbers = #tpu.dot_dimension_numbers<[1], [0], [0], [1], [0, 0, 1, 1], [], []>} : vector<64x288xbf16>, vector<288x32xbf16>, vector<64x32xf32> -> vector<64x32xf32>
    %c0_5 = arith.constant 0 : index
    %c0_6 = arith.constant 0 : index
    %c0_7 = arith.constant 0 : index
    %5 = vector.load %arg3[%c0_5, %c0_6, %c0_7] : memref<1x64x32xf32, #tpu.memory_space<vmem>>, vector<1x64x32xf32>
    %6 = vector.shape_cast %5 : vector<1x64x32xf32> to vector<64x32xf32>
    %7 = arith.addf %4, %6 : vector<64x32xf32>
    %c0_8 = arith.constant 0 : index
    %c0_9 = arith.constant 0 : index
    %c0_10 = arith.constant 0 : index
    %8 = vector.load %arg4[%c0_8, %c0_9, %c0_10] : memref<1x64x32xf32, #tpu.memory_space<vmem>>, vector<1x64x32xf32>
    %9 = vector.shape_cast %8 : vector<1x64x32xf32> to vector<64x32xf32>
    %10 = vector.shape_cast %7 : vector<64x32xf32> to vector<1x64x32xf32>
    tpu.vector_store %arg4[%c0_8, %c0_9, %c0_10], %10 {strides = array<i32>} : memref<1x64x32xf32, #tpu.memory_space<vmem>>, vector<1x64x32xf32>,
    return
  }
  func.func @transform_0(%arg0: i32) -> (i32, i32, i32) {
    %c0_i32 = arith.constant 0 : i32
    %c0_i32_0 = arith.constant 0 : i32
    %c0_i32_1 = arith.constant 0 : i32
    return %arg0, %c0_i32, %c0_i32_0 : i32, i32, i32
  }
  func.func @transform_1(%arg0: i32) -> (i32, i32, i32) {
    %c0_i32 = arith.constant 0 : i32
    %c0_i32_0 = arith.constant 0 : i32
    %c0_i32_1 = arith.constant 0 : i32
    return %arg0, %c0_i32, %c0_i32_0 : i32, i32, i32
  }
  func.func @transform_2(%arg0: i32) -> (i32, i32, i32) {
    %c2_i32 = arith.constant 2 : i32
    %c0_i32 = arith.constant 0 : i32
    %0 = arith.cmpi eq, %c2_i32, %c0_i32 : i32
    %c1_i32 = arith.constant 1 : i32
    %1 = arith.select %0, %c1_i32, %c2_i32 : i32
    %2 = arith.remsi %arg0, %1 : i32
    %c0_i32_0 = arith.constant 0 : i32
    %3 = arith.cmpi ne, %2, %c0_i32_0 : i32
    %c0_i32_1 = arith.constant 0 : i32
    %4 = arith.cmpi slt, %2, %c0_i32_1 : i32
    %c0_i32_2 = arith.constant 0 : i32
    %5 = arith.cmpi slt, %1, %c0_i32_2 : i32
    %6 = arith.xori %4, %5 : i1
    %7 = arith.andi %6, %3 : i1
    %8 = arith.addi %2, %1 : i32
    %9 = arith.select %7, %8, %2 : i32
    %c0_i32_3 = arith.constant 0 : i32
    %c0_i32_4 = arith.constant 0 : i32
    %c0_i32_5 = arith.constant 0 : i32
    return %9, %c0_i32_3, %c0_i32_4 : i32, i32, i32
  }
  func.func @transform_3(%arg0: i32) -> (i32, i32, i32) {
    %c0_i32 = arith.constant 0 : i32
    %c0_i32_0 = arith.constant 0 : i32
    %c0_i32_1 = arith.constant 0 : i32
    return %arg0, %c0_i32, %c0_i32_0 : i32, i32, i32
  }
}

module attributes {stable_mosaic.version = 11 : i64} {
  func.func @_bn_relu_kernel(%arg0: i32, %arg1: memref<128x32xf32, #tpu.memory_space<vmem>>, %arg2: memref<1x32xf32, #tpu.memory_space<vmem>>, %arg3: memref<1x32xf32, #tpu.memory_space<vmem>>, %arg4: memref<128x32xf32, #tpu.memory_space<vmem>>) attributes {dimension_semantics = [#tpu.dimension_semantics<parallel>], iteration_bounds = array<i64: 1>, scalar_prefetch = 0 : i64, scratch_operands = 0 : i64, tpu.core_type = #tpu.core_type<tc>, window_params = [{transform_indices = @transform_0, window_bounds = array<i64: 128, 32>}, {pipeline_mode = #tpu.pipeline_mode<synchronous>, transform_indices = @transform_1, window_bounds = array<i64: 1, 32>}, {pipeline_mode = #tpu.pipeline_mode<synchronous>, transform_indices = @transform_2, window_bounds = array<i64: 1, 32>}, {transform_indices = @transform_3, window_bounds = array<i64: 128, 32>}]} {
    %c0 = arith.constant 0 : index
    %c0_0 = arith.constant 0 : index
    %0 = vector.load %arg1[%c0, %c0_0] : memref<128x32xf32, #tpu.memory_space<vmem>>, vector<128x32xf32>
    %c0_1 = arith.constant 0 : index
    %c0_2 = arith.constant 0 : index
    %1 = vector.load %arg2[%c0_1, %c0_2] : memref<1x32xf32, #tpu.memory_space<vmem>>, vector<1x32xf32>
    %2 = vector.broadcast %1 : vector<1x32xf32> to vector<128x32xf32>
    %3 = arith.mulf %0, %2 : vector<128x32xf32>
    %c0_3 = arith.constant 0 : index
    %c0_4 = arith.constant 0 : index
    %4 = vector.load %arg3[%c0_3, %c0_4] : memref<1x32xf32, #tpu.memory_space<vmem>>, vector<1x32xf32>
    %5 = vector.broadcast %4 : vector<1x32xf32> to vector<128x32xf32>
    %6 = arith.addf %3, %5 : vector<128x32xf32>
    %cst = arith.constant 0.000000e+00 : f32
    %7 = vector.broadcast %cst : f32 to vector<128x32xf32>
    %8 = arith.maximumf %6, %7 : vector<128x32xf32>
    %c0_5 = arith.constant 0 : index
    %c0_6 = arith.constant 0 : index
    %9 = vector.load %arg4[%c0_5, %c0_6] : memref<128x32xf32, #tpu.memory_space<vmem>>, vector<128x32xf32>
    tpu.vector_store %arg4[%c0_5, %c0_6], %8 {strides = array<i32>} : memref<128x32xf32, #tpu.memory_space<vmem>>, vector<128x32xf32>,
    return
  }
  func.func @transform_0(%arg0: i32) -> (i32, i32) {
    %c0_i32 = arith.constant 0 : i32
    %c0_i32_0 = arith.constant 0 : i32
    return %arg0, %c0_i32 : i32, i32
  }
  func.func @transform_1(%arg0: i32) -> (i32, i32) {
    %c0_i32 = arith.constant 0 : i32
    %c0_i32_0 = arith.constant 0 : i32
    %c0_i32_1 = arith.constant 0 : i32
    return %c0_i32, %c0_i32_0 : i32, i32
  }
  func.func @transform_2(%arg0: i32) -> (i32, i32) {
    %c0_i32 = arith.constant 0 : i32
    %c0_i32_0 = arith.constant 0 : i32
    %c0_i32_1 = arith.constant 0 : i32
    return %c0_i32, %c0_i32_0 : i32, i32
  }
  func.func @transform_3(%arg0: i32) -> (i32, i32) {
    %c0_i32 = arith.constant 0 : i32
    %c0_i32_0 = arith.constant 0 : i32
    return %arg0, %c0_i32 : i32, i32
  }
}

module attributes {stable_mosaic.version = 11 : i64} {
  func.func @_mm_kernel(%arg0: i32, %arg1: memref<32x32xbf16, #tpu.memory_space<vmem>>, %arg2: memref<32x64xbf16, #tpu.memory_space<vmem>>, %arg3: memref<32x64xf32, #tpu.memory_space<vmem>>) attributes {dimension_semantics = [#tpu.dimension_semantics<parallel>], iteration_bounds = array<i64: 1>, scalar_prefetch = 0 : i64, scratch_operands = 0 : i64, tpu.core_type = #tpu.core_type<tc>, window_params = [{transform_indices = @transform_0, window_bounds = array<i64: 32, 32>}, {pipeline_mode = #tpu.pipeline_mode<synchronous>, transform_indices = @transform_1, window_bounds = array<i64: 32, 64>}, {transform_indices = @transform_2, window_bounds = array<i64: 32, 64>}]} {
    %c0 = arith.constant 0 : index
    %c0_0 = arith.constant 0 : index
    %0 = vector.load %arg1[%c0, %c0_0] : memref<32x32xbf16, #tpu.memory_space<vmem>>, vector<32x32xbf16>
    %c0_1 = arith.constant 0 : index
    %c0_2 = arith.constant 0 : index
    %1 = vector.load %arg2[%c0_1, %c0_2] : memref<32x64xbf16, #tpu.memory_space<vmem>>, vector<32x64xbf16>
    %cst = arith.constant dense<0.000000e+00> : vector<32x64xf32>
    %2 = tpu.matmul %0, %1, %cst {dimension_numbers = #tpu.dot_dimension_numbers<[1], [0], [0], [1], [0, 0, 1, 1], [], []>} : vector<32x32xbf16>, vector<32x64xbf16>, vector<32x64xf32> -> vector<32x64xf32>
    %c0_3 = arith.constant 0 : index
    %c0_4 = arith.constant 0 : index
    %3 = vector.load %arg3[%c0_3, %c0_4] : memref<32x64xf32, #tpu.memory_space<vmem>>, vector<32x64xf32>
    tpu.vector_store %arg3[%c0_3, %c0_4], %2 {strides = array<i32>} : memref<32x64xf32, #tpu.memory_space<vmem>>, vector<32x64xf32>,
    return
  }
  func.func @transform_0(%arg0: i32) -> (i32, i32) {
    %c0_i32 = arith.constant 0 : i32
    %c0_i32_0 = arith.constant 0 : i32
    return %arg0, %c0_i32 : i32, i32
  }
  func.func @transform_1(%arg0: i32) -> (i32, i32) {
    %c0_i32 = arith.constant 0 : i32
    %c0_i32_0 = arith.constant 0 : i32
    %c0_i32_1 = arith.constant 0 : i32
    return %c0_i32, %c0_i32_0 : i32, i32
  }
  func.func @transform_2(%arg0: i32) -> (i32, i32) {
    %c0_i32 = arith.constant 0 : i32
    %c0_i32_0 = arith.constant 0 : i32
    return %arg0, %c0_i32 : i32, i32
  }
}

module attributes {stable_mosaic.version = 11 : i64} {
  func.func @_mm_kernel(%arg0: i32, %arg1: memref<32x288xbf16, #tpu.memory_space<vmem>>, %arg2: memref<288x64xbf16, #tpu.memory_space<vmem>>, %arg3: memref<1x64xf32, #tpu.memory_space<vmem>>, %arg4: memref<1x64xf32, #tpu.memory_space<vmem>>, %arg5: memref<32x64xf32, #tpu.memory_space<vmem>>) attributes {dimension_semantics = [#tpu.dimension_semantics<parallel>], iteration_bounds = array<i64: 1>, scalar_prefetch = 0 : i64, scratch_operands = 0 : i64, tpu.core_type = #tpu.core_type<tc>, window_params = [{transform_indices = @transform_0, window_bounds = array<i64: 32, 288>}, {pipeline_mode = #tpu.pipeline_mode<synchronous>, transform_indices = @transform_1, window_bounds = array<i64: 288, 64>}, {pipeline_mode = #tpu.pipeline_mode<synchronous>, transform_indices = @transform_2, window_bounds = array<i64: 1, 64>}, {pipeline_mode = #tpu.pipeline_mode<synchronous>, transform_indices = @transform_3, window_bounds = array<i64: 1, 64>}, {transform_indices = @transform_4, window_bounds = array<i64: 32, 64>}]} {
    %c0 = arith.constant 0 : index
    %c0_0 = arith.constant 0 : index
    %0 = vector.load %arg1[%c0, %c0_0] : memref<32x288xbf16, #tpu.memory_space<vmem>>, vector<32x288xbf16>
    %c0_1 = arith.constant 0 : index
    %c0_2 = arith.constant 0 : index
    %1 = vector.load %arg2[%c0_1, %c0_2] : memref<288x64xbf16, #tpu.memory_space<vmem>>, vector<288x64xbf16>
    %cst = arith.constant dense<0.000000e+00> : vector<32x64xf32>
    %2 = tpu.matmul %0, %1, %cst {dimension_numbers = #tpu.dot_dimension_numbers<[1], [0], [0], [1], [0, 0, 1, 1], [], []>} : vector<32x288xbf16>, vector<288x64xbf16>, vector<32x64xf32> -> vector<32x64xf32>
    %c0_3 = arith.constant 0 : index
    %c0_4 = arith.constant 0 : index
    %3 = vector.load %arg3[%c0_3, %c0_4] : memref<1x64xf32, #tpu.memory_space<vmem>>, vector<1x64xf32>
    %4 = vector.broadcast %3 : vector<1x64xf32> to vector<32x64xf32>
    %5 = arith.mulf %2, %4 : vector<32x64xf32>
    %c0_5 = arith.constant 0 : index
    %c0_6 = arith.constant 0 : index
    %6 = vector.load %arg4[%c0_5, %c0_6] : memref<1x64xf32, #tpu.memory_space<vmem>>, vector<1x64xf32>
    %7 = vector.broadcast %6 : vector<1x64xf32> to vector<32x64xf32>
    %8 = arith.addf %5, %7 : vector<32x64xf32>
    %cst_7 = arith.constant 0.000000e+00 : f32
    %9 = vector.broadcast %cst_7 : f32 to vector<32x64xf32>
    %10 = arith.maximumf %8, %9 : vector<32x64xf32>
    %c0_8 = arith.constant 0 : index
    %c0_9 = arith.constant 0 : index
    %11 = vector.load %arg5[%c0_8, %c0_9] : memref<32x64xf32, #tpu.memory_space<vmem>>, vector<32x64xf32>
    tpu.vector_store %arg5[%c0_8, %c0_9], %10 {strides = array<i32>} : memref<32x64xf32, #tpu.memory_space<vmem>>, vector<32x64xf32>,
    return
  }
  func.func @transform_0(%arg0: i32) -> (i32, i32) {
    %c0_i32 = arith.constant 0 : i32
    %c0_i32_0 = arith.constant 0 : i32
    return %arg0, %c0_i32 : i32, i32
  }
  func.func @transform_1(%arg0: i32) -> (i32, i32) {
    %c0_i32 = arith.constant 0 : i32
    %c0_i32_0 = arith.constant 0 : i32
    %c0_i32_1 = arith.constant 0 : i32
    return %c0_i32, %c0_i32_0 : i32, i32
  }
  func.func @transform_2(%arg0: i32) -> (i32, i32) {
    %c0_i32 = arith.constant 0 : i32
    %c0_i32_0 = arith.constant 0 : i32
    %c0_i32_1 = arith.constant 0 : i32
    return %c0_i32, %c0_i32_0 : i32, i32
  }
  func.func @transform_3(%arg0: i32) -> (i32, i32) {
    %c0_i32 = arith.constant 0 : i32
    %c0_i32_0 = arith.constant 0 : i32
    %c0_i32_1 = arith.constant 0 : i32
    return %c0_i32, %c0_i32_0 : i32, i32
  }
  func.func @transform_4(%arg0: i32) -> (i32, i32) {
    %c0_i32 = arith.constant 0 : i32
    %c0_i32_0 = arith.constant 0 : i32
    return %arg0, %c0_i32 : i32, i32
  }
}

module attributes {stable_mosaic.version = 11 : i64} {
  func.func @_mm_kernel(%arg0: i32, %arg1: memref<32x576xbf16, #tpu.memory_space<vmem>>, %arg2: memref<576x64xbf16, #tpu.memory_space<vmem>>, %arg3: memref<32x64xf32, #tpu.memory_space<vmem>>, %arg4: memref<32x64xf32, #tpu.memory_space<vmem>>) attributes {dimension_semantics = [#tpu.dimension_semantics<parallel>], iteration_bounds = array<i64: 1>, scalar_prefetch = 0 : i64, scratch_operands = 0 : i64, tpu.core_type = #tpu.core_type<tc>, window_params = [{transform_indices = @transform_0, window_bounds = array<i64: 32, 576>}, {pipeline_mode = #tpu.pipeline_mode<synchronous>, transform_indices = @transform_1, window_bounds = array<i64: 576, 64>}, {transform_indices = @transform_2, window_bounds = array<i64: 32, 64>}, {transform_indices = @transform_3, window_bounds = array<i64: 32, 64>}]} {
    %c0 = arith.constant 0 : index
    %c0_0 = arith.constant 0 : index
    %0 = vector.load %arg1[%c0, %c0_0] : memref<32x576xbf16, #tpu.memory_space<vmem>>, vector<32x576xbf16>
    %c0_1 = arith.constant 0 : index
    %c0_2 = arith.constant 0 : index
    %1 = vector.load %arg2[%c0_1, %c0_2] : memref<576x64xbf16, #tpu.memory_space<vmem>>, vector<576x64xbf16>
    %cst = arith.constant dense<0.000000e+00> : vector<32x64xf32>
    %2 = tpu.matmul %0, %1, %cst {dimension_numbers = #tpu.dot_dimension_numbers<[1], [0], [0], [1], [0, 0, 1, 1], [], []>} : vector<32x576xbf16>, vector<576x64xbf16>, vector<32x64xf32> -> vector<32x64xf32>
    %c0_3 = arith.constant 0 : index
    %c0_4 = arith.constant 0 : index
    %3 = vector.load %arg3[%c0_3, %c0_4] : memref<32x64xf32, #tpu.memory_space<vmem>>, vector<32x64xf32>
    %4 = arith.addf %2, %3 : vector<32x64xf32>
    %c0_5 = arith.constant 0 : index
    %c0_6 = arith.constant 0 : index
    %5 = vector.load %arg4[%c0_5, %c0_6] : memref<32x64xf32, #tpu.memory_space<vmem>>, vector<32x64xf32>
    tpu.vector_store %arg4[%c0_5, %c0_6], %4 {strides = array<i32>} : memref<32x64xf32, #tpu.memory_space<vmem>>, vector<32x64xf32>,
    return
  }
  func.func @transform_0(%arg0: i32) -> (i32, i32) {
    %c0_i32 = arith.constant 0 : i32
    %c0_i32_0 = arith.constant 0 : i32
    return %arg0, %c0_i32 : i32, i32
  }
  func.func @transform_1(%arg0: i32) -> (i32, i32) {
    %c0_i32 = arith.constant 0 : i32
    %c0_i32_0 = arith.constant 0 : i32
    %c0_i32_1 = arith.constant 0 : i32
    return %c0_i32, %c0_i32_0 : i32, i32
  }
  func.func @transform_2(%arg0: i32) -> (i32, i32) {
    %c0_i32 = arith.constant 0 : i32
    %c0_i32_0 = arith.constant 0 : i32
    return %arg0, %c0_i32 : i32, i32
  }
  func.func @transform_3(%arg0: i32) -> (i32, i32) {
    %c0_i32 = arith.constant 0 : i32
    %c0_i32_0 = arith.constant 0 : i32
    return %arg0, %c0_i32 : i32, i32
  }
}

module attributes {stable_mosaic.version = 11 : i64} {
  func.func @_bn_relu_mean_kernel(%arg0: i32, %arg1: memref<1x16x64xf32, #tpu.memory_space<vmem>>, %arg2: memref<1x64xf32, #tpu.memory_space<vmem>>, %arg3: memref<1x64xf32, #tpu.memory_space<vmem>>, %arg4: memref<1x1x64xf32, #tpu.memory_space<vmem>>) attributes {dimension_semantics = [#tpu.dimension_semantics<parallel>], iteration_bounds = array<i64: 2>, scalar_prefetch = 0 : i64, scratch_operands = 0 : i64, tpu.core_type = #tpu.core_type<tc>, window_params = [{transform_indices = @transform_0, window_bounds = array<i64: 1, 16, 64>}, {pipeline_mode = #tpu.pipeline_mode<synchronous>, transform_indices = @transform_1, window_bounds = array<i64: 1, 64>}, {pipeline_mode = #tpu.pipeline_mode<synchronous>, transform_indices = @transform_2, window_bounds = array<i64: 1, 64>}, {transform_indices = @transform_3, window_bounds = array<i64: 1, 1, 64>}]} {
    %c0 = arith.constant 0 : index
    %c0_0 = arith.constant 0 : index
    %c0_1 = arith.constant 0 : index
    %0 = vector.load %arg1[%c0, %c0_0, %c0_1] : memref<1x16x64xf32, #tpu.memory_space<vmem>>, vector<1x16x64xf32>
    %1 = vector.shape_cast %0 : vector<1x16x64xf32> to vector<16x64xf32>
    %c0_2 = arith.constant 0 : index
    %c0_3 = arith.constant 0 : index
    %2 = vector.load %arg2[%c0_2, %c0_3] : memref<1x64xf32, #tpu.memory_space<vmem>>, vector<1x64xf32>
    %3 = vector.broadcast %2 : vector<1x64xf32> to vector<16x64xf32>
    %4 = arith.mulf %1, %3 : vector<16x64xf32>
    %c0_4 = arith.constant 0 : index
    %c0_5 = arith.constant 0 : index
    %5 = vector.load %arg3[%c0_4, %c0_5] : memref<1x64xf32, #tpu.memory_space<vmem>>, vector<1x64xf32>
    %6 = vector.broadcast %5 : vector<1x64xf32> to vector<16x64xf32>
    %7 = arith.addf %4, %6 : vector<16x64xf32>
    %cst = arith.constant 0.000000e+00 : f32
    %8 = vector.broadcast %cst : f32 to vector<16x64xf32>
    %9 = arith.maximumf %7, %8 : vector<16x64xf32>
    %cst_6 = arith.constant dense<0.000000e+00> : vector<64xf32>
    %10 = vector.multi_reduction <add>, %9, %cst_6 [0] : vector<16x64xf32> to vector<64xf32>
    %11 = vector.shape_cast %10 : vector<64xf32> to vector<1x64xf32>
    %cst_7 = arith.constant 1.600000e+01 : f32
    %12 = vector.broadcast %cst_7 : f32 to vector<1x64xf32>
    %13 = arith.divf %11, %12 : vector<1x64xf32>
    %c0_8 = arith.constant 0 : index
    %c0_9 = arith.constant 0 : index
    %c0_10 = arith.constant 0 : index
    %14 = vector.load %arg4[%c0_8, %c0_9, %c0_10] : memref<1x1x64xf32, #tpu.memory_space<vmem>>, vector<1x1x64xf32>
    %15 = vector.shape_cast %14 : vector<1x1x64xf32> to vector<1x64xf32>
    %16 = vector.shape_cast %13 : vector<1x64xf32> to vector<1x1x64xf32>
    tpu.vector_store %arg4[%c0_8, %c0_9, %c0_10], %16 {strides = array<i32>} : memref<1x1x64xf32, #tpu.memory_space<vmem>>, vector<1x1x64xf32>,
    return
  }
  func.func @transform_0(%arg0: i32) -> (i32, i32, i32) {
    %c0_i32 = arith.constant 0 : i32
    %c0_i32_0 = arith.constant 0 : i32
    %c0_i32_1 = arith.constant 0 : i32
    return %arg0, %c0_i32, %c0_i32_0 : i32, i32, i32
  }
  func.func @transform_1(%arg0: i32) -> (i32, i32) {
    %c0_i32 = arith.constant 0 : i32
    %c0_i32_0 = arith.constant 0 : i32
    %c0_i32_1 = arith.constant 0 : i32
    return %c0_i32, %c0_i32_0 : i32, i32
  }
  func.func @transform_2(%arg0: i32) -> (i32, i32) {
    %c0_i32 = arith.constant 0 : i32
    %c0_i32_0 = arith.constant 0 : i32
    %c0_i32_1 = arith.constant 0 : i32
    return %c0_i32, %c0_i32_0 : i32, i32
  }
  func.func @transform_3(%arg0: i32) -> (i32, i32, i32) {
    %c0_i32 = arith.constant 0 : i32
    %c0_i32_0 = arith.constant 0 : i32
    %c0_i32_1 = arith.constant 0 : i32
    return %arg0, %c0_i32, %c0_i32_0 : i32, i32, i32
  }
}

</mosaic_0001>

<bundles_post_ra>
// kernel: _lambda_.14
= control target key start
LH: loop header
LB: loop body
LE: loop exit
PB: predicated region body
PF: predicated region fallthrough
CT: control target
= control target key end

     0   :  { %vm284_vm0 = vcmask 130048   ;;  %s961_s0 = inlined_call_operand.vmem [shape: f32[512,16], index: 0, kind: input, shape index: {}]   ;;  %s962_s1 = inlined_call_operand.vmem [shape: f32[1,16], index: 1, kind: input, shape index: {}]   ;;  %s963_s2 = inlined_call_operand.vmem [shape: f32[1,16], index: 2, kind: input, shape index: {}]   ;;  %s964_s3 = inlined_call_operand.vmem [shape: f32[512,16], index: 3, kind: output, shape index: {}]  }
   0x1   :  { %v14_v0 = vld [vmem:[%s961_s0] sm:$0xff]  ;;  %v15_v4 = vld [vmem:[%s961_s0 + $0x8] sm:$0xff]  ;;  %v16_v5 = vld [vmem:[%s961_s0 + $0x10] sm:$0xff] }
   0x2   :  { %v381_v1 = vld [vmem:[%s962_s1] ss:$0 sm:$0xff]  ;;  %v17_v6 = vld [vmem:[%s961_s0 + $0x18] sm:$0xff]  ;;  %v19_v11 = vld [vmem:[%s961_s0 + $0x28] sm:$0xff] }
   0x3   :  { %v386_v2 = vld [vmem:[%s963_s2] ss:$0 sm:$0xff]  ;;  %v85_v3 = vmul.f32 %v381_v1, %v14_v0  ;;  %v86_v7 = vmul.f32 %v381_v1, %v15_v4  ;;  %v87_v8 = vmul.f32 %v381_v1, %v16_v5  ;;  %v88_v9 = vmul.f32 %v381_v1, %v17_v6  ;;  %v20_v12 = vld [vmem:[%s961_s0 + $0x30] sm:$0xff]  ;;  %v21_v17 = vld [vmem:[%s961_s0 + $0x38] sm:$0xff] }
   0x4   :  { %v18_v10 = vld [vmem:[%s961_s0 + $0x20] sm:$0xff]  ;;  %v90_v15 = vmul.f32 %v381_v1, %v19_v11  ;;  %v91_v16 = vmul.f32 %v381_v1, %v20_v12  ;;  %v92_v21 = vmul.f32 %v381_v1, %v21_v17  ;;  %v23_v27 = vld [vmem:[%s961_s0 + $0x48] sm:$0xff]  ;;  %v24_v28 = vld [vmem:[%s961_s0 + $0x50] sm:$0xff] }
   0x5   :  { %v156_v13 = vadd.f32 %v386_v2, %v85_v3  ;;  %v89_v14 = vmul.f32 %v381_v1, %v18_v10  ;;  %v157_v18 = vadd.f32 %v386_v2, %v86_v7  ;;  %v158_v19 = vadd.f32 %v386_v2, %v87_v8  ;;  %v22_v22 = vld [vmem:[%s961_s0 + $0x40] sm:$0xff]  ;;  %v25_v29 = vld [vmem:[%s961_s0 + $0x58] sm:$0xff]  ;;  %v27_v35 = vld [vmem:[%s961_s0 + $0x68] sm:$0xff] }
   0x6   :  { %v159_v20 = vadd.f32 %v386_v2, %v88_v9  ;;  %v161_v25 = vadd.f32 %v386_v2, %v90_v15  ;;  %v162_v26 = vadd.f32 %v386_v2, %v91_v16  ;;  %v163_v33 = vadd.f32 %v386_v2, %v92_v21  ;;  %v26_v34 = vld [vmem:[%s961_s0 + $0x60] sm:$0xff]  ;;  %v28_v36 = vld [vmem:[%s961_s0 + $0x70] sm:$0xff]  ;;  %v29_v41 = vld [vmem:[%s961_s0 + $0x78] sm:$0xff] }
   0x7   :  { %v220_v23 = vmax.f32 %v156_v13, 0.0  ;;  %v160_v24 = vadd.f32 %v386_v2, %v89_v14  ;;  %v221_v30 = vmax.f32 %v157_v18, 0.0  ;;  %v222_v31 = vmax.f32 %v158_v19, 0.0  ;;  %v30_v54 = vld [vmem:[%s961_s0 + $0x80] sm:$0xff]  ;;  %v31_v59 = vld [vmem:[%s961_s0 + $0x88] sm:$0xff]  ;;  %v32_v60 = vld [vmem:[%s961_s0 + $0x90] sm:$0xff] }
   0x8   :  { %v223_v32 = vmax.f32 %v159_v20, 0.0  ;;  %v225_v38 = vmax.f32 %v161_v25, 0.0  ;;  %v226_v39 = vmax.f32 %v162_v26, 0.0  ;;  %v93_v40 = vmul.f32 %v381_v1, %v22_v22  ;;  %v33_v61 = vld [vmem:[%s961_s0 + $0x98] sm:$0xff]  ;;  %v34_v4 = vld [vmem:[%s961_s0 + $0xa0] sm:$0xff]  ;;  %v35_v5 = vld [vmem:[%s961_s0 + $0xa8] sm:$0xff] }
   0x9   :  { %285 = vst.msk [vmem:[%s964_s3] sm:$0xff] %vm284_vm0, %v220_v23  ;;  %v224_v37 = vmax.f32 %v160_v24, 0.0  ;;  %286 = vst.msk [vmem:[%s964_s3 + $0x8] sm:$0xff] %vm284_vm0, %v221_v30  ;;  %v227_v42 = vmax.f32 %v163_v33, 0.0  ;;  %v94_v43 = vmul.f32 %v381_v1, %v23_v27  ;;  %v95_v44 = vmul.f32 %v381_v1, %v24_v28  ;;  %v36_v6 = vld [vmem:[%s961_s0 + $0xb0] sm:$0xff]  ;;  %v37_v11 = vld [vmem:[%s961_s0 + $0xb8] sm:$0xff] }
   0xa   :  { %287 = vst.msk [vmem:[%s964_s3 + $0x10] sm:$0xff] %vm284_vm0, %v222_v31  ;;  %288 = vst.msk [vmem:[%s964_s3 + $0x18] sm:$0xff] %vm284_vm0, %v223_v32  ;;  %v96_v45 = vmul.f32 %v381_v1, %v25_v29  ;;  %v164_v46 = vadd.f32 %v386_v2, %v93_v40  ;;  %v97_v47 = vmul.f32 %v381_v1, %v26_v34  ;;  %v38_v24 = vld [vmem:[%s961_s0 + $0xc0] sm:$0xff]  ;;  %v39_v29 = vld [vmem:[%s961_s0 + $0xc8] sm:$0xff] }
   0xb   :  { %289 = vst.msk [vmem:[%s964_s3 + $0x20] sm:$0xff] %vm284_vm0, %v224_v37  ;;  %290 = vst.msk [vmem:[%s964_s3 + $0x28] sm:$0xff] %vm284_vm0, %v225_v38  ;;  %v98_v48 = vmul.f32 %v381_v1, %v27_v35  ;;  %v99_v49 = vmul.f32 %v381_v1, %v28_v36  ;;  %v165_v50 = vadd.f32 %v386_v2, %v94_v43  ;;  %v40_v30 = vld [vmem:[%s961_s0 + $0xd0] sm:$0xff]  ;;  %v41_v31 = vld [vmem:[%s961_s0 + $0xd8] sm:$0xff] }
   0xc   :  { %291 = vst.msk [vmem:[%s964_s3 + $0x30] sm:$0xff] %vm284_vm0, %v226_v39  ;;  %292 = vst.msk [vmem:[%s964_s3 + $0x38] sm:$0xff] %vm284_vm0, %v227_v42  ;;  %v166_v51 = vadd.f32 %v386_v2, %v95_v44  ;;  %v167_v52 = vadd.f32 %v386_v2, %v96_v45  ;;  %v100_v53 = vmul.f32 %v381_v1, %v29_v41  ;;  %v228_v55 = vmax.f32 %v164_v46, 0.0  ;;  %v42_v36 = vld [vmem:[%s961_s0 + $0xe0] sm:$0xff]  ;;  %v43_v37 = vld [vmem:[%s961_s0 + $0xe8] sm:$0xff] }
   0xd   :  { %v168_v56 = vadd.f32 %v386_v2, %v97_v47  ;;  %v169_v57 = vadd.f32 %v386_v2, %v98_v48  ;;  %v170_v58 = vadd.f32 %v386_v2, %v99_v49  ;;  %v229_v62 = vmax.f32 %v165_v50, 0.0  ;;  %v44_v38 = vld [vmem:[%s961_s0 + $0xf0] sm:$0xff]  ;;  %v45_v43 = vld [vmem:[%s961_s0 + $0xf8] sm:$0xff] }
   0xe   :  { %v230_v63 = vmax.f32 %v166_v51, 0.0  ;;  %v231_v0 = vmax.f32 %v167_v52, 0.0  ;;  %v171_v3 = vadd.f32 %v386_v2, %v100_v53  ;;  %293 = vst.msk [vmem:[%s964_s3 + $0x40] sm:$0xff] %vm284_vm0, %v228_v55  ;;  %v101_v10 = vmul.f32 %v381_v1, %v30_v54 }
   0xf   :  { %v232_v7 = vmax.f32 %v168_v56, 0.0  ;;  %v233_v8 = vmax.f32 %v169_v57, 0.0  ;;  %v234_v9 = vmax.f32 %v170_v58, 0.0  ;;  %294 = vst.msk [vmem:[%s964_s3 + $0x48] sm:$0xff] %vm284_vm0, %v229_v62  ;;  %v102_v13 = vmul.f32 %v381_v1, %v31_v59  ;;  %v46_v56 = vld [vmem:[%s961_s0 + $0x100] sm:$0xff]  ;;  %v48_v62 = vld [vmem:[%s961_s0 + $0x110] sm:$0xff] }
  0x10   :  { %295 = vst.msk [vmem:[%s964_s3 + $0x50] sm:$0xff] %vm284_vm0, %v230_v63  ;;  %296 = vst.msk [vmem:[%s964_s3 + $0x58] sm:$0xff] %vm284_vm0, %v231_v0  ;;  %v235_v12 = vmax.f32 %v171_v3, 0.0  ;;  %v103_v14 = vmul.f32 %v381_v1, %v32_v60  ;;  %v104_v15 = vmul.f32 %v381_v1, %v33_v61  ;;  %v172_v16 = vadd.f32 %v386_v2, %v101_v10  ;;  %v47_v61 = vld [vmem:[%s961_s0 + $0x108] sm:$0xff]  ;;  %v49_v63 = vld [vmem:[%s961_s0 + $0x118] sm:$0xff] }
  0x11   :  { %297 = vst.msk [vmem:[%s964_s3 + $0x60] sm:$0xff] %vm284_vm0, %v232_v7  ;;  %298 = vst.msk [vmem:[%s964_s3 + $0x68] sm:$0xff] %vm284_vm0, %v233_v8  ;;  %v105_v17 = vmul.f32 %v381_v1, %v34_v4  ;;  %v106_v18 = vmul.f32 %v381_v1, %v35_v5  ;;  %v107_v19 = vmul.f32 %v381_v1, %v36_v6  ;;  %v50_v6 = vld [vmem:[%s961_s0 + $0x120] sm:$0xff]  ;;  %v51_v7 = vld [vmem:[%s961_s0 + $0x128] sm:$0xff] }
  0x12   :  { %299 = vst.msk [vmem:[%s964_s3 + $0x70] sm:$0xff] %vm284_vm0, %v234_v9  ;;  %300 = vst.msk [vmem:[%s964_s3 + $0x78] sm:$0xff] %vm284_vm0, %v235_v12  ;;  %v173_v20 = vadd.f32 %v386_v2, %v102_v13  ;;  %v174_v21 = vadd.f32 %v386_v2, %v103_v14  ;;  %v175_v22 = vadd.f32 %v386_v2, %v104_v15  ;;  %v236_v25 = vmax.f32 %v172_v16, 0.0  ;;  %v52_v8 = vld [vmem:[%s961_s0 + $0x130] sm:$0xff]  ;;  %v53_v13 = vld [vmem:[%s961_s0 + $0x138] sm:$0xff] }
  0x13   :  { %v108_v23 = vmul.f32 %v381_v1, %v37_v11  ;;  %v176_v26 = vadd.f32 %v386_v2, %v105_v17  ;;  %v177_v27 = vadd.f32 %v386_v2, %v106_v18  ;;  %v178_v28 = vadd.f32 %v386_v2, %v107_v19 }
  0x14   :  { %v237_v32 = vmax.f32 %v173_v20, 0.0  ;;  %v238_v33 = vmax.f32 %v174_v21, 0.0  ;;  %v239_v34 = vmax.f32 %v175_v22, 0.0  ;;  %301 = vst.msk [vmem:[%s964_s3 + $0x80] sm:$0xff] %vm284_vm0, %v236_v25  ;;  %v109_v42 = vmul.f32 %v381_v1, %v38_v24 }
  0x15   :  { %v179_v35 = vadd.f32 %v386_v2, %v108_v23  ;;  %v240_v39 = vmax.f32 %v176_v26, 0.0  ;;  %v241_v40 = vmax.f32 %v177_v27, 0.0  ;;  %v242_v41 = vmax.f32 %v178_v28, 0.0  ;;  %v54_v26 = vld [vmem:[%s961_s0 + $0x140] sm:$0xff] }
  0x16   :  { %302 = vst.msk [vmem:[%s964_s3 + $0x88] sm:$0xff] %vm284_vm0, %v237_v32  ;;  %303 = vst.msk [vmem:[%s964_s3 + $0x90] sm:$0xff] %vm284_vm0, %v238_v33  ;;  %v110_v45 = vmul.f32 %v381_v1, %v39_v29  ;;  %v111_v46 = vmul.f32 %v381_v1, %v40_v30  ;;  %v112_v47 = vmul.f32 %v381_v1, %v41_v31  ;;  %v55_v31 = vld [vmem:[%s961_s0 + $0x148] sm:$0xff]  ;;  %v56_v32 = vld [vmem:[%s961_s0 + $0x150] sm:$0xff] }
  0x17   :  { %304 = vst.msk [vmem:[%s964_s3 + $0x98] sm:$0xff] %vm284_vm0, %v239_v34  ;;  %v243_v44 = vmax.f32 %v179_v35, 0.0  ;;  %305 = vst.msk [vmem:[%s964_s3 + $0xa0] sm:$0xff] %vm284_vm0, %v240_v39  ;;  %v180_v48 = vadd.f32 %v386_v2, %v109_v42  ;;  %v113_v49 = vmul.f32 %v381_v1, %v42_v36  ;;  %v114_v50 = vmul.f32 %v381_v1, %v43_v37  ;;  %v57_v33 = vld [vmem:[%s961_s0 + $0x158] sm:$0xff]  ;;  %v59_v39 = vld [vmem:[%s961_s0 + $0x168] sm:$0xff] }
  0x18   :  { %306 = vst.msk [vmem:[%s964_s3 + $0xa8] sm:$0xff] %vm284_vm0, %v241_v40  ;;  %307 = vst.msk [vmem:[%s964_s3 + $0xb0] sm:$0xff] %vm284_vm0, %v242_v41  ;;  %v115_v51 = vmul.f32 %v381_v1, %v44_v38  ;;  %v181_v52 = vadd.f32 %v386_v2, %v110_v45  ;;  %v182_v53 = vadd.f32 %v386_v2, %v111_v46  ;;  %v58_v38 = vld [vmem:[%s961_s0 + $0x160] sm:$0xff]  ;;  %v60_v40 = vld [vmem:[%s961_s0 + $0x170] sm:$0xff] }
  0x19   :  { %308 = vst.msk [vmem:[%s964_s3 + $0xb8] sm:$0xff] %vm284_vm0, %v243_v44  ;;  %v183_v54 = vadd.f32 %v386_v2, %v112_v47  ;;  %v116_v55 = vmul.f32 %v381_v1, %v45_v43  ;;  %v244_v57 = vmax.f32 %v180_v48, 0.0  ;;  %v184_v58 = vadd.f32 %v386_v2, %v113_v49  ;;  %v61_v45 = vld [vmem:[%s961_s0 + $0x178] sm:$0xff] }
  0x1a   :  { %v185_v59 = vadd.f32 %v386_v2, %v114_v50  ;;  %v186_v60 = vadd.f32 %v386_v2, %v115_v51  ;;  %v245_v0 = vmax.f32 %v181_v52, 0.0  ;;  %v246_v3 = vmax.f32 %v182_v53, 0.0 }
  0x1b   :  { %v247_v4 = vmax.f32 %v183_v54, 0.0  ;;  %v187_v5 = vadd.f32 %v386_v2, %v116_v55  ;;  %309 = vst.msk [vmem:[%s964_s3 + $0xc0] sm:$0xff] %vm284_vm0, %v244_v57  ;;  %v248_v9 = vmax.f32 %v184_v58, 0.0  ;;  %v117_v12 = vmul.f32 %v381_v1, %v46_v56  ;;  %v62_v58 = vld [vmem:[%s961_s0 + $0x180] sm:$0xff] }
  0x1c   :  { %v249_v10 = vmax.f32 %v185_v59, 0.0  ;;  %v250_v11 = vmax.f32 %v186_v60, 0.0  ;;  %310 = vst.msk [vmem:[%s964_s3 + $0xc8] sm:$0xff] %vm284_vm0, %v245_v0  ;;  %311 = vst.msk [vmem:[%s964_s3 + $0xd0] sm:$0xff] %vm284_vm0, %v246_v3  ;;  %v118_v15 = vmul.f32 %v381_v1, %v47_v61  ;;  %v119_v16 = vmul.f32 %v381_v1, %v48_v62  ;;  %v64_v0 = vld [vmem:[%s961_s0 + $0x190] sm:$0xff]  ;;  %v65_v3 = vld [vmem:[%s961_s0 + $0x198] sm:$0xff] }
  0x1d   :  { %312 = vst.msk [vmem:[%s964_s3 + $0xd8] sm:$0xff] %vm284_vm0, %v247_v4  ;;  %v251_v14 = vmax.f32 %v187_v5, 0.0  ;;  %v120_v17 = vmul.f32 %v381_v1, %v49_v63  ;;  %313 = vst.msk [vmem:[%s964_s3 + $0xe0] sm:$0xff] %vm284_vm0, %v248_v9  ;;  %v188_v18 = vadd.f32 %v386_v2, %v117_v12  ;;  %v121_v19 = vmul.f32 %v381_v1, %v50_v6  ;;  %v63_v63 = vld [vmem:[%s961_s0 + $0x188] sm:$0xff] }
  0x1e   :  { %314 = vst.msk [vmem:[%s964_s3 + $0xe8] sm:$0xff] %vm284_vm0, %v249_v10  ;;  %315 = vst.msk [vmem:[%s964_s3 + $0xf0] sm:$0xff] %vm284_vm0, %v250_v11  ;;  %v122_v20 = vmul.f32 %v381_v1, %v51_v7  ;;  %v123_v21 = vmul.f32 %v381_v1, %v52_v8  ;;  %v189_v22 = vadd.f32 %v386_v2, %v118_v15  ;;  %v66_v8 = vld [vmem:[%s961_s0 + $0x1a0] sm:$0xff]  ;;  %v67_v9 = vld [vmem:[%s961_s0 + $0x1a8] sm:$0xff] }
  0x1f   :  { %316 = vst.msk [vmem:[%s964_s3 + $0xf8] sm:$0xff] %vm284_vm0, %v251_v14  ;;  %v190_v23 = vadd.f32 %v386_v2, %v119_v16  ;;  %v191_v24 = vadd.f32 %v386_v2, %v120_v17  ;;  %v124_v25 = vmul.f32 %v381_v1, %v53_v13  ;;  %v252_v27 = vmax.f32 %v188_v18, 0.0  ;;  %v68_v10 = vld [vmem:[%s961_s0 + $0x1b0] sm:$0xff]  ;;  %v69_v15 = vld [vmem:[%s961_s0 + $0x1b8] sm:$0xff] }
  0x20   :  { %v192_v28 = vadd.f32 %v386_v2, %v121_v19  ;;  %v193_v29 = vadd.f32 %v386_v2, %v122_v20  ;;  %v194_v30 = vadd.f32 %v386_v2, %v123_v21  ;;  %v253_v34 = vmax.f32 %v189_v22, 0.0 }
  0x21   :  { %v254_v35 = vmax.f32 %v190_v23, 0.0  ;;  %v255_v36 = vmax.f32 %v191_v24, 0.0  ;;  %v195_v37 = vadd.f32 %v386_v2, %v124_v25  ;;  %317 = vst.msk [vmem:[%s964_s3 + $0x100] sm:$0xff] %vm284_vm0, %v252_v27  ;;  %v125_v44 = vmul.f32 %v381_v1, %v54_v26 }
  0x22   :  { %v256_v41 = vmax.f32 %v192_v28, 0.0  ;;  %v257_v42 = vmax.f32 %v193_v29, 0.0  ;;  %v258_v43 = vmax.f32 %v194_v30, 0.0  ;;  %318 = vst.msk [vmem:[%s964_s3 + $0x108] sm:$0xff] %vm284_vm0, %v253_v34  ;;  %v126_v47 = vmul.f32 %v381_v1, %v55_v31  ;;  %v70_v28 = vld [vmem:[%s961_s0 + $0x1c0] sm:$0xff]  ;;  %v72_v34 = vld [vmem:[%s961_s0 + $0x1d0] sm:$0xff] }
  0x23   :  { %319 = vst.msk [vmem:[%s964_s3 + $0x110] sm:$0xff] %vm284_vm0, %v254_v35  ;;  %320 = vst.msk [vmem:[%s964_s3 + $0x118] sm:$0xff] %vm284_vm0, %v255_v36  ;;  %v259_v46 = vmax.f32 %v195_v37, 0.0  ;;  %v127_v48 = vmul.f32 %v381_v1, %v56_v32  ;;  %v128_v49 = vmul.f32 %v381_v1, %v57_v33  ;;  %v196_v50 = vadd.f32 %v386_v2, %v125_v44  ;;  %v71_v33 = vld [vmem:[%s961_s0 + $0x1c8] sm:$0xff]  ;;  %v73_v35 = vld [vmem:[%s961_s0 + $0x1d8] sm:$0xff] }
  0x24   :  { %321 = vst.msk [vmem:[%s964_s3 + $0x120] sm:$0xff] %vm284_vm0, %v256_v41  ;;  %322 = vst.msk [vmem:[%s964_s3 + $0x128] sm:$0xff] %vm284_vm0, %v257_v42  ;;  %v129_v51 = vmul.f32 %v381_v1, %v58_v38  ;;  %v130_v52 = vmul.f32 %v381_v1, %v59_v39  ;;  %v131_v53 = vmul.f32 %v381_v1, %v60_v40  ;;  %v74_v40 = vld [vmem:[%s961_s0 + $0x1e0] sm:$0xff]  ;;  %v75_v41 = vld [vmem:[%s961_s0 + $0x1e8] sm:$0xff] }
  0x25   :  { %323 = vst.msk [vmem:[%s964_s3 + $0x130] sm:$0xff] %vm284_vm0, %v258_v43  ;;  %324 = vst.msk [vmem:[%s964_s3 + $0x138] sm:$0xff] %vm284_vm0, %v259_v46  ;;  %v197_v54 = vadd.f32 %v386_v2, %v126_v47  ;;  %v198_v55 = vadd.f32 %v386_v2, %v127_v48  ;;  %v199_v56 = vadd.f32 %v386_v2, %v128_v49  ;;  %v260_v59 = vmax.f32 %v196_v50, 0.0  ;;  %v76_v42 = vld [vmem:[%s961_s0 + $0x1f0] sm:$0xff]  ;;  %v77_v47 = vld [vmem:[%s961_s0 + $0x1f8] sm:$0xff] }
  0x26   :  { %v132_v57 = vmul.f32 %v381_v1, %v61_v45  ;;  %v200_v60 = vadd.f32 %v386_v2, %v129_v51  ;;  %v201_v61 = vadd.f32 %v386_v2, %v130_v52  ;;  %v202_v62 = vadd.f32 %v386_v2, %v131_v53 }
  0x27   :  { %v261_v4 = vmax.f32 %v197_v54, 0.0  ;;  %v262_v5 = vmax.f32 %v198_v55, 0.0  ;;  %v263_v6 = vmax.f32 %v199_v56, 0.0  ;;  %325 = vst.msk [vmem:[%s964_s3 + $0x140] sm:$0xff] %vm284_vm0, %v260_v59  ;;  %v133_v14 = vmul.f32 %v381_v1, %v62_v58 }
  0x28   :  { %v203_v7 = vadd.f32 %v386_v2, %v132_v57  ;;  %v264_v11 = vmax.f32 %v200_v60, 0.0  ;;  %v265_v12 = vmax.f32 %v201_v61, 0.0  ;;  %v266_v13 = vmax.f32 %v202_v62, 0.0 }
  0x29   :  { %326 = vst.msk [vmem:[%s964_s3 + $0x148] sm:$0xff] %vm284_vm0, %v261_v4  ;;  %327 = vst.msk [vmem:[%s964_s3 + $0x150] sm:$0xff] %vm284_vm0, %v262_v5  ;;  %v134_v17 = vmul.f32 %v381_v1, %v63_v63  ;;  %v135_v18 = vmul.f32 %v381_v1, %v64_v0  ;;  %v136_v19 = vmul.f32 %v381_v1, %v65_v3 }
  0x2a   :  { %328 = vst.msk [vmem:[%s964_s3 + $0x158] sm:$0xff] %vm284_vm0, %v263_v6  ;;  %v267_v16 = vmax.f32 %v203_v7, 0.0  ;;  %329 = vst.msk [vmem:[%s964_s3 + $0x160] sm:$0xff] %vm284_vm0, %v264_v11  ;;  %v204_v20 = vadd.f32 %v386_v2, %v133_v14  ;;  %v137_v21 = vmul.f32 %v381_v1, %v66_v8  ;;  %v138_v22 = vmul.f32 %v381_v1, %v67_v9 }
  0x2b   :  { %330 = vst.msk [vmem:[%s964_s3 + $0x168] sm:$0xff] %vm284_vm0, %v265_v12  ;;  %331 = vst.msk [vmem:[%s964_s3 + $0x170] sm:$0xff] %vm284_vm0, %v266_v13  ;;  %v139_v23 = vmul.f32 %v381_v1, %v68_v10  ;;  %v205_v24 = vadd.f32 %v386_v2, %v134_v17  ;;  %v206_v25 = vadd.f32 %v386_v2, %v135_v18 }
  0x2c   :  { %332 = vst.msk [vmem:[%s964_s3 + $0x178] sm:$0xff] %vm284_vm0, %v267_v16  ;;  %v207_v26 = vadd.f32 %v386_v2, %v136_v19  ;;  %v140_v27 = vmul.f32 %v381_v1, %v69_v15  ;;  %v268_v29 = vmax.f32 %v204_v20, 0.0  ;;  %v208_v30 = vadd.f32 %v386_v2, %v137_v21 }
  0x2d   :  { %v209_v31 = vadd.f32 %v386_v2, %v138_v22  ;;  %v210_v32 = vadd.f32 %v386_v2, %v139_v23  ;;  %v269_v36 = vmax.f32 %v205_v24, 0.0  ;;  %v270_v37 = vmax.f32 %v206_v25, 0.0 }
  0x2e   :  { %v271_v38 = vmax.f32 %v207_v26, 0.0  ;;  %v211_v39 = vadd.f32 %v386_v2, %v140_v27  ;;  %333 = vst.msk [vmem:[%s964_s3 + $0x180] sm:$0xff] %vm284_vm0, %v268_v29  ;;  %v272_v43 = vmax.f32 %v208_v30, 0.0  ;;  %v141_v46 = vmul.f32 %v381_v1, %v70_v28 }
  0x2f   :  { %v273_v44 = vmax.f32 %v209_v31, 0.0  ;;  %v274_v45 = vmax.f32 %v210_v32, 0.0  ;;  %334 = vst.msk [vmem:[%s964_s3 + $0x188] sm:$0xff] %vm284_vm0, %v269_v36  ;;  %335 = vst.msk [vmem:[%s964_s3 + $0x190] sm:$0xff] %vm284_vm0, %v270_v37  ;;  %v142_v49 = vmul.f32 %v381_v1, %v71_v33  ;;  %v143_v50 = vmul.f32 %v381_v1, %v72_v34 }
  0x30   :  { %336 = vst.msk [vmem:[%s964_s3 + $0x198] sm:$0xff] %vm284_vm0, %v271_v38  ;;  %v275_v48 = vmax.f32 %v211_v39, 0.0  ;;  %v144_v51 = vmul.f32 %v381_v1, %v73_v35  ;;  %337 = vst.msk [vmem:[%s964_s3 + $0x1a0] sm:$0xff] %vm284_vm0, %v272_v43  ;;  %v212_v52 = vadd.f32 %v386_v2, %v141_v46  ;;  %v145_v53 = vmul.f32 %v381_v1, %v74_v40 }
  0x31   :  { %338 = vst.msk [vmem:[%s964_s3 + $0x1a8] sm:$0xff] %vm284_vm0, %v273_v44  ;;  %339 = vst.msk [vmem:[%s964_s3 + $0x1b0] sm:$0xff] %vm284_vm0, %v274_v45  ;;  %v146_v54 = vmul.f32 %v381_v1, %v75_v41  ;;  %v147_v55 = vmul.f32 %v381_v1, %v76_v42  ;;  %v213_v56 = vadd.f32 %v386_v2, %v142_v49 }
  0x32   :  { %340 = vst.msk [vmem:[%s964_s3 + $0x1b8] sm:$0xff] %vm284_vm0, %v275_v48  ;;  %v214_v57 = vadd.f32 %v386_v2, %v143_v50  ;;  %v215_v58 = vadd.f32 %v386_v2, %v144_v51  ;;  %v148_v59 = vmul.f32 %v381_v1, %v77_v47  ;;  %v276_v60 = vmax.f32 %v212_v52, 0.0 }
  0x33   :  { %v216_v61 = vadd.f32 %v386_v2, %v145_v53  ;;  %v217_v62 = vadd.f32 %v386_v2, %v146_v54  ;;  %v218_v63 = vadd.f32 %v386_v2, %v147_v55  ;;  %v277_v0 = vmax.f32 %v213_v56, 0.0 }
  0x34   :  { %v278_v3 = vmax.f32 %v214_v57, 0.0  ;;  %v279_v4 = vmax.f32 %v215_v58, 0.0  ;;  %v219_v5 = vadd.f32 %v386_v2, %v148_v59  ;;  %341 = vst.msk [vmem:[%s964_s3 + $0x1c0] sm:$0xff] %vm284_vm0, %v276_v60 }
  0x35   :  { %v280_v6 = vmax.f32 %v216_v61, 0.0  ;;  %v281_v7 = vmax.f32 %v217_v62, 0.0  ;;  %v282_v1 = vmax.f32 %v218_v63, 0.0  ;;  %342 = vst.msk [vmem:[%s964_s3 + $0x1c8] sm:$0xff] %vm284_vm0, %v277_v0 }
  0x36   :  { %343 = vst.msk [vmem:[%s964_s3 + $0x1d0] sm:$0xff] %vm284_vm0, %v278_v3  ;;  %344 = vst.msk [vmem:[%s964_s3 + $0x1d8] sm:$0xff] %vm284_vm0, %v279_v4  ;;  %v283_v2 = vmax.f32 %v219_v5, 0.0 }
  0x37   :  { %345 = vst.msk [vmem:[%s964_s3 + $0x1e0] sm:$0xff] %vm284_vm0, %v280_v6  ;;  %346 = vst.msk [vmem:[%s964_s3 + $0x1e8] sm:$0xff] %vm284_vm0, %v281_v7 }
  0x38   :  { %347 = vst.msk [vmem:[%s964_s3 + $0x1f0] sm:$0xff] %vm284_vm0, %v282_v1  ;;  %348 = vst.msk [vmem:[%s964_s3 + $0x1f8] sm:$0xff] %vm284_vm0, %v283_v2 }

// kernel: _lambda_.13
= control target key start
LH: loop header
LB: loop body
LE: loop exit
PB: predicated region body
PF: predicated region fallthrough
CT: control target
= control target key end

     0   :  { %vm348_vm0 = vcmask 1044480   ;;  %vm349_vm1 = vcmask 1045504   ;;  %vm251_vm2 = vcmask 220160   ;;  %v920_v1 = vmov 65535   ;;  %s1326_s1 = inlined_call_operand.vmem [shape: bf16[27,16], index: 1, kind: input, shape index: {}]   ;;  %s1327_s0 = inlined_call_operand.vmem [shape: bf16[512,27], index: 0, kind: input, shape index: {}]   ;;  %s1328_s2 = inlined_call_operand.vmem [shape: f32[512,16], index: 2, kind: output, shape index: {}]  }
   0x1   :  { %v886_v0 = vld [vmem:[%s1326_s1] sm:$0xff]   ;;  %v350_v2 = vsel %vm348_vm0, 4294967295, %v920_v1  ;;  %v887_v3 = vld [vmem:[%s1326_s1 + $0x8] sm:$0x3f]   ;;  %v892_v10 = vld [vmem:[%s1327_s0 + $0x10] sm:$0xff]   ;;  %vm644_vm3 = vcmask 130048  }
   0x2   :  { %813 = vmatprep.subr.bf16.mxu0 %v886_v0  ;;  %881 = vmatprep.subr.bf16.mxu1 %v886_v0  ;;  %v351_v4 = vsel %vm349_vm1, %v350_v2, 0  ;;  %v888_v5 = vld [vmem:[%s1327_s0] sm:$0xff]   ;;  %v890_v8 = vld [vmem:[%s1327_s0 + $0x8] sm:$0xff]   ;;  %v893_v11 = vld [vmem:[%s1327_s0 + $0x90] sm:$0xff]  }
   0x3   :  { %814 = vmatpush3.bf16.msra.mxu0 %v886_v0  ;;  %883 = vmatpush3.bf16.msra.mxu1 %v886_v0  ;;  %v353_v6 = vand.u32 %v887_v3, %v351_v4  ;;  %v889_v7 = vld [vmem:[%s1327_s0 + $0x80] sm:$0xff]   ;;  %v891_v9 = vld [vmem:[%s1327_s0 + $0x88] sm:$0xff]   ;;  %v894_v12 = vld [vmem:[%s1327_s0 + $0x18] sm:$0xff]  }
   0x4   :  { %817 = vmatprep.mubr.msk.bf16.mxu0 %vm251_vm2, %v888_v5  ;;  %849 = vmatprep.mubr.msk.bf16.mxu1 %vm251_vm2, %v889_v7  ;;  %v895_v13 = vld [vmem:[%s1327_s0 + $0x98] sm:$0xff]   ;;  %v896_v14 = vld [vmem:[%s1327_s0 + $0x20] sm:$0xff]   ;;  %v898_v16 = vld [vmem:[%s1327_s0 + $0x28] sm:$0xff]  }
   0x5   :  { %815 = vmatprep.subr.bf16.mxu0 %v353_v6  ;;  %882 = vmatprep.subr.bf16.mxu1 %v353_v6  ;;  %v897_v15 = vld [vmem:[%s1327_s0 + $0xa0] sm:$0xff]   ;;  %v899_v17 = vld [vmem:[%s1327_s0 + $0xa8] sm:$0xff]   ;;  %v900_v18 = vld [vmem:[%s1327_s0 + $0x30] sm:$0xff]  }
   0x6   :  { %v901_v19 = vld [vmem:[%s1327_s0 + $0xb0] sm:$0xff]   ;;  %v902_v20 = vld [vmem:[%s1327_s0 + $0x38] sm:$0xff]   ;;  %v904_v22 = vld [vmem:[%s1327_s0 + $0x40] sm:$0xff]  }
   0x7   :  { %816 = vmatpush3.bf16.msra.mxu0 %v353_v6  ;;  %884 = vmatpush3.bf16.msra.mxu1 %v353_v6  ;;  %v903_v21 = vld [vmem:[%s1327_s0 + $0xb8] sm:$0xff]   ;;  %v905_v23 = vld [vmem:[%s1327_s0 + $0xc0] sm:$0xff]   ;;  %v906_v24 = vld [vmem:[%s1327_s0 + $0x48] sm:$0xff]  }
   0x8   :  { %v907_v25 = vld [vmem:[%s1327_s0 + $0xc8] sm:$0xff]   ;;  %v908_v26 = vld [vmem:[%s1327_s0 + $0x50] sm:$0xff]   ;;  %v910_v28 = vld [vmem:[%s1327_s0 + $0x58] sm:$0xff]  }
   0x9   :  { %v909_v27 = vld [vmem:[%s1327_s0 + $0xd0] sm:$0xff]   ;;  %v911_v29 = vld [vmem:[%s1327_s0 + $0xd8] sm:$0xff]   ;;  %v912_v30 = vld [vmem:[%s1327_s0 + $0x60] sm:$0xff]  }
   0xa   :  { %818 = vmatmul.mubr.msk.bf16.vlgmr.msra.gmra.mrb[0].mxu0 %vm251_vm2, %v890_v8  ;;  %850 = vmatmul.mubr.msk.bf16.vlgmr.msra.gmra.mrb[0].mxu1 %vm251_vm2, %v891_v9  ;;  %v913_v31 = vld [vmem:[%s1327_s0 + $0xe0] sm:$0xff]   ;;  %v914_v32 = vld [vmem:[%s1327_s0 + $0x68] sm:$0xff]   ;;  %v916_v34 = vld [vmem:[%s1327_s0 + $0x70] sm:$0xff]  }
   0xb   :  { %821 = vmatprep.mubr.msk.bf16.mxu0 %vm251_vm2, %v892_v10  ;;  %853 = vmatprep.mubr.msk.bf16.mxu1 %vm251_vm2, %v893_v11  ;;  %v915_v33 = vld [vmem:[%s1327_s0 + $0xe8] sm:$0xff]   ;;  %v917_v35 = vld [vmem:[%s1327_s0 + $0xf0] sm:$0xff]   ;;  %v918_v36 = vld [vmem:[%s1327_s0 + $0x78] sm:$0xff]  }
   0xc   :  { %v919_v37 = vld [vmem:[%s1327_s0 + $0xf8] sm:$0xff]  }
  0x12   :  { %822 = vmatmul.mubr.msk.bf16.gmra.mrb[4].mxu0 %vm251_vm2, %v894_v12  ;;  %854 = vmatmul.mubr.msk.bf16.gmra.mrb[4].mxu1 %vm251_vm2, %v895_v13 }
  0x13   :  { %825 = vmatprep.mubr.msk.bf16.mxu0 %vm251_vm2, %v896_v14  ;;  %857 = vmatprep.mubr.msk.bf16.mxu1 %vm251_vm2, %v897_v15 }
  0x1a   :  { %826 = vmatmul.mubr.msk.bf16.gmra.mrb[8].mxu0 %vm251_vm2, %v898_v16  ;;  %858 = vmatmul.mubr.msk.bf16.gmra.mrb[8].mxu1 %vm251_vm2, %v899_v17 }
  0x1b   :  { %829 = vmatprep.mubr.msk.bf16.mxu0 %vm251_vm2, %v900_v18  ;;  %861 = vmatprep.mubr.msk.bf16.mxu1 %vm251_vm2, %v901_v19 }
  0x22   :  { %830 = vmatmul.mubr.msk.bf16.gmra.mrb[12].mxu0 %vm251_vm2, %v902_v20  ;;  %862 = vmatmul.mubr.msk.bf16.gmra.mrb[12].mxu1 %vm251_vm2, %v903_v21 }
  0x23   :  { %833 = vmatprep.mubr.msk.bf16.mxu0 %vm251_vm2, %v904_v22  ;;  %865 = vmatprep.mubr.msk.bf16.mxu1 %vm251_vm2, %v905_v23 }
  0x2a   :  { %834 = vmatmul.mubr.msk.bf16.gmra.mrb[16].mxu0 %vm251_vm2, %v906_v24  ;;  %866 = vmatmul.mubr.msk.bf16.gmra.mrb[16].mxu1 %vm251_vm2, %v907_v25 }
  0x2b   :  { %837 = vmatprep.mubr.msk.bf16.mxu0 %vm251_vm2, %v908_v26  ;;  %869 = vmatprep.mubr.msk.bf16.mxu1 %vm251_vm2, %v909_v27 }
  0x32   :  { %838 = vmatmul.mubr.msk.bf16.gmra.mrb[20].mxu0 %vm251_vm2, %v910_v28  ;;  %870 = vmatmul.mubr.msk.bf16.gmra.mrb[20].mxu1 %vm251_vm2, %v911_v29 }
  0x33   :  { %841 = vmatprep.mubr.msk.bf16.mxu0 %vm251_vm2, %v912_v30  ;;  %873 = vmatprep.mubr.msk.bf16.mxu1 %vm251_vm2, %v913_v31 }
  0x3a   :  { %842 = vmatmul.mubr.msk.bf16.gmra.mrb[24].mxu0 %vm251_vm2, %v914_v32  ;;  %874 = vmatmul.mubr.msk.bf16.gmra.mrb[24].mxu1 %vm251_vm2, %v915_v33 }
  0x3b   :  { %845 = vmatprep.mubr.msk.bf16.mxu0 %vm251_vm2, %v916_v34  ;;  %877 = vmatprep.mubr.msk.bf16.mxu1 %vm251_vm2, %v917_v35 }
  0x42   :  { %846 = vmatmul.mubr.msk.bf16.gmra.mrb[28].mxu0 %vm251_vm2, %v918_v36  ;;  %878 = vmatmul.mubr.msk.bf16.gmra.mrb[28].mxu1 %vm251_vm2, %v919_v37 }
  0xdd   :  { %v819_v38 = vpop.f32.mrb[0].mxu0  ;;  %v851_v39 = vpop.f32.mrb[0].mxu1 }
  0xde   :  { %647 = vst.msk [vmem:[%s1328_s2 + $0x10] sm:$0xff] %vm644_vm3, %v819_v38  ;;  %679 = vst.msk [vmem:[%s1328_s2 + $0x110] sm:$0xff] %vm644_vm3, %v851_v39  ;;  %v389_v40 = vpop.f32.mrb[1].mxu0  ;;  %v517_v41 = vpop.f32.mrb[1].mxu1 }
  0xdf   :  { %645 = vst.msk [vmem:[%s1328_s2] sm:$0xff] %vm644_vm3, %v389_v40  ;;  %677 = vst.msk [vmem:[%s1328_s2 + $0x100] sm:$0xff] %vm644_vm3, %v517_v41  ;;  %v820_v42 = vpop.f32.mrb[2].mxu0  ;;  %v852_v43 = vpop.f32.mrb[2].mxu1 }
  0xe0   :  { %648 = vst.msk [vmem:[%s1328_s2 + $0x18] sm:$0xff] %vm644_vm3, %v820_v42  ;;  %680 = vst.msk [vmem:[%s1328_s2 + $0x118] sm:$0xff] %vm644_vm3, %v852_v43  ;;  %v392_v44 = vpop.f32.mrb[3].mxu0  ;;  %v520_v45 = vpop.f32.mrb[3].mxu1 }
  0xe1   :  { %646 = vst.msk [vmem:[%s1328_s2 + $0x8] sm:$0xff] %vm644_vm3, %v392_v44  ;;  %678 = vst.msk [vmem:[%s1328_s2 + $0x108] sm:$0xff] %vm644_vm3, %v520_v45 }
  0xe5   :  { %v823_v46 = vpop.f32.mrb[4].mxu0  ;;  %v855_v47 = vpop.f32.mrb[4].mxu1 }
  0xe6   :  { %651 = vst.msk [vmem:[%s1328_s2 + $0x30] sm:$0xff] %vm644_vm3, %v823_v46  ;;  %683 = vst.msk [vmem:[%s1328_s2 + $0x130] sm:$0xff] %vm644_vm3, %v855_v47  ;;  %v405_v48 = vpop.f32.mrb[5].mxu0  ;;  %v533_v49 = vpop.f32.mrb[5].mxu1 }
  0xe7   :  { %649 = vst.msk [vmem:[%s1328_s2 + $0x20] sm:$0xff] %vm644_vm3, %v405_v48  ;;  %681 = vst.msk [vmem:[%s1328_s2 + $0x120] sm:$0xff] %vm644_vm3, %v533_v49  ;;  %v824_v50 = vpop.f32.mrb[6].mxu0  ;;  %v856_v51 = vpop.f32.mrb[6].mxu1 }
  0xe8   :  { %652 = vst.msk [vmem:[%s1328_s2 + $0x38] sm:$0xff] %vm644_vm3, %v824_v50  ;;  %684 = vst.msk [vmem:[%s1328_s2 + $0x138] sm:$0xff] %vm644_vm3, %v856_v51  ;;  %v408_v52 = vpop.f32.mrb[7].mxu0  ;;  %v536_v53 = vpop.f32.mrb[7].mxu1 }
  0xe9   :  { %650 = vst.msk [vmem:[%s1328_s2 + $0x28] sm:$0xff] %vm644_vm3, %v408_v52  ;;  %682 = vst.msk [vmem:[%s1328_s2 + $0x128] sm:$0xff] %vm644_vm3, %v536_v53 }
  0xed   :  { %v827_v54 = vpop.f32.mrb[8].mxu0  ;;  %v859_v55 = vpop.f32.mrb[8].mxu1 }
  0xee   :  { %655 = vst.msk [vmem:[%s1328_s2 + $0x50] sm:$0xff] %vm644_vm3, %v827_v54  ;;  %687 = vst.msk [vmem:[%s1328_s2 + $0x150] sm:$0xff] %vm644_vm3, %v859_v55  ;;  %v421_v56 = vpop.f32.mrb[9].mxu0  ;;  %v549_v57 = vpop.f32.mrb[9].mxu1 }
  0xef   :  { %653 = vst.msk [vmem:[%s1328_s2 + $0x40] sm:$0xff] %vm644_vm3, %v421_v56  ;;  %685 = vst.msk [vmem:[%s1328_s2 + $0x140] sm:$0xff] %vm644_vm3, %v549_v57  ;;  %v828_v58 = vpop.f32.mrb[10].mxu0  ;;  %v860_v59 = vpop.f32.mrb[10].mxu1 }
  0xf0   :  { %656 = vst.msk [vmem:[%s1328_s2 + $0x58] sm:$0xff] %vm644_vm3, %v828_v58  ;;  %688 = vst.msk [vmem:[%s1328_s2 + $0x158] sm:$0xff] %vm644_vm3, %v860_v59  ;;  %v424_v60 = vpop.f32.mrb[11].mxu0  ;;  %v552_v61 = vpop.f32.mrb[11].mxu1 }
  0xf1   :  { %654 = vst.msk [vmem:[%s1328_s2 + $0x48] sm:$0xff] %vm644_vm3, %v424_v60  ;;  %686 = vst.msk [vmem:[%s1328_s2 + $0x148] sm:$0xff] %vm644_vm3, %v552_v61 }
  0xf5   :  { %v831_v62 = vpop.f32.mrb[12].mxu0  ;;  %v863_v63 = vpop.f32.mrb[12].mxu1 }
  0xf6   :  { %659 = vst.msk [vmem:[%s1328_s2 + $0x70] sm:$0xff] %vm644_vm3, %v831_v62  ;;  %691 = vst.msk [vmem:[%s1328_s2 + $0x170] sm:$0xff] %vm644_vm3, %v863_v63  ;;  %v437_v0 = vpop.f32.mrb[13].mxu0  ;;  %v565_v1 = vpop.f32.mrb[13].mxu1 }
  0xf7   :  { %657 = vst.msk [vmem:[%s1328_s2 + $0x60] sm:$0xff] %vm644_vm3, %v437_v0  ;;  %689 = vst.msk [vmem:[%s1328_s2 + $0x160] sm:$0xff] %vm644_vm3, %v565_v1  ;;  %v832_v2 = vpop.f32.mrb[14].mxu0  ;;  %v864_v3 = vpop.f32.mrb[14].mxu1 }
  0xf8   :  { %660 = vst.msk [vmem:[%s1328_s2 + $0x78] sm:$0xff] %vm644_vm3, %v832_v2  ;;  %692 = vst.msk [vmem:[%s1328_s2 + $0x178] sm:$0xff] %vm644_vm3, %v864_v3  ;;  %v440_v4 = vpop.f32.mrb[15].mxu0  ;;  %v568_v5 = vpop.f32.mrb[15].mxu1 }
  0xf9   :  { %658 = vst.msk [vmem:[%s1328_s2 + $0x68] sm:$0xff] %vm644_vm3, %v440_v4  ;;  %690 = vst.msk [vmem:[%s1328_s2 + $0x168] sm:$0xff] %vm644_vm3, %v568_v5 }
  0xfd   :  { %v835_v6 = vpop.f32.mrb[16].mxu0  ;;  %v867_v7 = vpop.f32.mrb[16].mxu1 }
  0xfe   :  { %663 = vst.msk [vmem:[%s1328_s2 + $0x90] sm:$0xff] %vm644_vm3, %v835_v6  ;;  %695 = vst.msk [vmem:[%s1328_s2 + $0x190] sm:$0xff] %vm644_vm3, %v867_v7  ;;  %v453_v8 = vpop.f32.mrb[17].mxu0  ;;  %v581_v9 = vpop.f32.mrb[17].mxu1 }
  0xff   :  { %661 = vst.msk [vmem:[%s1328_s2 + $0x80] sm:$0xff] %vm644_vm3, %v453_v8  ;;  %693 = vst.msk [vmem:[%s1328_s2 + $0x180] sm:$0xff] %vm644_vm3, %v581_v9  ;;  %v836_v10 = vpop.f32.mrb[18].mxu0  ;;  %v868_v11 = vpop.f32.mrb[18].mxu1 }
 0x100   :  { %664 = vst.msk [vmem:[%s1328_s2 + $0x98] sm:$0xff] %vm644_vm3, %v836_v10  ;;  %696 = vst.msk [vmem:[%s1328_s2 + $0x198] sm:$0xff] %vm644_vm3, %v868_v11  ;;  %v456_v12 = vpop.f32.mrb[19].mxu0  ;;  %v584_v13 = vpop.f32.mrb[19].mxu1 }
 0x101   :  { %662 = vst.msk [vmem:[%s1328_s2 + $0x88] sm:$0xff] %vm644_vm3, %v456_v12  ;;  %694 = vst.msk [vmem:[%s1328_s2 + $0x188] sm:$0xff] %vm644_vm3, %v584_v13 }
 0x105   :  { %v839_v14 = vpop.f32.mrb[20].mxu0  ;;  %v871_v15 = vpop.f32.mrb[20].mxu1 }
 0x106   :  { %667 = vst.msk [vmem:[%s1328_s2 + $0xb0] sm:$0xff] %vm644_vm3, %v839_v14  ;;  %699 = vst.msk [vmem:[%s1328_s2 + $0x1b0] sm:$0xff] %vm644_vm3, %v871_v15  ;;  %v469_v16 = vpop.f32.mrb[21].mxu0  ;;  %v597_v17 = vpop.f32.mrb[21].mxu1 }
 0x107   :  { %665 = vst.msk [vmem:[%s1328_s2 + $0xa0] sm:$0xff] %vm644_vm3, %v469_v16  ;;  %697 = vst.msk [vmem:[%s1328_s2 + $0x1a0] sm:$0xff] %vm644_vm3, %v597_v17  ;;  %v840_v18 = vpop.f32.mrb[22].mxu0  ;;  %v872_v19 = vpop.f32.mrb[22].mxu1 }
 0x108   :  { %668 = vst.msk [vmem:[%s1328_s2 + $0xb8] sm:$0xff] %vm644_vm3, %v840_v18  ;;  %700 = vst.msk [vmem:[%s1328_s2 + $0x1b8] sm:$0xff] %vm644_vm3, %v872_v19  ;;  %v472_v20 = vpop.f32.mrb[23].mxu0  ;;  %v600_v21 = vpop.f32.mrb[23].mxu1 }
 0x109   :  { %666 = vst.msk [vmem:[%s1328_s2 + $0xa8] sm:$0xff] %vm644_vm3, %v472_v20  ;;  %698 = vst.msk [vmem:[%s1328_s2 + $0x1a8] sm:$0xff] %vm644_vm3, %v600_v21 }
 0x10d   :  { %v843_v22 = vpop.f32.mrb[24].mxu0  ;;  %v875_v23 = vpop.f32.mrb[24].mxu1 }
 0x10e   :  { %671 = vst.msk [vmem:[%s1328_s2 + $0xd0] sm:$0xff] %vm644_vm3, %v843_v22  ;;  %703 = vst.msk [vmem:[%s1328_s2 + $0x1d0] sm:$0xff] %vm644_vm3, %v875_v23  ;;  %v485_v24 = vpop.f32.mrb[25].mxu0  ;;  %v613_v25 = vpop.f32.mrb[25].mxu1 }
 0x10f   :  { %669 = vst.msk [vmem:[%s1328_s2 + $0xc0] sm:$0xff] %vm644_vm3, %v485_v24  ;;  %701 = vst.msk [vmem:[%s1328_s2 + $0x1c0] sm:$0xff] %vm644_vm3, %v613_v25  ;;  %v844_v26 = vpop.f32.mrb[26].mxu0  ;;  %v876_v27 = vpop.f32.mrb[26].mxu1 }
 0x110   :  { %672 = vst.msk [vmem:[%s1328_s2 + $0xd8] sm:$0xff] %vm644_vm3, %v844_v26  ;;  %704 = vst.msk [vmem:[%s1328_s2 + $0x1d8] sm:$0xff] %vm644_vm3, %v876_v27  ;;  %v488_v28 = vpop.f32.mrb[27].mxu0  ;;  %v616_v29 = vpop.f32.mrb[27].mxu1 }
 0x111   :  { %670 = vst.msk [vmem:[%s1328_s2 + $0xc8] sm:$0xff] %vm644_vm3, %v488_v28  ;;  %702 = vst.msk [vmem:[%s1328_s2 + $0x1c8] sm:$0xff] %vm644_vm3, %v616_v29 }
 0x115   :  { %v847_v30 = vpop.f32.mrb[28].mxu0  ;;  %v879_v31 = vpop.f32.mrb[28].mxu1 }
 0x116   :  { %675 = vst.msk [vmem:[%s1328_s2 + $0xf0] sm:$0xff] %vm644_vm3, %v847_v30  ;;  %707 = vst.msk [vmem:[%s1328_s2 + $0x1f0] sm:$0xff] %vm644_vm3, %v879_v31  ;;  %v501_v32 = vpop.f32.mrb[29].mxu0  ;;  %v629_v33 = vpop.f32.mrb[29].mxu1 }
 0x117   :  { %673 = vst.msk [vmem:[%s1328_s2 + $0xe0] sm:$0xff] %vm644_vm3, %v501_v32  ;;  %705 = vst.msk [vmem:[%s1328_s2 + $0x1e0] sm:$0xff] %vm644_vm3, %v629_v33  ;;  %v848_v34 = vpop.f32.mrb[30].mxu0  ;;  %v880_v35 = vpop.f32.mrb[30].mxu1 }
 0x118   :  { %676 = vst.msk [vmem:[%s1328_s2 + $0xf8] sm:$0xff] %vm644_vm3, %v848_v34  ;;  %708 = vst.msk [vmem:[%s1328_s2 + $0x1f8] sm:$0xff] %vm644_vm3, %v880_v35  ;;  %v504_v36 = vpop.f32.mrb[31].mxu0  ;;  %v632_v37 = vpop.f32.mrb[31].mxu1 }
 0x119   :  { %674 = vst.msk [vmem:[%s1328_s2 + $0xe8] sm:$0xff] %vm644_vm3, %v504_v36  ;;  %706 = vst.msk [vmem:[%s1328_s2 + $0x1e8] sm:$0xff] %vm644_vm3, %v632_v37 }

// kernel: _lambda_.16
= control target key start
LH: loop header
LB: loop body
LE: loop exit
PB: predicated region body
PF: predicated region fallthrough
CT: control target
= control target key end

     0   :  { %v1186_v0 = vmov 0   ;;  %vm503_vm0 = vcmask 130048   ;;  %s1906_s1 = inlined_call_operand.vmem [shape: bf16[144,16], index: 1, kind: input, shape index: {}]   ;;  %s1907_s0 = inlined_call_operand.vmem [shape: bf16[512,144], index: 0, kind: input, shape index: {}]   ;;  %s1908_s2 = inlined_call_operand.vmem [shape: f32[512,16], index: 2, kind: input, shape index: {}]   ;;  %s1909_s3 = inlined_call_operand.vmem [shape: f32[512,16], index: 3, kind: output, shape index: {}]  }
   0x1   :  { %600 = vmatprep.subr.bf16.mxu0 %v1186_v0  ;;  %1062 = vmatprep.subr.bf16.mxu1 %v1186_v0  ;;  %v1081_v1 = vld [vmem:[%s1906_s1] sm:$0xff]   ;;  %v1082_v2 = vld [vmem:[%s1906_s1 + $0x8] sm:$0xff]   ;;  %v1083_v3 = vld [vmem:[%s1906_s1 + $0x10] sm:$0xff]  }
   0x2   :  { %601 = vmatpush1.bf16.msra.mxu0 %v1081_v1  ;;  %1071 = vmatpush1.bf16.msra.mxu1 %v1081_v1  ;;  %v1084_v4 = vld [vmem:[%s1906_s1 + $0x18] sm:$0xff]   ;;  %v1092_v5 = vld [vmem:[%s1907_s0 + $0x4] ss:$8 sps:$4 sm:$0xff]   ;;  %v1087_v9 = vld [vmem:[%s1906_s1 + $0x30] sm:$0xff]  }
   0x3   :  { %602 = vmatprep.subr.bf16.mxu0 %v1186_v0  ;;  %1063 = vmatprep.subr.bf16.mxu1 %v1186_v0  ;;  %v1095_v6 = vld [vmem:[%s1907_s0 + $0x104] ss:$8 sps:$4 sm:$0xff]   ;;  %v1088_v10 = vld [vmem:[%s1906_s1 + $0x38] sm:$0xff]   ;;  %v1090_v12 = vld [vmem:[%s1907_s0] ss:$8 sps:$4 sm:$0xff]  }
   0x4   :  { %1030 = vmatprep.mubr.msk.bf16.mxu0 %vm503_vm0, %v1092_v5  ;;  %1046 = vmatprep.mubr.msk.bf16.mxu1 %vm503_vm0, %v1095_v6  ;;  %v1085_v7 = vld [vmem:[%s1906_s1 + $0x20] sm:$0xff]   ;;  %v1086_v8 = vld [vmem:[%s1906_s1 + $0x28] sm:$0xff]   ;;  %v1096_v14 = vld [vmem:[%s1907_s0 + $0x14] ss:$8 sps:$4 sm:$0xff]  }
   0x5   :  { %v1089_v11 = vld [vmem:[%s1906_s1 + $0x40] sm:$0xff]   ;;  %v1098_v15 = vld [vmem:[%s1907_s0 + $0x114] ss:$8 sps:$4 sm:$0xff]   ;;  %v1100_v16 = vld [vmem:[%s1907_s0 + $0x10] ss:$8 sps:$4 sm:$0xff]  }
   0x6   :  { %603 = vmatpush1.bf16.msra.mxu0 %v1082_v2  ;;  %1072 = vmatpush1.bf16.msra.mxu1 %v1082_v2  ;;  %v1093_v13 = vld [vmem:[%s1907_s0 + $0x100] ss:$8 sps:$4 sm:$0xff]   ;;  %v1101_v17 = vld [vmem:[%s1907_s0 + $0x110] ss:$8 sps:$4 sm:$0xff]   ;;  %v1102_v18 = vld [vmem:[%s1907_s0 + $0x24] ss:$8 sps:$4 sm:$0xff]  }
   0x7   :  { %604 = vmatprep.subr.bf16.mxu0 %v1186_v0  ;;  %1064 = vmatprep.subr.bf16.mxu1 %v1186_v0  ;;  %v1104_v19 = vld [vmem:[%s1907_s0 + $0x124] ss:$8 sps:$4 sm:$0xff]   ;;  %v1106_v20 = vld [vmem:[%s1907_s0 + $0x20] ss:$8 sps:$4 sm:$0xff]   ;;  %v1108_v22 = vld [vmem:[%s1907_s0 + $0x34] ss:$8 sps:$4 sm:$0xff]  }
   0x8   :  { %v1107_v21 = vld [vmem:[%s1907_s0 + $0x120] ss:$8 sps:$4 sm:$0xff]   ;;  %v1110_v23 = vld [vmem:[%s1907_s0 + $0x134] ss:$8 sps:$4 sm:$0xff]   ;;  %v1112_v24 = vld [vmem:[%s1907_s0 + $0x30] ss:$8 sps:$4 sm:$0xff]  }
   0x9   :  { %v1113_v25 = vld [vmem:[%s1907_s0 + $0x130] ss:$8 sps:$4 sm:$0xff]   ;;  %v1114_v26 = vld [vmem:[%s1907_s0 + $0x44] ss:$8 sps:$4 sm:$0xff]   ;;  %v1118_v28 = vld [vmem:[%s1907_s0 + $0x40] ss:$8 sps:$4 sm:$0xff]  }
   0xa   :  { %605 = vmatpush1.bf16.msra.mxu0 %v1083_v3  ;;  %1073 = vmatpush1.bf16.msra.mxu1 %v1083_v3  ;;  %v1116_v27 = vld [vmem:[%s1907_s0 + $0x144] ss:$8 sps:$4 sm:$0xff]   ;;  %v1119_v29 = vld [vmem:[%s1907_s0 + $0x140] ss:$8 sps:$4 sm:$0xff]   ;;  %v1120_v30 = vld [vmem:[%s1907_s0 + $0x54] ss:$8 sps:$4 sm:$0xff]  }
   0xb   :  { %606 = vmatprep.subr.bf16.mxu0 %v1186_v0  ;;  %1065 = vmatprep.subr.bf16.mxu1 %v1186_v0  ;;  %v1122_v31 = vld [vmem:[%s1907_s0 + $0x154] ss:$8 sps:$4 sm:$0xff]   ;;  %v1124_v32 = vld [vmem:[%s1907_s0 + $0x50] ss:$8 sps:$4 sm:$0xff]   ;;  %v1126_v34 = vld [vmem:[%s1907_s0 + $0x64] ss:$8 sps:$4 sm:$0xff]  }
   0xc   :  { %v1125_v33 = vld [vmem:[%s1907_s0 + $0x150] ss:$8 sps:$4 sm:$0xff]   ;;  %v1128_v35 = vld [vmem:[%s1907_s0 + $0x164] ss:$8 sps:$4 sm:$0xff]   ;;  %v1130_v36 = vld [vmem:[%s1907_s0 + $0x60] ss:$8 sps:$4 sm:$0xff]  }
   0xd   :  { %v1131_v37 = vld [vmem:[%s1907_s0 + $0x160] ss:$8 sps:$4 sm:$0xff]   ;;  %v1132_v38 = vld [vmem:[%s1907_s0 + $0x74] ss:$8 sps:$4 sm:$0xff]   ;;  %v1136_v40 = vld [vmem:[%s1907_s0 + $0x70] ss:$8 sps:$4 sm:$0xff]  }
   0xe   :  { %607 = vmatpush1.bf16.msra.mxu0 %v1084_v4  ;;  %1074 = vmatpush1.bf16.msra.mxu1 %v1084_v4  ;;  %v1134_v39 = vld [vmem:[%s1907_s0 + $0x174] ss:$8 sps:$4 sm:$0xff]   ;;  %v1137_v41 = vld [vmem:[%s1907_s0 + $0x170] ss:$8 sps:$4 sm:$0xff]   ;;  %v1138_v42 = vld [vmem:[%s1907_s0 + $0x84] ss:$8 sps:$4 sm:$0xff]  }
   0xf   :  { %608 = vmatprep.subr.bf16.mxu0 %v1186_v0  ;;  %1066 = vmatprep.subr.bf16.mxu1 %v1186_v0  ;;  %v1140_v43 = vld [vmem:[%s1907_s0 + $0x184] ss:$8 sps:$4 sm:$0xff]   ;;  %v1142_v44 = vld [vmem:[%s1907_s0 + $0x80] ss:$8 sps:$4 sm:$0xff]   ;;  %v1144_v46 = vld [vmem:[%s1907_s0 + $0x94] ss:$8 sps:$4 sm:$0xff]  }
  0x10   :  { %v1143_v45 = vld [vmem:[%s1907_s0 + $0x180] ss:$8 sps:$4 sm:$0xff]   ;;  %v1146_v47 = vld [vmem:[%s1907_s0 + $0x194] ss:$8 sps:$4 sm:$0xff]   ;;  %v1148_v48 = vld [vmem:[%s1907_s0 + $0x90] ss:$8 sps:$4 sm:$0xff]  }
  0x11   :  { %v1149_v49 = vld [vmem:[%s1907_s0 + $0x190] ss:$8 sps:$4 sm:$0xff]   ;;  %v1150_v50 = vld [vmem:[%s1907_s0 + $0xa4] ss:$8 sps:$4 sm:$0xff]   ;;  %v1154_v52 = vld [vmem:[%s1907_s0 + $0xa0] ss:$8 sps:$4 sm:$0xff]  }
  0x12   :  { %609 = vmatpush1.bf16.msra.mxu0 %v1085_v7  ;;  %1075 = vmatpush1.bf16.msra.mxu1 %v1085_v7  ;;  %v1152_v51 = vld [vmem:[%s1907_s0 + $0x1a4] ss:$8 sps:$4 sm:$0xff]   ;;  %v1155_v53 = vld [vmem:[%s1907_s0 + $0x1a0] ss:$8 sps:$4 sm:$0xff]   ;;  %v1156_v54 = vld [vmem:[%s1907_s0 + $0xb4] ss:$8 sps:$4 sm:$0xff]  }
  0x13   :  { %610 = vmatprep.subr.bf16.mxu0 %v1186_v0  ;;  %1067 = vmatprep.subr.bf16.mxu1 %v1186_v0  ;;  %v1158_v55 = vld [vmem:[%s1907_s0 + $0x1b4] ss:$8 sps:$4 sm:$0xff]   ;;  %v1160_v56 = vld [vmem:[%s1907_s0 + $0xb0] ss:$8 sps:$4 sm:$0xff]   ;;  %v1162_v58 = vld [vmem:[%s1907_s0 + $0xc4] ss:$8 sps:$4 sm:$0xff]  }
  0x14   :  { %v1161_v57 = vld [vmem:[%s1907_s0 + $0x1b0] ss:$8 sps:$4 sm:$0xff]   ;;  %v1164_v59 = vld [vmem:[%s1907_s0 + $0x1c4] ss:$8 sps:$4 sm:$0xff]   ;;  %v1166_v60 = vld [vmem:[%s1907_s0 + $0xc0] ss:$8 sps:$4 sm:$0xff]  }
  0x15   :  { %v1167_v61 = vld [vmem:[%s1907_s0 + $0x1c0] ss:$8 sps:$4 sm:$0xff]   ;;  %v1168_v62 = vld [vmem:[%s1907_s0 + $0xd4] ss:$8 sps:$4 sm:$0xff]   ;;  %v1173_v1 = vld [vmem:[%s1907_s0 + $0x1d0] ss:$8 sps:$4 sm:$0xff]  }
  0x16   :  { %611 = vmatpush1.bf16.msra.mxu0 %v1086_v8  ;;  %1076 = vmatpush1.bf16.msra.mxu1 %v1086_v8  ;;  %v1170_v63 = vld [vmem:[%s1907_s0 + $0x1d4] ss:$8 sps:$4 sm:$0xff]   ;;  %v1174_v2 = vld [vmem:[%s1907_s0 + $0xe4] ss:$8 sps:$4 sm:$0xff]   ;;  %v1178_v4 = vld [vmem:[%s1907_s0 + $0xe0] ss:$8 sps:$4 sm:$0xff]  }
  0x17   :  { %612 = vmatprep.subr.bf16.mxu0 %v1186_v0  ;;  %1068 = vmatprep.subr.bf16.mxu1 %v1186_v0  ;;  %v1176_v3 = vld [vmem:[%s1907_s0 + $0x1e4] ss:$8 sps:$4 sm:$0xff]   ;;  %v1179_v5 = vld [vmem:[%s1907_s0 + $0x1e0] ss:$8 sps:$4 sm:$0xff]   ;;  %v1180_v6 = vld [vmem:[%s1907_s0 + $0xf4] ss:$8 sps:$4 sm:$0xff]  }
  0x18   :  { %v1182_v7 = vld [vmem:[%s1907_s0 + $0x1f4] ss:$8 sps:$4 sm:$0xff]   ;;  %v1184_v8 = vld [vmem:[%s1907_s0 + $0xf0] ss:$8 sps:$4 sm:$0xff]  }
  0x1a   :  { %613 = vmatpush1.bf16.msra.mxu0 %v1087_v9  ;;  %1077 = vmatpush1.bf16.msra.mxu1 %v1087_v9  ;;  %v1185_v9 = vld [vmem:[%s1907_s0 + $0x1f0] ss:$8 sps:$4 sm:$0xff]  }
  0x1b   :  { %614 = vmatprep.subr.bf16.mxu0 %v1186_v0  ;;  %1069 = vmatprep.subr.bf16.mxu1 %v1186_v0 }
  0x1e   :  { %615 = vmatpush1.bf16.msra.mxu0 %v1088_v10  ;;  %1078 = vmatpush1.bf16.msra.mxu1 %v1088_v10  ;;  %v97_v10 = vld [vmem:[%s1908_s2] sm:$0xff] }
  0x1f   :  { %616 = vmatprep.subr.bf16.mxu0 %v1186_v0  ;;  %1070 = vmatprep.subr.bf16.mxu1 %v1186_v0  ;;  %v1172_v0 = vld [vmem:[%s1907_s0 + $0xd0] ss:$8 sps:$4 sm:$0xff]  }
  0x22   :  { %617 = vmatpush1.bf16.msra.mxu0 %v1089_v11  ;;  %1079 = vmatpush1.bf16.msra.mxu1 %v1089_v11  ;;  %v129_v11 = vld [vmem:[%s1908_s2 + $0x100] sm:$0xff] }
  0x25   :  { %633 = vmatmul.mubr.bf16.vlgmr.msra.gmra.mrb[0].mxu0 %v1090_v12  ;;  %761 = vmatmul.mubr.bf16.vlgmr.msra.gmra.mrb[0].mxu1 %v1093_v13 }
  0x26   :  { %1031 = vmatprep.mubr.msk.bf16.mxu0 %vm503_vm0, %v1096_v14  ;;  %1047 = vmatprep.mubr.msk.bf16.mxu1 %vm503_vm0, %v1098_v15  ;;  %v98_v14 = vld [vmem:[%s1908_s2 + $0x8] sm:$0xff] }
  0x27   :  { %v130_v15 = vld [vmem:[%s1908_s2 + $0x108] sm:$0xff] }
  0x2d   :  { %641 = vmatmul.mubr.bf16.gmra.mrb[4].mxu0 %v1100_v16  ;;  %769 = vmatmul.mubr.bf16.gmra.mrb[4].mxu1 %v1101_v17 }
  0x2e   :  { %1032 = vmatprep.mubr.msk.bf16.mxu0 %vm503_vm0, %v1102_v18  ;;  %1048 = vmatprep.mubr.msk.bf16.mxu1 %vm503_vm0, %v1104_v19 }
  0x35   :  { %649 = vmatmul.mubr.bf16.gmra.mrb[8].mxu0 %v1106_v20  ;;  %777 = vmatmul.mubr.bf16.gmra.mrb[8].mxu1 %v1107_v21 }
  0x36   :  { %1033 = vmatprep.mubr.msk.bf16.mxu0 %vm503_vm0, %v1108_v22  ;;  %1049 = vmatprep.mubr.msk.bf16.mxu1 %vm503_vm0, %v1110_v23 }
  0x3d   :  { %657 = vmatmul.mubr.bf16.gmra.mrb[12].mxu0 %v1112_v24  ;;  %785 = vmatmul.mubr.bf16.gmra.mrb[12].mxu1 %v1113_v25 }
  0x3e   :  { %1034 = vmatprep.mubr.msk.bf16.mxu0 %vm503_vm0, %v1114_v26  ;;  %1050 = vmatprep.mubr.msk.bf16.mxu1 %vm503_vm0, %v1116_v27  ;;  %v99_v26 = vld [vmem:[%s1908_s2 + $0x10] sm:$0xff] }
  0x3f   :  { %v131_v27 = vld [vmem:[%s1908_s2 + $0x110] sm:$0xff] }
  0x45   :  { %665 = vmatmul.mubr.bf16.gmra.mrb[16].mxu0 %v1118_v28  ;;  %793 = vmatmul.mubr.bf16.gmra.mrb[16].mxu1 %v1119_v29 }
  0x46   :  { %1035 = vmatprep.mubr.msk.bf16.mxu0 %vm503_vm0, %v1120_v30  ;;  %1051 = vmatprep.mubr.msk.bf16.mxu1 %vm503_vm0, %v1122_v31  ;;  %v100_v30 = vld [vmem:[%s1908_s2 + $0x18] sm:$0xff] }
  0x47   :  { %v132_v31 = vld [vmem:[%s1908_s2 + $0x118] sm:$0xff] }
  0x4d   :  { %673 = vmatmul.mubr.bf16.gmra.mrb[20].mxu0 %v1124_v32  ;;  %801 = vmatmul.mubr.bf16.gmra.mrb[20].mxu1 %v1125_v33 }
  0x4e   :  { %1036 = vmatprep.mubr.msk.bf16.mxu0 %vm503_vm0, %v1126_v34  ;;  %1052 = vmatprep.mubr.msk.bf16.mxu1 %vm503_vm0, %v1128_v35 }
  0x55   :  { %681 = vmatmul.mubr.bf16.gmra.mrb[24].mxu0 %v1130_v36  ;;  %809 = vmatmul.mubr.bf16.gmra.mrb[24].mxu1 %v1131_v37 }
  0x56   :  { %1037 = vmatprep.mubr.msk.bf16.mxu0 %vm503_vm0, %v1132_v38  ;;  %1053 = vmatprep.mubr.msk.bf16.mxu1 %vm503_vm0, %v1134_v39 }
  0x5d   :  { %689 = vmatmul.mubr.bf16.gmra.mrb[28].mxu0 %v1136_v40  ;;  %817 = vmatmul.mubr.bf16.gmra.mrb[28].mxu1 %v1137_v41 }
  0x5e   :  { %1038 = vmatprep.mubr.msk.bf16.mxu0 %vm503_vm0, %v1138_v42  ;;  %1054 = vmatprep.mubr.msk.bf16.mxu1 %vm503_vm0, %v1140_v43  ;;  %v101_v42 = vld [vmem:[%s1908_s2 + $0x20] sm:$0xff] }
  0x5f   :  { %v133_v43 = vld [vmem:[%s1908_s2 + $0x120] sm:$0xff] }
  0x65   :  { %697 = vmatmul.mubr.bf16.gmra.mrb[32].mxu0 %v1142_v44  ;;  %825 = vmatmul.mubr.bf16.gmra.mrb[32].mxu1 %v1143_v45 }
  0x66   :  { %1039 = vmatprep.mubr.msk.bf16.mxu0 %vm503_vm0, %v1144_v46  ;;  %1055 = vmatprep.mubr.msk.bf16.mxu1 %vm503_vm0, %v1146_v47  ;;  %v102_v46 = vld [vmem:[%s1908_s2 + $0x28] sm:$0xff] }
  0x67   :  { %v134_v47 = vld [vmem:[%s1908_s2 + $0x128] sm:$0xff] }
  0x6d   :  { %705 = vmatmul.mubr.bf16.gmra.mrb[36].mxu0 %v1148_v48  ;;  %833 = vmatmul.mubr.bf16.gmra.mrb[36].mxu1 %v1149_v49 }
  0x6e   :  { %1040 = vmatprep.mubr.msk.bf16.mxu0 %vm503_vm0, %v1150_v50  ;;  %1056 = vmatprep.mubr.msk.bf16.mxu1 %vm503_vm0, %v1152_v51 }
  0x75   :  { %713 = vmatmul.mubr.bf16.gmra.mrb[40].mxu0 %v1154_v52  ;;  %841 = vmatmul.mubr.bf16.gmra.mrb[40].mxu1 %v1155_v53 }
  0x76   :  { %1041 = vmatprep.mubr.msk.bf16.mxu0 %vm503_vm0, %v1156_v54  ;;  %1057 = vmatprep.mubr.msk.bf16.mxu1 %vm503_vm0, %v1158_v55 }
  0x7d   :  { %721 = vmatmul.mubr.bf16.gmra.mrb[44].mxu0 %v1160_v56  ;;  %849 = vmatmul.mubr.bf16.gmra.mrb[44].mxu1 %v1161_v57 }
  0x7e   :  { %1042 = vmatprep.mubr.msk.bf16.mxu0 %vm503_vm0, %v1162_v58  ;;  %1058 = vmatprep.mubr.msk.bf16.mxu1 %vm503_vm0, %v1164_v59  ;;  %v103_v58 = vld [vmem:[%s1908_s2 + $0x30] sm:$0xff] }
  0x7f   :  { %v135_v59 = vld [vmem:[%s1908_s2 + $0x130] sm:$0xff] }
  0x85   :  { %729 = vmatmul.mubr.bf16.gmra.mrb[48].mxu0 %v1166_v60  ;;  %857 = vmatmul.mubr.bf16.gmra.mrb[48].mxu1 %v1167_v61 }
  0x86   :  { %1043 = vmatprep.mubr.msk.bf16.mxu0 %vm503_vm0, %v1168_v62  ;;  %1059 = vmatprep.mubr.msk.bf16.mxu1 %vm503_vm0, %v1170_v63  ;;  %v104_v62 = vld [vmem:[%s1908_s2 + $0x38] sm:$0xff] }
  0x87   :  { %v136_v63 = vld [vmem:[%s1908_s2 + $0x138] sm:$0xff] }
  0x8d   :  { %737 = vmatmul.mubr.bf16.gmra.mrb[52].mxu0 %v1172_v0  ;;  %865 = vmatmul.mubr.bf16.gmra.mrb[52].mxu1 %v1173_v1 }
  0x8e   :  { %1044 = vmatprep.mubr.msk.bf16.mxu0 %vm503_vm0, %v1174_v2  ;;  %1060 = vmatprep.mubr.msk.bf16.mxu1 %vm503_vm0, %v1176_v3 }
  0x95   :  { %745 = vmatmul.mubr.bf16.gmra.mrb[56].mxu0 %v1178_v4  ;;  %873 = vmatmul.mubr.bf16.gmra.mrb[56].mxu1 %v1179_v5 }
  0x96   :  { %1045 = vmatprep.mubr.msk.bf16.mxu0 %vm503_vm0, %v1180_v6  ;;  %1061 = vmatprep.mubr.msk.bf16.mxu1 %vm503_vm0, %v1182_v7 }
  0x9d   :  { %753 = vmatmul.mubr.bf16.gmra.mrb[60].mxu0 %v1184_v8  ;;  %881 = vmatmul.mubr.bf16.gmra.mrb[60].mxu1 %v1185_v9 }
  0xf8   :  { %v634_v12 = vpop.f32.mrb[0].mxu0  ;;  %v762_v13 = vpop.f32.mrb[0].mxu1 }
  0xf9   :  { %v635_v16 = vadd.f32 %v634_v12, %v97_v10  ;;  %v763_v17 = vadd.f32 %v762_v13, %v129_v11  ;;  %v636_v18 = vpop.f32.mrb[1].mxu0  ;;  %v764_v19 = vpop.f32.mrb[1].mxu1  ;;  %v105_v10 = vld [vmem:[%s1908_s2 + $0x40] sm:$0xff] }
  0xfa   :  { %v637_v20 = vpop.f32.mrb[2].mxu0  ;;  %v765_v21 = vpop.f32.mrb[2].mxu1  ;;  %v137_v11 = vld [vmem:[%s1908_s2 + $0x140] sm:$0xff] }
  0xfb   :  { %889 = vst.msk [vmem:[%s1909_s3] sm:$0xff] %vm503_vm0, %v635_v16  ;;  %921 = vst.msk [vmem:[%s1909_s3 + $0x100] sm:$0xff] %vm503_vm0, %v763_v17  ;;  %v638_v22 = vadd.f32 %v637_v20, %v98_v14  ;;  %v766_v23 = vadd.f32 %v765_v21, %v130_v15  ;;  %v639_v24 = vpop.f32.mrb[3].mxu0  ;;  %v767_v25 = vpop.f32.mrb[3].mxu1  ;;  %v106_v14 = vld [vmem:[%s1908_s2 + $0x48] sm:$0xff] }
  0xfc   :  { %v138_v15 = vld [vmem:[%s1908_s2 + $0x148] sm:$0xff] }
  0xfd   :  { %890 = vst.msk [vmem:[%s1909_s3 + $0x8] sm:$0xff] %vm503_vm0, %v638_v22  ;;  %922 = vst.msk [vmem:[%s1909_s3 + $0x108] sm:$0xff] %vm503_vm0, %v766_v23 }
 0x100   :  { %v642_v28 = vpop.f32.mrb[4].mxu0  ;;  %v770_v29 = vpop.f32.mrb[4].mxu1 }
 0x101   :  { %v643_v32 = vadd.f32 %v642_v28, %v99_v26  ;;  %v771_v33 = vadd.f32 %v770_v29, %v131_v27  ;;  %v644_v34 = vpop.f32.mrb[5].mxu0  ;;  %v772_v35 = vpop.f32.mrb[5].mxu1  ;;  %v107_v26 = vld [vmem:[%s1908_s2 + $0x50] sm:$0xff] }
 0x102   :  { %v645_v36 = vpop.f32.mrb[6].mxu0  ;;  %v773_v37 = vpop.f32.mrb[6].mxu1  ;;  %v139_v27 = vld [vmem:[%s1908_s2 + $0x150] sm:$0xff] }
 0x103   :  { %891 = vst.msk [vmem:[%s1909_s3 + $0x10] sm:$0xff] %vm503_vm0, %v643_v32  ;;  %923 = vst.msk [vmem:[%s1909_s3 + $0x110] sm:$0xff] %vm503_vm0, %v771_v33  ;;  %v646_v38 = vadd.f32 %v645_v36, %v100_v30  ;;  %v774_v39 = vadd.f32 %v773_v37, %v132_v31  ;;  %v647_v40 = vpop.f32.mrb[7].mxu0  ;;  %v775_v41 = vpop.f32.mrb[7].mxu1  ;;  %v108_v30 = vld [vmem:[%s1908_s2 + $0x58] sm:$0xff] }
 0x104   :  { %v140_v31 = vld [vmem:[%s1908_s2 + $0x158] sm:$0xff] }
 0x105   :  { %892 = vst.msk [vmem:[%s1909_s3 + $0x18] sm:$0xff] %vm503_vm0, %v646_v38  ;;  %924 = vst.msk [vmem:[%s1909_s3 + $0x118] sm:$0xff] %vm503_vm0, %v774_v39 }
 0x108   :  { %v650_v44 = vpop.f32.mrb[8].mxu0  ;;  %v778_v45 = vpop.f32.mrb[8].mxu1 }
 0x109   :  { %v651_v48 = vadd.f32 %v650_v44, %v101_v42  ;;  %v779_v49 = vadd.f32 %v778_v45, %v133_v43  ;;  %v652_v50 = vpop.f32.mrb[9].mxu0  ;;  %v780_v51 = vpop.f32.mrb[9].mxu1  ;;  %v109_v42 = vld [vmem:[%s1908_s2 + $0x60] sm:$0xff] }
 0x10a   :  { %v653_v52 = vpop.f32.mrb[10].mxu0  ;;  %v781_v53 = vpop.f32.mrb[10].mxu1  ;;  %v141_v43 = vld [vmem:[%s1908_s2 + $0x160] sm:$0xff] }
 0x10b   :  { %893 = vst.msk [vmem:[%s1909_s3 + $0x20] sm:$0xff] %vm503_vm0, %v651_v48  ;;  %925 = vst.msk [vmem:[%s1909_s3 + $0x120] sm:$0xff] %vm503_vm0, %v779_v49  ;;  %v654_v54 = vadd.f32 %v653_v52, %v102_v46  ;;  %v782_v55 = vadd.f32 %v781_v53, %v134_v47  ;;  %v655_v56 = vpop.f32.mrb[11].mxu0  ;;  %v783_v57 = vpop.f32.mrb[11].mxu1  ;;  %v110_v46 = vld [vmem:[%s1908_s2 + $0x68] sm:$0xff] }
 0x10c   :  { %v142_v47 = vld [vmem:[%s1908_s2 + $0x168] sm:$0xff] }
 0x10d   :  { %894 = vst.msk [vmem:[%s1909_s3 + $0x28] sm:$0xff] %vm503_vm0, %v654_v54  ;;  %926 = vst.msk [vmem:[%s1909_s3 + $0x128] sm:$0xff] %vm503_vm0, %v782_v55 }
 0x110   :  { %v658_v60 = vpop.f32.mrb[12].mxu0  ;;  %v786_v61 = vpop.f32.mrb[12].mxu1 }
 0x111   :  { %v659_v0 = vadd.f32 %v658_v60, %v103_v58  ;;  %v787_v1 = vadd.f32 %v786_v61, %v135_v59  ;;  %v660_v2 = vpop.f32.mrb[13].mxu0  ;;  %v788_v3 = vpop.f32.mrb[13].mxu1  ;;  %v111_v58 = vld [vmem:[%s1908_s2 + $0x70] sm:$0xff] }
 0x112   :  { %v661_v4 = vpop.f32.mrb[14].mxu0  ;;  %v789_v5 = vpop.f32.mrb[14].mxu1  ;;  %v143_v59 = vld [vmem:[%s1908_s2 + $0x170] sm:$0xff] }
 0x113   :  { %895 = vst.msk [vmem:[%s1909_s3 + $0x30] sm:$0xff] %vm503_vm0, %v659_v0  ;;  %927 = vst.msk [vmem:[%s1909_s3 + $0x130] sm:$0xff] %vm503_vm0, %v787_v1  ;;  %v662_v6 = vadd.f32 %v661_v4, %v104_v62  ;;  %v790_v7 = vadd.f32 %v789_v5, %v136_v63  ;;  %v663_v8 = vpop.f32.mrb[15].mxu0  ;;  %v791_v9 = vpop.f32.mrb[15].mxu1  ;;  %v112_v62 = vld [vmem:[%s1908_s2 + $0x78] sm:$0xff] }
 0x114   :  { %v144_v63 = vld [vmem:[%s1908_s2 + $0x178] sm:$0xff] }
 0x115   :  { %896 = vst.msk [vmem:[%s1909_s3 + $0x38] sm:$0xff] %vm503_vm0, %v662_v6  ;;  %928 = vst.msk [vmem:[%s1909_s3 + $0x138] sm:$0xff] %vm503_vm0, %v790_v7 }
 0x118   :  { %v666_v12 = vpop.f32.mrb[16].mxu0  ;;  %v794_v13 = vpop.f32.mrb[16].mxu1 }
 0x119   :  { %v667_v16 = vadd.f32 %v666_v12, %v105_v10  ;;  %v795_v17 = vadd.f32 %v794_v13, %v137_v11  ;;  %v668_v18 = vpop.f32.mrb[17].mxu0  ;;  %v796_v19 = vpop.f32.mrb[17].mxu1  ;;  %v113_v10 = vld [vmem:[%s1908_s2 + $0x80] sm:$0xff] }
 0x11a   :  { %v669_v20 = vpop.f32.mrb[18].mxu0  ;;  %v797_v21 = vpop.f32.mrb[18].mxu1  ;;  %v145_v11 = vld [vmem:[%s1908_s2 + $0x180] sm:$0xff] }
 0x11b   :  { %897 = vst.msk [vmem:[%s1909_s3 + $0x40] sm:$0xff] %vm503_vm0, %v667_v16  ;;  %929 = vst.msk [vmem:[%s1909_s3 + $0x140] sm:$0xff] %vm503_vm0, %v795_v17  ;;  %v670_v22 = vadd.f32 %v669_v20, %v106_v14  ;;  %v798_v23 = vadd.f32 %v797_v21, %v138_v15  ;;  %v671_v24 = vpop.f32.mrb[19].mxu0  ;;  %v799_v25 = vpop.f32.mrb[19].mxu1  ;;  %v114_v14 = vld [vmem:[%s1908_s2 + $0x88] sm:$0xff] }
 0x11c   :  { %v146_v15 = vld [vmem:[%s1908_s2 + $0x188] sm:$0xff] }
 0x11d   :  { %898 = vst.msk [vmem:[%s1909_s3 + $0x48] sm:$0xff] %vm503_vm0, %v670_v22  ;;  %930 = vst.msk [vmem:[%s1909_s3 + $0x148] sm:$0xff] %vm503_vm0, %v798_v23 }
 0x120   :  { %v674_v28 = vpop.f32.mrb[20].mxu0  ;;  %v802_v29 = vpop.f32.mrb[20].mxu1 }
 0x121   :  { %v675_v32 = vadd.f32 %v674_v28, %v107_v26  ;;  %v803_v33 = vadd.f32 %v802_v29, %v139_v27  ;;  %v676_v34 = vpop.f32.mrb[21].mxu0  ;;  %v804_v35 = vpop.f32.mrb[21].mxu1  ;;  %v115_v26 = vld [vmem:[%s1908_s2 + $0x90] sm:$0xff] }
 0x122   :  { %v677_v36 = vpop.f32.mrb[22].mxu0  ;;  %v805_v37 = vpop.f32.mrb[22].mxu1  ;;  %v147_v27 = vld [vmem:[%s1908_s2 + $0x190] sm:$0xff] }
 0x123   :  { %899 = vst.msk [vmem:[%s1909_s3 + $0x50] sm:$0xff] %vm503_vm0, %v675_v32  ;;  %931 = vst.msk [vmem:[%s1909_s3 + $0x150] sm:$0xff] %vm503_vm0, %v803_v33  ;;  %v678_v38 = vadd.f32 %v677_v36, %v108_v30  ;;  %v806_v39 = vadd.f32 %v805_v37, %v140_v31  ;;  %v679_v40 = vpop.f32.mrb[23].mxu0  ;;  %v807_v41 = vpop.f32.mrb[23].mxu1  ;;  %v116_v30 = vld [vmem:[%s1908_s2 + $0x98] sm:$0xff] }
 0x124   :  { %v148_v31 = vld [vmem:[%s1908_s2 + $0x198] sm:$0xff] }
 0x125   :  { %900 = vst.msk [vmem:[%s1909_s3 + $0x58] sm:$0xff] %vm503_vm0, %v678_v38  ;;  %932 = vst.msk [vmem:[%s1909_s3 + $0x158] sm:$0xff] %vm503_vm0, %v806_v39 }
 0x128   :  { %v682_v44 = vpop.f32.mrb[24].mxu0  ;;  %v810_v45 = vpop.f32.mrb[24].mxu1 }
 0x129   :  { %v683_v48 = vadd.f32 %v682_v44, %v109_v42  ;;  %v811_v49 = vadd.f32 %v810_v45, %v141_v43  ;;  %v684_v50 = vpop.f32.mrb[25].mxu0  ;;  %v812_v51 = vpop.f32.mrb[25].mxu1  ;;  %v117_v42 = vld [vmem:[%s1908_s2 + $0xa0] sm:$0xff] }
 0x12a   :  { %v685_v52 = vpop.f32.mrb[26].mxu0  ;;  %v813_v53 = vpop.f32.mrb[26].mxu1  ;;  %v149_v43 = vld [vmem:[%s1908_s2 + $0x1a0] sm:$0xff] }
 0x12b   :  { %901 = vst.msk [vmem:[%s1909_s3 + $0x60] sm:$0xff] %vm503_vm0, %v683_v48  ;;  %933 = vst.msk [vmem:[%s1909_s3 + $0x160] sm:$0xff] %vm503_vm0, %v811_v49  ;;  %v686_v54 = vadd.f32 %v685_v52, %v110_v46  ;;  %v814_v55 = vadd.f32 %v813_v53, %v142_v47  ;;  %v687_v56 = vpop.f32.mrb[27].mxu0  ;;  %v815_v57 = vpop.f32.mrb[27].mxu1  ;;  %v118_v46 = vld [vmem:[%s1908_s2 + $0xa8] sm:$0xff] }
 0x12c   :  { %v150_v47 = vld [vmem:[%s1908_s2 + $0x1a8] sm:$0xff] }
 0x12d   :  { %902 = vst.msk [vmem:[%s1909_s3 + $0x68] sm:$0xff] %vm503_vm0, %v686_v54  ;;  %934 = vst.msk [vmem:[%s1909_s3 + $0x168] sm:$0xff] %vm503_vm0, %v814_v55 }
 0x130   :  { %v690_v60 = vpop.f32.mrb[28].mxu0  ;;  %v818_v61 = vpop.f32.mrb[28].mxu1 }
 0x131   :  { %v691_v0 = vadd.f32 %v690_v60, %v111_v58  ;;  %v819_v1 = vadd.f32 %v818_v61, %v143_v59  ;;  %v692_v2 = vpop.f32.mrb[29].mxu0  ;;  %v820_v3 = vpop.f32.mrb[29].mxu1  ;;  %v119_v58 = vld [vmem:[%s1908_s2 + $0xb0] sm:$0xff] }
 0x132   :  { %v693_v4 = vpop.f32.mrb[30].mxu0  ;;  %v821_v5 = vpop.f32.mrb[30].mxu1  ;;  %v151_v59 = vld [vmem:[%s1908_s2 + $0x1b0] sm:$0xff] }
 0x133   :  { %903 = vst.msk [vmem:[%s1909_s3 + $0x70] sm:$0xff] %vm503_vm0, %v691_v0  ;;  %935 = vst.msk [vmem:[%s1909_s3 + $0x170] sm:$0xff] %vm503_vm0, %v819_v1  ;;  %v694_v6 = vadd.f32 %v693_v4, %v112_v62  ;;  %v822_v7 = vadd.f32 %v821_v5, %v144_v63  ;;  %v695_v8 = vpop.f32.mrb[31].mxu0  ;;  %v823_v9 = vpop.f32.mrb[31].mxu1  ;;  %v120_v62 = vld [vmem:[%s1908_s2 + $0xb8] sm:$0xff] }
 0x134   :  { %v152_v63 = vld [vmem:[%s1908_s2 + $0x1b8] sm:$0xff] }
 0x135   :  { %904 = vst.msk [vmem:[%s1909_s3 + $0x78] sm:$0xff] %vm503_vm0, %v694_v6  ;;  %936 = vst.msk [vmem:[%s1909_s3 + $0x178] sm:$0xff] %vm503_vm0, %v822_v7 }
 0x138   :  { %v698_v12 = vpop.f32.mrb[32].mxu0  ;;  %v826_v13 = vpop.f32.mrb[32].mxu1 }
 0x139   :  { %v699_v16 = vadd.f32 %v698_v12, %v113_v10  ;;  %v827_v17 = vadd.f32 %v826_v13, %v145_v11  ;;  %v700_v18 = vpop.f32.mrb[33].mxu0  ;;  %v828_v19 = vpop.f32.mrb[33].mxu1  ;;  %v121_v10 = vld [vmem:[%s1908_s2 + $0xc0] sm:$0xff] }
 0x13a   :  { %v701_v20 = vpop.f32.mrb[34].mxu0  ;;  %v829_v21 = vpop.f32.mrb[34].mxu1  ;;  %v153_v11 = vld [vmem:[%s1908_s2 + $0x1c0] sm:$0xff] }
 0x13b   :  { %905 = vst.msk [vmem:[%s1909_s3 + $0x80] sm:$0xff] %vm503_vm0, %v699_v16  ;;  %937 = vst.msk [vmem:[%s1909_s3 + $0x180] sm:$0xff] %vm503_vm0, %v827_v17  ;;  %v702_v22 = vadd.f32 %v701_v20, %v114_v14  ;;  %v830_v23 = vadd.f32 %v829_v21, %v146_v15  ;;  %v703_v24 = vpop.f32.mrb[35].mxu0  ;;  %v831_v25 = vpop.f32.mrb[35].mxu1  ;;  %v122_v14 = vld [vmem:[%s1908_s2 + $0xc8] sm:$0xff] }
 0x13c   :  { %v154_v15 = vld [vmem:[%s1908_s2 + $0x1c8] sm:$0xff] }
 0x13d   :  { %906 = vst.msk [vmem:[%s1909_s3 + $0x88] sm:$0xff] %vm503_vm0, %v702_v22  ;;  %938 = vst.msk [vmem:[%s1909_s3 + $0x188] sm:$0xff] %vm503_vm0, %v830_v23 }
 0x140   :  { %v706_v28 = vpop.f32.mrb[36].mxu0  ;;  %v834_v29 = vpop.f32.mrb[36].mxu1 }
 0x141   :  { %v707_v32 = vadd.f32 %v706_v28, %v115_v26  ;;  %v835_v33 = vadd.f32 %v834_v29, %v147_v27  ;;  %v708_v34 = vpop.f32.mrb[37].mxu0  ;;  %v836_v35 = vpop.f32.mrb[37].mxu1  ;;  %v123_v26 = vld [vmem:[%s1908_s2 + $0xd0] sm:$0xff] }
 0x142   :  { %v709_v36 = vpop.f32.mrb[38].mxu0  ;;  %v837_v37 = vpop.f32.mrb[38].mxu1  ;;  %v155_v27 = vld [vmem:[%s1908_s2 + $0x1d0] sm:$0xff] }
 0x143   :  { %907 = vst.msk [vmem:[%s1909_s3 + $0x90] sm:$0xff] %vm503_vm0, %v707_v32  ;;  %939 = vst.msk [vmem:[%s1909_s3 + $0x190] sm:$0xff] %vm503_vm0, %v835_v33  ;;  %v710_v38 = vadd.f32 %v709_v36, %v116_v30  ;;  %v838_v39 = vadd.f32 %v837_v37, %v148_v31  ;;  %v711_v40 = vpop.f32.mrb[39].mxu0  ;;  %v839_v41 = vpop.f32.mrb[39].mxu1  ;;  %v124_v30 = vld [vmem:[%s1908_s2 + $0xd8] sm:$0xff] }
 0x144   :  { %v156_v31 = vld [vmem:[%s1908_s2 + $0x1d8] sm:$0xff] }
 0x145   :  { %908 = vst.msk [vmem:[%s1909_s3 + $0x98] sm:$0xff] %vm503_vm0, %v710_v38  ;;  %940 = vst.msk [vmem:[%s1909_s3 + $0x198] sm:$0xff] %vm503_vm0, %v838_v39 }
 0x148   :  { %v714_v44 = vpop.f32.mrb[40].mxu0  ;;  %v842_v45 = vpop.f32.mrb[40].mxu1 }
 0x149   :  { %v715_v48 = vadd.f32 %v714_v44, %v117_v42  ;;  %v843_v49 = vadd.f32 %v842_v45, %v149_v43  ;;  %v716_v50 = vpop.f32.mrb[41].mxu0  ;;  %v844_v51 = vpop.f32.mrb[41].mxu1  ;;  %v125_v42 = vld [vmem:[%s1908_s2 + $0xe0] sm:$0xff] }
 0x14a   :  { %v717_v52 = vpop.f32.mrb[42].mxu0  ;;  %v845_v53 = vpop.f32.mrb[42].mxu1  ;;  %v157_v43 = vld [vmem:[%s1908_s2 + $0x1e0] sm:$0xff] }
 0x14b   :  { %909 = vst.msk [vmem:[%s1909_s3 + $0xa0] sm:$0xff] %vm503_vm0, %v715_v48  ;;  %941 = vst.msk [vmem:[%s1909_s3 + $0x1a0] sm:$0xff] %vm503_vm0, %v843_v49  ;;  %v718_v54 = vadd.f32 %v717_v52, %v118_v46  ;;  %v846_v55 = vadd.f32 %v845_v53, %v150_v47  ;;  %v719_v56 = vpop.f32.mrb[43].mxu0  ;;  %v847_v57 = vpop.f32.mrb[43].mxu1  ;;  %v126_v46 = vld [vmem:[%s1908_s2 + $0xe8] sm:$0xff] }
 0x14c   :  { %v158_v47 = vld [vmem:[%s1908_s2 + $0x1e8] sm:$0xff] }
 0x14d   :  { %910 = vst.msk [vmem:[%s1909_s3 + $0xa8] sm:$0xff] %vm503_vm0, %v718_v54  ;;  %942 = vst.msk [vmem:[%s1909_s3 + $0x1a8] sm:$0xff] %vm503_vm0, %v846_v55 }
 0x150   :  { %v722_v60 = vpop.f32.mrb[44].mxu0  ;;  %v850_v61 = vpop.f32.mrb[44].mxu1 }
 0x151   :  { %v723_v0 = vadd.f32 %v722_v60, %v119_v58  ;;  %v851_v1 = vadd.f32 %v850_v61, %v151_v59  ;;  %v724_v2 = vpop.f32.mrb[45].mxu0  ;;  %v852_v3 = vpop.f32.mrb[45].mxu1  ;;  %v127_v58 = vld [vmem:[%s1908_s2 + $0xf0] sm:$0xff] }
 0x152   :  { %v725_v4 = vpop.f32.mrb[46].mxu0  ;;  %v853_v5 = vpop.f32.mrb[46].mxu1  ;;  %v159_v59 = vld [vmem:[%s1908_s2 + $0x1f0] sm:$0xff] }
 0x153   :  { %911 = vst.msk [vmem:[%s1909_s3 + $0xb0] sm:$0xff] %vm503_vm0, %v723_v0  ;;  %943 = vst.msk [vmem:[%s1909_s3 + $0x1b0] sm:$0xff] %vm503_vm0, %v851_v1  ;;  %v726_v6 = vadd.f32 %v725_v4, %v120_v62  ;;  %v854_v7 = vadd.f32 %v853_v5, %v152_v63  ;;  %v727_v8 = vpop.f32.mrb[47].mxu0  ;;  %v855_v9 = vpop.f32.mrb[47].mxu1  ;;  %v128_v62 = vld [vmem:[%s1908_s2 + $0xf8] sm:$0xff] }
 0x154   :  { %v160_v63 = vld [vmem:[%s1908_s2 + $0x1f8] sm:$0xff] }
 0x155   :  { %912 = vst.msk [vmem:[%s1909_s3 + $0xb8] sm:$0xff] %vm503_vm0, %v726_v6  ;;  %944 = vst.msk [vmem:[%s1909_s3 + $0x1b8] sm:$0xff] %vm503_vm0, %v854_v7 }
 0x158   :  { %v730_v12 = vpop.f32.mrb[48].mxu0  ;;  %v858_v13 = vpop.f32.mrb[48].mxu1 }
 0x159   :  { %v731_v16 = vadd.f32 %v730_v12, %v121_v10  ;;  %v859_v17 = vadd.f32 %v858_v13, %v153_v11  ;;  %v732_v18 = vpop.f32.mrb[49].mxu0  ;;  %v860_v19 = vpop.f32.mrb[49].mxu1 }
 0x15a   :  { %v733_v20 = vpop.f32.mrb[50].mxu0  ;;  %v861_v21 = vpop.f32.mrb[50].mxu1 }
 0x15b   :  { %913 = vst.msk [vmem:[%s1909_s3 + $0xc0] sm:$0xff] %vm503_vm0, %v731_v16  ;;  %945 = vst.msk [vmem:[%s1909_s3 + $0x1c0] sm:$0xff] %vm503_vm0, %v859_v17  ;;  %v734_v22 = vadd.f32 %v733_v20, %v122_v14  ;;  %v862_v23 = vadd.f32 %v861_v21, %v154_v15  ;;  %v735_v24 = vpop.f32.mrb[51].mxu0  ;;  %v863_v25 = vpop.f32.mrb[51].mxu1 }
 0x15d   :  { %914 = vst.msk [vmem:[%s1909_s3 + $0xc8] sm:$0xff] %vm503_vm0, %v734_v22  ;;  %946 = vst.msk [vmem:[%s1909_s3 + $0x1c8] sm:$0xff] %vm503_vm0, %v862_v23 }
 0x160   :  { %v738_v28 = vpop.f32.mrb[52].mxu0  ;;  %v866_v29 = vpop.f32.mrb[52].mxu1 }
 0x161   :  { %v739_v32 = vadd.f32 %v738_v28, %v123_v26  ;;  %v867_v33 = vadd.f32 %v866_v29, %v155_v27  ;;  %v740_v34 = vpop.f32.mrb[53].mxu0  ;;  %v868_v35 = vpop.f32.mrb[53].mxu1 }
 0x162   :  { %v741_v36 = vpop.f32.mrb[54].mxu0  ;;  %v869_v37 = vpop.f32.mrb[54].mxu1 }
 0x163   :  { %915 = vst.msk [vmem:[%s1909_s3 + $0xd0] sm:$0xff] %vm503_vm0, %v739_v32  ;;  %947 = vst.msk [vmem:[%s1909_s3 + $0x1d0] sm:$0xff] %vm503_vm0, %v867_v33  ;;  %v742_v38 = vadd.f32 %v741_v36, %v124_v30  ;;  %v870_v39 = vadd.f32 %v869_v37, %v156_v31  ;;  %v743_v40 = vpop.f32.mrb[55].mxu0  ;;  %v871_v41 = vpop.f32.mrb[55].mxu1 }
 0x165   :  { %916 = vst.msk [vmem:[%s1909_s3 + $0xd8] sm:$0xff] %vm503_vm0, %v742_v38  ;;  %948 = vst.msk [vmem:[%s1909_s3 + $0x1d8] sm:$0xff] %vm503_vm0, %v870_v39 }
 0x168   :  { %v746_v44 = vpop.f32.mrb[56].mxu0  ;;  %v874_v45 = vpop.f32.mrb[56].mxu1 }
 0x169   :  { %v747_v48 = vadd.f32 %v746_v44, %v125_v42  ;;  %v875_v49 = vadd.f32 %v874_v45, %v157_v43  ;;  %v748_v50 = vpop.f32.mrb[57].mxu0  ;;  %v876_v51 = vpop.f32.mrb[57].mxu1 }
 0x16a   :  { %v749_v52 = vpop.f32.mrb[58].mxu0  ;;  %v877_v53 = vpop.f32.mrb[58].mxu1 }
 0x16b   :  { %917 = vst.msk [vmem:[%s1909_s3 + $0xe0] sm:$0xff] %vm503_vm0, %v747_v48  ;;  %949 = vst.msk [vmem:[%s1909_s3 + $0x1e0] sm:$0xff] %vm503_vm0, %v875_v49  ;;  %v750_v54 = vadd.f32 %v749_v52, %v126_v46  ;;  %v878_v55 = vadd.f32 %v877_v53, %v158_v47  ;;  %v751_v56 = vpop.f32.mrb[59].mxu0  ;;  %v879_v57 = vpop.f32.mrb[59].mxu1 }
 0x16d   :  { %918 = vst.msk [vmem:[%s1909_s3 + $0xe8] sm:$0xff] %vm503_vm0, %v750_v54  ;;  %950 = vst.msk [vmem:[%s1909_s3 + $0x1e8] sm:$0xff] %vm503_vm0, %v878_v55 }
 0x170   :  { %v754_v60 = vpop.f32.mrb[60].mxu0  ;;  %v882_v61 = vpop.f32.mrb[60].mxu1 }
 0x171   :  { %v755_v0 = vadd.f32 %v754_v60, %v127_v58  ;;  %v883_v1 = vadd.f32 %v882_v61, %v159_v59  ;;  %v756_v2 = vpop.f32.mrb[61].mxu0  ;;  %v884_v3 = vpop.f32.mrb[61].mxu1 }
 0x172   :  { %v757_v4 = vpop.f32.mrb[62].mxu0  ;;  %v885_v5 = vpop.f32.mrb[62].mxu1 }
 0x173   :  { %919 = vst.msk [vmem:[%s1909_s3 + $0xf0] sm:$0xff] %vm503_vm0, %v755_v0  ;;  %951 = vst.msk [vmem:[%s1909_s3 + $0x1f0] sm:$0xff] %vm503_vm0, %v883_v1  ;;  %v758_v6 = vadd.f32 %v757_v4, %v128_v62  ;;  %v886_v7 = vadd.f32 %v885_v5, %v160_v63  ;;  %v759_v8 = vpop.f32.mrb[63].mxu0  ;;  %v887_v9 = vpop.f32.mrb[63].mxu1 }
 0x175   :  { %920 = vst.msk [vmem:[%s1909_s3 + $0xf8] sm:$0xff] %vm503_vm0, %v758_v6  ;;  %952 = vst.msk [vmem:[%s1909_s3 + $0x1f8] sm:$0xff] %vm503_vm0, %v886_v7 }

// kernel: _lambda_.15
= control target key start
LH: loop header
LB: loop body
LE: loop exit
PB: predicated region body
PF: predicated region fallthrough
CT: control target
= control target key end

     0   :  { %v1333_v0 = vmov 0   ;;  %vm442_vm0 = vcmask 130048   ;;  %s2004_s1 = inlined_call_operand.vmem [shape: bf16[144,16], index: 1, kind: input, shape index: {}]   ;;  %s2005_s0 = inlined_call_operand.vmem [shape: bf16[512,144], index: 0, kind: input, shape index: {}]   ;;  %s2006_s2 = inlined_call_operand.vmem [shape: f32[1,16], index: 2, kind: input, shape index: {}]   ;;  %s2007_s3 = inlined_call_operand.vmem [shape: f32[1,16], index: 3, kind: input, shape index: {}]   ;;  %s2008_s4 = inlined_call_operand.vmem [shape: f32[512,16], index: 4, kind: output, shape index: {}]  }
   0x1   :  { %539 = vmatprep.subr.bf16.mxu0 %v1333_v0  ;;  %1209 = vmatprep.subr.bf16.mxu1 %v1333_v0  ;;  %v1228_v1 = vld [vmem:[%s2004_s1] sm:$0xff]   ;;  %v1229_v2 = vld [vmem:[%s2004_s1 + $0x8] sm:$0xff]   ;;  %v1230_v3 = vld [vmem:[%s2004_s1 + $0x10] sm:$0xff]  }
   0x2   :  { %540 = vmatpush1.bf16.msra.mxu0 %v1228_v1  ;;  %1218 = vmatpush1.bf16.msra.mxu1 %v1228_v1  ;;  %v1231_v4 = vld [vmem:[%s2004_s1 + $0x18] sm:$0xff]   ;;  %v1239_v5 = vld [vmem:[%s2005_s0 + $0x4] ss:$8 sps:$4 sm:$0xff]   ;;  %v1234_v9 = vld [vmem:[%s2004_s1 + $0x30] sm:$0xff]  }
   0x3   :  { %541 = vmatprep.subr.bf16.mxu0 %v1333_v0  ;;  %1210 = vmatprep.subr.bf16.mxu1 %v1333_v0  ;;  %v1242_v6 = vld [vmem:[%s2005_s0 + $0x104] ss:$8 sps:$4 sm:$0xff]   ;;  %v1235_v10 = vld [vmem:[%s2004_s1 + $0x38] sm:$0xff]   ;;  %v1237_v12 = vld [vmem:[%s2005_s0] ss:$8 sps:$4 sm:$0xff]  }
   0x4   :  { %1175 = vmatprep.mubr.msk.bf16.mxu0 %vm442_vm0, %v1239_v5  ;;  %1191 = vmatprep.mubr.msk.bf16.mxu1 %vm442_vm0, %v1242_v6  ;;  %v1232_v7 = vld [vmem:[%s2004_s1 + $0x20] sm:$0xff]   ;;  %v1233_v8 = vld [vmem:[%s2004_s1 + $0x28] sm:$0xff]   ;;  %v1243_v14 = vld [vmem:[%s2005_s0 + $0x14] ss:$8 sps:$4 sm:$0xff]  }
   0x5   :  { %v1236_v11 = vld [vmem:[%s2004_s1 + $0x40] sm:$0xff]   ;;  %v1245_v15 = vld [vmem:[%s2005_s0 + $0x114] ss:$8 sps:$4 sm:$0xff]   ;;  %v1247_v16 = vld [vmem:[%s2005_s0 + $0x10] ss:$8 sps:$4 sm:$0xff]  }
   0x6   :  { %542 = vmatpush1.bf16.msra.mxu0 %v1229_v2  ;;  %1219 = vmatpush1.bf16.msra.mxu1 %v1229_v2  ;;  %v1240_v13 = vld [vmem:[%s2005_s0 + $0x100] ss:$8 sps:$4 sm:$0xff]   ;;  %v1248_v17 = vld [vmem:[%s2005_s0 + $0x110] ss:$8 sps:$4 sm:$0xff]   ;;  %v1249_v18 = vld [vmem:[%s2005_s0 + $0x24] ss:$8 sps:$4 sm:$0xff]  }
   0x7   :  { %543 = vmatprep.subr.bf16.mxu0 %v1333_v0  ;;  %1211 = vmatprep.subr.bf16.mxu1 %v1333_v0  ;;  %v1251_v19 = vld [vmem:[%s2005_s0 + $0x124] ss:$8 sps:$4 sm:$0xff]   ;;  %v1253_v20 = vld [vmem:[%s2005_s0 + $0x20] ss:$8 sps:$4 sm:$0xff]   ;;  %v1255_v22 = vld [vmem:[%s2005_s0 + $0x34] ss:$8 sps:$4 sm:$0xff]  }
   0x8   :  { %v1254_v21 = vld [vmem:[%s2005_s0 + $0x120] ss:$8 sps:$4 sm:$0xff]   ;;  %v1257_v23 = vld [vmem:[%s2005_s0 + $0x134] ss:$8 sps:$4 sm:$0xff]   ;;  %v1259_v24 = vld [vmem:[%s2005_s0 + $0x30] ss:$8 sps:$4 sm:$0xff]  }
   0x9   :  { %v1260_v25 = vld [vmem:[%s2005_s0 + $0x130] ss:$8 sps:$4 sm:$0xff]   ;;  %v1261_v26 = vld [vmem:[%s2005_s0 + $0x44] ss:$8 sps:$4 sm:$0xff]   ;;  %v1265_v28 = vld [vmem:[%s2005_s0 + $0x40] ss:$8 sps:$4 sm:$0xff]  }
   0xa   :  { %544 = vmatpush1.bf16.msra.mxu0 %v1230_v3  ;;  %1220 = vmatpush1.bf16.msra.mxu1 %v1230_v3  ;;  %v1263_v27 = vld [vmem:[%s2005_s0 + $0x144] ss:$8 sps:$4 sm:$0xff]   ;;  %v1266_v29 = vld [vmem:[%s2005_s0 + $0x140] ss:$8 sps:$4 sm:$0xff]   ;;  %v1267_v30 = vld [vmem:[%s2005_s0 + $0x54] ss:$8 sps:$4 sm:$0xff]  }
   0xb   :  { %545 = vmatprep.subr.bf16.mxu0 %v1333_v0  ;;  %1212 = vmatprep.subr.bf16.mxu1 %v1333_v0  ;;  %v1269_v31 = vld [vmem:[%s2005_s0 + $0x154] ss:$8 sps:$4 sm:$0xff]   ;;  %v1271_v32 = vld [vmem:[%s2005_s0 + $0x50] ss:$8 sps:$4 sm:$0xff]   ;;  %v1273_v34 = vld [vmem:[%s2005_s0 + $0x64] ss:$8 sps:$4 sm:$0xff]  }
   0xc   :  { %v1272_v33 = vld [vmem:[%s2005_s0 + $0x150] ss:$8 sps:$4 sm:$0xff]   ;;  %v1275_v35 = vld [vmem:[%s2005_s0 + $0x164] ss:$8 sps:$4 sm:$0xff]   ;;  %v1277_v36 = vld [vmem:[%s2005_s0 + $0x60] ss:$8 sps:$4 sm:$0xff]  }
   0xd   :  { %v1278_v37 = vld [vmem:[%s2005_s0 + $0x160] ss:$8 sps:$4 sm:$0xff]   ;;  %v1279_v38 = vld [vmem:[%s2005_s0 + $0x74] ss:$8 sps:$4 sm:$0xff]   ;;  %v1283_v40 = vld [vmem:[%s2005_s0 + $0x70] ss:$8 sps:$4 sm:$0xff]  }
   0xe   :  { %546 = vmatpush1.bf16.msra.mxu0 %v1231_v4  ;;  %1221 = vmatpush1.bf16.msra.mxu1 %v1231_v4  ;;  %v1281_v39 = vld [vmem:[%s2005_s0 + $0x174] ss:$8 sps:$4 sm:$0xff]   ;;  %v1284_v41 = vld [vmem:[%s2005_s0 + $0x170] ss:$8 sps:$4 sm:$0xff]   ;;  %v1285_v42 = vld [vmem:[%s2005_s0 + $0x84] ss:$8 sps:$4 sm:$0xff]  }
   0xf   :  { %547 = vmatprep.subr.bf16.mxu0 %v1333_v0  ;;  %1213 = vmatprep.subr.bf16.mxu1 %v1333_v0  ;;  %v1287_v43 = vld [vmem:[%s2005_s0 + $0x184] ss:$8 sps:$4 sm:$0xff]   ;;  %v1289_v44 = vld [vmem:[%s2005_s0 + $0x80] ss:$8 sps:$4 sm:$0xff]   ;;  %v1291_v46 = vld [vmem:[%s2005_s0 + $0x94] ss:$8 sps:$4 sm:$0xff]  }
  0x10   :  { %v1290_v45 = vld [vmem:[%s2005_s0 + $0x180] ss:$8 sps:$4 sm:$0xff]   ;;  %v1293_v47 = vld [vmem:[%s2005_s0 + $0x194] ss:$8 sps:$4 sm:$0xff]   ;;  %v1295_v48 = vld [vmem:[%s2005_s0 + $0x90] ss:$8 sps:$4 sm:$0xff]  }
  0x11   :  { %v1296_v49 = vld [vmem:[%s2005_s0 + $0x190] ss:$8 sps:$4 sm:$0xff]   ;;  %v1297_v50 = vld [vmem:[%s2005_s0 + $0xa4] ss:$8 sps:$4 sm:$0xff]   ;;  %v1301_v52 = vld [vmem:[%s2005_s0 + $0xa0] ss:$8 sps:$4 sm:$0xff]  }
  0x12   :  { %548 = vmatpush1.bf16.msra.mxu0 %v1232_v7  ;;  %1222 = vmatpush1.bf16.msra.mxu1 %v1232_v7  ;;  %v1299_v51 = vld [vmem:[%s2005_s0 + $0x1a4] ss:$8 sps:$4 sm:$0xff]   ;;  %v1302_v53 = vld [vmem:[%s2005_s0 + $0x1a0] ss:$8 sps:$4 sm:$0xff]   ;;  %v1303_v54 = vld [vmem:[%s2005_s0 + $0xb4] ss:$8 sps:$4 sm:$0xff]  }
  0x13   :  { %549 = vmatprep.subr.bf16.mxu0 %v1333_v0  ;;  %1214 = vmatprep.subr.bf16.mxu1 %v1333_v0  ;;  %v1305_v55 = vld [vmem:[%s2005_s0 + $0x1b4] ss:$8 sps:$4 sm:$0xff]   ;;  %v1307_v56 = vld [vmem:[%s2005_s0 + $0xb0] ss:$8 sps:$4 sm:$0xff]   ;;  %v1309_v58 = vld [vmem:[%s2005_s0 + $0xc4] ss:$8 sps:$4 sm:$0xff]  }
  0x14   :  { %v1308_v57 = vld [vmem:[%s2005_s0 + $0x1b0] ss:$8 sps:$4 sm:$0xff]   ;;  %v1311_v59 = vld [vmem:[%s2005_s0 + $0x1c4] ss:$8 sps:$4 sm:$0xff]   ;;  %v1313_v60 = vld [vmem:[%s2005_s0 + $0xc0] ss:$8 sps:$4 sm:$0xff]  }
  0x15   :  { %v1314_v61 = vld [vmem:[%s2005_s0 + $0x1c0] ss:$8 sps:$4 sm:$0xff]   ;;  %v1315_v62 = vld [vmem:[%s2005_s0 + $0xd4] ss:$8 sps:$4 sm:$0xff]   ;;  %v1320_v1 = vld [vmem:[%s2005_s0 + $0x1d0] ss:$8 sps:$4 sm:$0xff]  }
  0x16   :  { %550 = vmatpush1.bf16.msra.mxu0 %v1233_v8  ;;  %1223 = vmatpush1.bf16.msra.mxu1 %v1233_v8  ;;  %v1317_v63 = vld [vmem:[%s2005_s0 + $0x1d4] ss:$8 sps:$4 sm:$0xff]   ;;  %v1321_v2 = vld [vmem:[%s2005_s0 + $0xe4] ss:$8 sps:$4 sm:$0xff]   ;;  %v1325_v4 = vld [vmem:[%s2005_s0 + $0xe0] ss:$8 sps:$4 sm:$0xff]  }
  0x17   :  { %551 = vmatprep.subr.bf16.mxu0 %v1333_v0  ;;  %1215 = vmatprep.subr.bf16.mxu1 %v1333_v0  ;;  %v1323_v3 = vld [vmem:[%s2005_s0 + $0x1e4] ss:$8 sps:$4 sm:$0xff]   ;;  %v1326_v5 = vld [vmem:[%s2005_s0 + $0x1e0] ss:$8 sps:$4 sm:$0xff]   ;;  %v1327_v6 = vld [vmem:[%s2005_s0 + $0xf4] ss:$8 sps:$4 sm:$0xff]  }
  0x18   :  { %v1329_v7 = vld [vmem:[%s2005_s0 + $0x1f4] ss:$8 sps:$4 sm:$0xff]   ;;  %v1331_v8 = vld [vmem:[%s2005_s0 + $0xf0] ss:$8 sps:$4 sm:$0xff]  }
  0x1a   :  { %552 = vmatpush1.bf16.msra.mxu0 %v1234_v9  ;;  %1224 = vmatpush1.bf16.msra.mxu1 %v1234_v9  ;;  %v1332_v9 = vld [vmem:[%s2005_s0 + $0x1f0] ss:$8 sps:$4 sm:$0xff]  }
  0x1b   :  { %553 = vmatprep.subr.bf16.mxu0 %v1333_v0  ;;  %1216 = vmatprep.subr.bf16.mxu1 %v1333_v0 }
  0x1e   :  { %554 = vmatpush1.bf16.msra.mxu0 %v1235_v10  ;;  %1225 = vmatpush1.bf16.msra.mxu1 %v1235_v10  ;;  %v1613_v10 = vld [vmem:[%s2006_s2] ss:$0 sm:$0xff] }
  0x1f   :  { %555 = vmatprep.subr.bf16.mxu0 %v1333_v0  ;;  %1217 = vmatprep.subr.bf16.mxu1 %v1333_v0  ;;  %v1319_v0 = vld [vmem:[%s2005_s0 + $0xd0] ss:$8 sps:$4 sm:$0xff]  }
  0x22   :  { %556 = vmatpush1.bf16.msra.mxu0 %v1236_v11  ;;  %1226 = vmatpush1.bf16.msra.mxu1 %v1236_v11 }
  0x25   :  { %572 = vmatmul.mubr.bf16.vlgmr.msra.gmra.mrb[0].mxu0 %v1237_v12  ;;  %700 = vmatmul.mubr.bf16.vlgmr.msra.gmra.mrb[0].mxu1 %v1240_v13  ;;  %v1618_v12 = vld [vmem:[%s2007_s3] ss:$0 sm:$0xff] }
  0x26   :  { %1176 = vmatprep.mubr.msk.bf16.mxu0 %vm442_vm0, %v1243_v14  ;;  %1192 = vmatprep.mubr.msk.bf16.mxu1 %vm442_vm0, %v1245_v15 }
  0x2d   :  { %580 = vmatmul.mubr.bf16.gmra.mrb[4].mxu0 %v1247_v16  ;;  %708 = vmatmul.mubr.bf16.gmra.mrb[4].mxu1 %v1248_v17 }
  0x2e   :  { %1177 = vmatprep.mubr.msk.bf16.mxu0 %vm442_vm0, %v1249_v18  ;;  %1193 = vmatprep.mubr.msk.bf16.mxu1 %vm442_vm0, %v1251_v19 }
  0x35   :  { %588 = vmatmul.mubr.bf16.gmra.mrb[8].mxu0 %v1253_v20  ;;  %716 = vmatmul.mubr.bf16.gmra.mrb[8].mxu1 %v1254_v21 }
  0x36   :  { %1178 = vmatprep.mubr.msk.bf16.mxu0 %vm442_vm0, %v1255_v22  ;;  %1194 = vmatprep.mubr.msk.bf16.mxu1 %vm442_vm0, %v1257_v23 }
  0x3d   :  { %596 = vmatmul.mubr.bf16.gmra.mrb[12].mxu0 %v1259_v24  ;;  %724 = vmatmul.mubr.bf16.gmra.mrb[12].mxu1 %v1260_v25 }
  0x3e   :  { %1179 = vmatprep.mubr.msk.bf16.mxu0 %vm442_vm0, %v1261_v26  ;;  %1195 = vmatprep.mubr.msk.bf16.mxu1 %vm442_vm0, %v1263_v27 }
  0x45   :  { %604 = vmatmul.mubr.bf16.gmra.mrb[16].mxu0 %v1265_v28  ;;  %732 = vmatmul.mubr.bf16.gmra.mrb[16].mxu1 %v1266_v29 }
  0x46   :  { %1180 = vmatprep.mubr.msk.bf16.mxu0 %vm442_vm0, %v1267_v30  ;;  %1196 = vmatprep.mubr.msk.bf16.mxu1 %vm442_vm0, %v1269_v31 }
  0x4d   :  { %612 = vmatmul.mubr.bf16.gmra.mrb[20].mxu0 %v1271_v32  ;;  %740 = vmatmul.mubr.bf16.gmra.mrb[20].mxu1 %v1272_v33 }
  0x4e   :  { %1181 = vmatprep.mubr.msk.bf16.mxu0 %vm442_vm0, %v1273_v34  ;;  %1197 = vmatprep.mubr.msk.bf16.mxu1 %vm442_vm0, %v1275_v35 }
  0x55   :  { %620 = vmatmul.mubr.bf16.gmra.mrb[24].mxu0 %v1277_v36  ;;  %748 = vmatmul.mubr.bf16.gmra.mrb[24].mxu1 %v1278_v37 }
  0x56   :  { %1182 = vmatprep.mubr.msk.bf16.mxu0 %vm442_vm0, %v1279_v38  ;;  %1198 = vmatprep.mubr.msk.bf16.mxu1 %vm442_vm0, %v1281_v39 }
  0x5d   :  { %628 = vmatmul.mubr.bf16.gmra.mrb[28].mxu0 %v1283_v40  ;;  %756 = vmatmul.mubr.bf16.gmra.mrb[28].mxu1 %v1284_v41 }
  0x5e   :  { %1183 = vmatprep.mubr.msk.bf16.mxu0 %vm442_vm0, %v1285_v42  ;;  %1199 = vmatprep.mubr.msk.bf16.mxu1 %vm442_vm0, %v1287_v43 }
  0x65   :  { %636 = vmatmul.mubr.bf16.gmra.mrb[32].mxu0 %v1289_v44  ;;  %764 = vmatmul.mubr.bf16.gmra.mrb[32].mxu1 %v1290_v45 }
  0x66   :  { %1184 = vmatprep.mubr.msk.bf16.mxu0 %vm442_vm0, %v1291_v46  ;;  %1200 = vmatprep.mubr.msk.bf16.mxu1 %vm442_vm0, %v1293_v47 }
  0x6d   :  { %644 = vmatmul.mubr.bf16.gmra.mrb[36].mxu0 %v1295_v48  ;;  %772 = vmatmul.mubr.bf16.gmra.mrb[36].mxu1 %v1296_v49 }
  0x6e   :  { %1185 = vmatprep.mubr.msk.bf16.mxu0 %vm442_vm0, %v1297_v50  ;;  %1201 = vmatprep.mubr.msk.bf16.mxu1 %vm442_vm0, %v1299_v51 }
  0x75   :  { %652 = vmatmul.mubr.bf16.gmra.mrb[40].mxu0 %v1301_v52  ;;  %780 = vmatmul.mubr.bf16.gmra.mrb[40].mxu1 %v1302_v53 }
  0x76   :  { %1186 = vmatprep.mubr.msk.bf16.mxu0 %vm442_vm0, %v1303_v54  ;;  %1202 = vmatprep.mubr.msk.bf16.mxu1 %vm442_vm0, %v1305_v55 }
  0x7d   :  { %660 = vmatmul.mubr.bf16.gmra.mrb[44].mxu0 %v1307_v56  ;;  %788 = vmatmul.mubr.bf16.gmra.mrb[44].mxu1 %v1308_v57 }
  0x7e   :  { %1187 = vmatprep.mubr.msk.bf16.mxu0 %vm442_vm0, %v1309_v58  ;;  %1203 = vmatprep.mubr.msk.bf16.mxu1 %vm442_vm0, %v1311_v59 }
  0x85   :  { %668 = vmatmul.mubr.bf16.gmra.mrb[48].mxu0 %v1313_v60  ;;  %796 = vmatmul.mubr.bf16.gmra.mrb[48].mxu1 %v1314_v61 }
  0x86   :  { %1188 = vmatprep.mubr.msk.bf16.mxu0 %vm442_vm0, %v1315_v62  ;;  %1204 = vmatprep.mubr.msk.bf16.mxu1 %vm442_vm0, %v1317_v63 }
  0x8d   :  { %676 = vmatmul.mubr.bf16.gmra.mrb[52].mxu0 %v1319_v0  ;;  %804 = vmatmul.mubr.bf16.gmra.mrb[52].mxu1 %v1320_v1 }
  0x8e   :  { %1189 = vmatprep.mubr.msk.bf16.mxu0 %vm442_vm0, %v1321_v2  ;;  %1205 = vmatprep.mubr.msk.bf16.mxu1 %vm442_vm0, %v1323_v3 }
  0x95   :  { %684 = vmatmul.mubr.bf16.gmra.mrb[56].mxu0 %v1325_v4  ;;  %812 = vmatmul.mubr.bf16.gmra.mrb[56].mxu1 %v1326_v5 }
  0x96   :  { %1190 = vmatprep.mubr.msk.bf16.mxu0 %vm442_vm0, %v1327_v6  ;;  %1206 = vmatprep.mubr.msk.bf16.mxu1 %vm442_vm0, %v1329_v7 }
  0x9d   :  { %692 = vmatmul.mubr.bf16.gmra.mrb[60].mxu0 %v1331_v8  ;;  %820 = vmatmul.mubr.bf16.gmra.mrb[60].mxu1 %v1332_v9 }
  0xf8   :  { %v573_v11 = vpop.f32.mrb[0].mxu0  ;;  %v701_v13 = vpop.f32.mrb[0].mxu1 }
  0xf9   :  { %v835_v14 = vmul.f32 %v1613_v10, %v573_v11  ;;  %v867_v15 = vmul.f32 %v1613_v10, %v701_v13  ;;  %v575_v16 = vpop.f32.mrb[1].mxu0  ;;  %v703_v17 = vpop.f32.mrb[1].mxu1 }
  0xfa   :  { %v576_v18 = vpop.f32.mrb[2].mxu0  ;;  %v704_v19 = vpop.f32.mrb[2].mxu1 }
  0xfb   :  { %v906_v20 = vadd.f32 %v1618_v12, %v835_v14  ;;  %v938_v21 = vadd.f32 %v1618_v12, %v867_v15  ;;  %v836_v22 = vmul.f32 %v1613_v10, %v576_v18  ;;  %v868_v23 = vmul.f32 %v1613_v10, %v704_v19  ;;  %v578_v24 = vpop.f32.mrb[3].mxu0  ;;  %v706_v25 = vpop.f32.mrb[3].mxu1 }
  0xfd   :  { %v970_v26 = vmax.f32 %v906_v20, 0.0  ;;  %v1002_v27 = vmax.f32 %v938_v21, 0.0  ;;  %v907_v28 = vadd.f32 %v1618_v12, %v836_v22  ;;  %v939_v29 = vadd.f32 %v1618_v12, %v868_v23 }
  0xff   :  { %1034 = vst.msk [vmem:[%s2008_s4] sm:$0xff] %vm442_vm0, %v970_v26  ;;  %1066 = vst.msk [vmem:[%s2008_s4 + $0x100] sm:$0xff] %vm442_vm0, %v1002_v27  ;;  %v971_v30 = vmax.f32 %v907_v28, 0.0  ;;  %v1003_v31 = vmax.f32 %v939_v29, 0.0 }
 0x100   :  { %v581_v32 = vpop.f32.mrb[4].mxu0  ;;  %v709_v33 = vpop.f32.mrb[4].mxu1 }
 0x101   :  { %1035 = vst.msk [vmem:[%s2008_s4 + $0x8] sm:$0xff] %vm442_vm0, %v971_v30  ;;  %1067 = vst.msk [vmem:[%s2008_s4 + $0x108] sm:$0xff] %vm442_vm0, %v1003_v31  ;;  %v837_v34 = vmul.f32 %v1613_v10, %v581_v32  ;;  %v869_v35 = vmul.f32 %v1613_v10, %v709_v33  ;;  %v583_v36 = vpop.f32.mrb[5].mxu0  ;;  %v711_v37 = vpop.f32.mrb[5].mxu1 }
 0x102   :  { %v584_v38 = vpop.f32.mrb[6].mxu0  ;;  %v712_v39 = vpop.f32.mrb[6].mxu1 }
 0x103   :  { %v908_v40 = vadd.f32 %v1618_v12, %v837_v34  ;;  %v940_v41 = vadd.f32 %v1618_v12, %v869_v35  ;;  %v838_v42 = vmul.f32 %v1613_v10, %v584_v38  ;;  %v870_v43 = vmul.f32 %v1613_v10, %v712_v39  ;;  %v586_v44 = vpop.f32.mrb[7].mxu0  ;;  %v714_v45 = vpop.f32.mrb[7].mxu1 }
 0x105   :  { %v972_v46 = vmax.f32 %v908_v40, 0.0  ;;  %v1004_v47 = vmax.f32 %v940_v41, 0.0  ;;  %v909_v48 = vadd.f32 %v1618_v12, %v838_v42  ;;  %v941_v49 = vadd.f32 %v1618_v12, %v870_v43 }
 0x107   :  { %1036 = vst.msk [vmem:[%s2008_s4 + $0x10] sm:$0xff] %vm442_vm0, %v972_v46  ;;  %1068 = vst.msk [vmem:[%s2008_s4 + $0x110] sm:$0xff] %vm442_vm0, %v1004_v47  ;;  %v973_v50 = vmax.f32 %v909_v48, 0.0  ;;  %v1005_v51 = vmax.f32 %v941_v49, 0.0 }
 0x108   :  { %v589_v52 = vpop.f32.mrb[8].mxu0  ;;  %v717_v53 = vpop.f32.mrb[8].mxu1 }
 0x109   :  { %1037 = vst.msk [vmem:[%s2008_s4 + $0x18] sm:$0xff] %vm442_vm0, %v973_v50  ;;  %1069 = vst.msk [vmem:[%s2008_s4 + $0x118] sm:$0xff] %vm442_vm0, %v1005_v51  ;;  %v839_v54 = vmul.f32 %v1613_v10, %v589_v52  ;;  %v871_v55 = vmul.f32 %v1613_v10, %v717_v53  ;;  %v591_v56 = vpop.f32.mrb[9].mxu0  ;;  %v719_v57 = vpop.f32.mrb[9].mxu1 }
 0x10a   :  { %v592_v58 = vpop.f32.mrb[10].mxu0  ;;  %v720_v59 = vpop.f32.mrb[10].mxu1 }
 0x10b   :  { %v910_v60 = vadd.f32 %v1618_v12, %v839_v54  ;;  %v942_v61 = vadd.f32 %v1618_v12, %v871_v55  ;;  %v840_v62 = vmul.f32 %v1613_v10, %v592_v58  ;;  %v872_v63 = vmul.f32 %v1613_v10, %v720_v59  ;;  %v594_v0 = vpop.f32.mrb[11].mxu0  ;;  %v722_v1 = vpop.f32.mrb[11].mxu1 }
 0x10d   :  { %v974_v2 = vmax.f32 %v910_v60, 0.0  ;;  %v1006_v3 = vmax.f32 %v942_v61, 0.0  ;;  %v911_v4 = vadd.f32 %v1618_v12, %v840_v62  ;;  %v943_v5 = vadd.f32 %v1618_v12, %v872_v63 }
 0x10f   :  { %1038 = vst.msk [vmem:[%s2008_s4 + $0x20] sm:$0xff] %vm442_vm0, %v974_v2  ;;  %1070 = vst.msk [vmem:[%s2008_s4 + $0x120] sm:$0xff] %vm442_vm0, %v1006_v3  ;;  %v975_v6 = vmax.f32 %v911_v4, 0.0  ;;  %v1007_v7 = vmax.f32 %v943_v5, 0.0 }
 0x110   :  { %v597_v8 = vpop.f32.mrb[12].mxu0  ;;  %v725_v9 = vpop.f32.mrb[12].mxu1 }
 0x111   :  { %1039 = vst.msk [vmem:[%s2008_s4 + $0x28] sm:$0xff] %vm442_vm0, %v975_v6  ;;  %1071 = vst.msk [vmem:[%s2008_s4 + $0x128] sm:$0xff] %vm442_vm0, %v1007_v7  ;;  %v841_v11 = vmul.f32 %v1613_v10, %v597_v8  ;;  %v873_v13 = vmul.f32 %v1613_v10, %v725_v9  ;;  %v599_v14 = vpop.f32.mrb[13].mxu0  ;;  %v727_v15 = vpop.f32.mrb[13].mxu1 }
 0x112   :  { %v600_v16 = vpop.f32.mrb[14].mxu0  ;;  %v728_v17 = vpop.f32.mrb[14].mxu1 }
 0x113   :  { %v912_v18 = vadd.f32 %v1618_v12, %v841_v11  ;;  %v944_v19 = vadd.f32 %v1618_v12, %v873_v13  ;;  %v842_v20 = vmul.f32 %v1613_v10, %v600_v16  ;;  %v874_v21 = vmul.f32 %v1613_v10, %v728_v17  ;;  %v602_v22 = vpop.f32.mrb[15].mxu0  ;;  %v730_v23 = vpop.f32.mrb[15].mxu1 }
 0x115   :  { %v976_v24 = vmax.f32 %v912_v18, 0.0  ;;  %v1008_v25 = vmax.f32 %v944_v19, 0.0  ;;  %v913_v26 = vadd.f32 %v1618_v12, %v842_v20  ;;  %v945_v27 = vadd.f32 %v1618_v12, %v874_v21 }
 0x117   :  { %1040 = vst.msk [vmem:[%s2008_s4 + $0x30] sm:$0xff] %vm442_vm0, %v976_v24  ;;  %1072 = vst.msk [vmem:[%s2008_s4 + $0x130] sm:$0xff] %vm442_vm0, %v1008_v25  ;;  %v977_v28 = vmax.f32 %v913_v26, 0.0  ;;  %v1009_v29 = vmax.f32 %v945_v27, 0.0 }
 0x118   :  { %v605_v30 = vpop.f32.mrb[16].mxu0  ;;  %v733_v31 = vpop.f32.mrb[16].mxu1 }
 0x119   :  { %1041 = vst.msk [vmem:[%s2008_s4 + $0x38] sm:$0xff] %vm442_vm0, %v977_v28  ;;  %1073 = vst.msk [vmem:[%s2008_s4 + $0x138] sm:$0xff] %vm442_vm0, %v1009_v29  ;;  %v843_v32 = vmul.f32 %v1613_v10, %v605_v30  ;;  %v875_v33 = vmul.f32 %v1613_v10, %v733_v31  ;;  %v607_v34 = vpop.f32.mrb[17].mxu0  ;;  %v735_v35 = vpop.f32.mrb[17].mxu1 }
 0x11a   :  { %v608_v36 = vpop.f32.mrb[18].mxu0  ;;  %v736_v37 = vpop.f32.mrb[18].mxu1 }
 0x11b   :  { %v914_v38 = vadd.f32 %v1618_v12, %v843_v32  ;;  %v946_v39 = vadd.f32 %v1618_v12, %v875_v33  ;;  %v844_v40 = vmul.f32 %v1613_v10, %v608_v36  ;;  %v876_v41 = vmul.f32 %v1613_v10, %v736_v37  ;;  %v610_v42 = vpop.f32.mrb[19].mxu0  ;;  %v738_v43 = vpop.f32.mrb[19].mxu1 }
 0x11d   :  { %v978_v44 = vmax.f32 %v914_v38, 0.0  ;;  %v1010_v45 = vmax.f32 %v946_v39, 0.0  ;;  %v915_v46 = vadd.f32 %v1618_v12, %v844_v40  ;;  %v947_v47 = vadd.f32 %v1618_v12, %v876_v41 }
 0x11f   :  { %1042 = vst.msk [vmem:[%s2008_s4 + $0x40] sm:$0xff] %vm442_vm0, %v978_v44  ;;  %1074 = vst.msk [vmem:[%s2008_s4 + $0x140] sm:$0xff] %vm442_vm0, %v1010_v45  ;;  %v979_v48 = vmax.f32 %v915_v46, 0.0  ;;  %v1011_v49 = vmax.f32 %v947_v47, 0.0 }
 0x120   :  { %v613_v50 = vpop.f32.mrb[20].mxu0  ;;  %v741_v51 = vpop.f32.mrb[20].mxu1 }
 0x121   :  { %1043 = vst.msk [vmem:[%s2008_s4 + $0x48] sm:$0xff] %vm442_vm0, %v979_v48  ;;  %1075 = vst.msk [vmem:[%s2008_s4 + $0x148] sm:$0xff] %vm442_vm0, %v1011_v49  ;;  %v845_v52 = vmul.f32 %v1613_v10, %v613_v50  ;;  %v877_v53 = vmul.f32 %v1613_v10, %v741_v51  ;;  %v615_v54 = vpop.f32.mrb[21].mxu0  ;;  %v743_v55 = vpop.f32.mrb[21].mxu1 }
 0x122   :  { %v616_v56 = vpop.f32.mrb[22].mxu0  ;;  %v744_v57 = vpop.f32.mrb[22].mxu1 }
 0x123   :  { %v916_v58 = vadd.f32 %v1618_v12, %v845_v52  ;;  %v948_v59 = vadd.f32 %v1618_v12, %v877_v53  ;;  %v846_v60 = vmul.f32 %v1613_v10, %v616_v56  ;;  %v878_v61 = vmul.f32 %v1613_v10, %v744_v57  ;;  %v618_v62 = vpop.f32.mrb[23].mxu0  ;;  %v746_v63 = vpop.f32.mrb[23].mxu1 }
 0x125   :  { %v980_v0 = vmax.f32 %v916_v58, 0.0  ;;  %v1012_v1 = vmax.f32 %v948_v59, 0.0  ;;  %v917_v2 = vadd.f32 %v1618_v12, %v846_v60  ;;  %v949_v3 = vadd.f32 %v1618_v12, %v878_v61 }
 0x127   :  { %1044 = vst.msk [vmem:[%s2008_s4 + $0x50] sm:$0xff] %vm442_vm0, %v980_v0  ;;  %1076 = vst.msk [vmem:[%s2008_s4 + $0x150] sm:$0xff] %vm442_vm0, %v1012_v1  ;;  %v981_v4 = vmax.f32 %v917_v2, 0.0  ;;  %v1013_v5 = vmax.f32 %v949_v3, 0.0 }
 0x128   :  { %v621_v6 = vpop.f32.mrb[24].mxu0  ;;  %v749_v7 = vpop.f32.mrb[24].mxu1 }
 0x129   :  { %1045 = vst.msk [vmem:[%s2008_s4 + $0x58] sm:$0xff] %vm442_vm0, %v981_v4  ;;  %1077 = vst.msk [vmem:[%s2008_s4 + $0x158] sm:$0xff] %vm442_vm0, %v1013_v5  ;;  %v847_v8 = vmul.f32 %v1613_v10, %v621_v6  ;;  %v879_v9 = vmul.f32 %v1613_v10, %v749_v7  ;;  %v623_v11 = vpop.f32.mrb[25].mxu0  ;;  %v751_v13 = vpop.f32.mrb[25].mxu1 }
 0x12a   :  { %v624_v14 = vpop.f32.mrb[26].mxu0  ;;  %v752_v15 = vpop.f32.mrb[26].mxu1 }
 0x12b   :  { %v918_v16 = vadd.f32 %v1618_v12, %v847_v8  ;;  %v950_v17 = vadd.f32 %v1618_v12, %v879_v9  ;;  %v848_v18 = vmul.f32 %v1613_v10, %v624_v14  ;;  %v880_v19 = vmul.f32 %v1613_v10, %v752_v15  ;;  %v626_v20 = vpop.f32.mrb[27].mxu0  ;;  %v754_v21 = vpop.f32.mrb[27].mxu1 }
 0x12d   :  { %v982_v22 = vmax.f32 %v918_v16, 0.0  ;;  %v1014_v23 = vmax.f32 %v950_v17, 0.0  ;;  %v919_v24 = vadd.f32 %v1618_v12, %v848_v18  ;;  %v951_v25 = vadd.f32 %v1618_v12, %v880_v19 }
 0x12f   :  { %1046 = vst.msk [vmem:[%s2008_s4 + $0x60] sm:$0xff] %vm442_vm0, %v982_v22  ;;  %1078 = vst.msk [vmem:[%s2008_s4 + $0x160] sm:$0xff] %vm442_vm0, %v1014_v23  ;;  %v983_v26 = vmax.f32 %v919_v24, 0.0  ;;  %v1015_v27 = vmax.f32 %v951_v25, 0.0 }
 0x130   :  { %v629_v28 = vpop.f32.mrb[28].mxu0  ;;  %v757_v29 = vpop.f32.mrb[28].mxu1 }
 0x131   :  { %1047 = vst.msk [vmem:[%s2008_s4 + $0x68] sm:$0xff] %vm442_vm0, %v983_v26  ;;  %1079 = vst.msk [vmem:[%s2008_s4 + $0x168] sm:$0xff] %vm442_vm0, %v1015_v27  ;;  %v849_v30 = vmul.f32 %v1613_v10, %v629_v28  ;;  %v881_v31 = vmul.f32 %v1613_v10, %v757_v29  ;;  %v631_v32 = vpop.f32.mrb[29].mxu0  ;;  %v759_v33 = vpop.f32.mrb[29].mxu1 }
 0x132   :  { %v632_v34 = vpop.f32.mrb[30].mxu0  ;;  %v760_v35 = vpop.f32.mrb[30].mxu1 }
 0x133   :  { %v920_v36 = vadd.f32 %v1618_v12, %v849_v30  ;;  %v952_v37 = vadd.f32 %v1618_v12, %v881_v31  ;;  %v850_v38 = vmul.f32 %v1613_v10, %v632_v34  ;;  %v882_v39 = vmul.f32 %v1613_v10, %v760_v35  ;;  %v634_v40 = vpop.f32.mrb[31].mxu0  ;;  %v762_v41 = vpop.f32.mrb[31].mxu1 }
 0x135   :  { %v984_v42 = vmax.f32 %v920_v36, 0.0  ;;  %v1016_v43 = vmax.f32 %v952_v37, 0.0  ;;  %v921_v44 = vadd.f32 %v1618_v12, %v850_v38  ;;  %v953_v45 = vadd.f32 %v1618_v12, %v882_v39 }
 0x137   :  { %1048 = vst.msk [vmem:[%s2008_s4 + $0x70] sm:$0xff] %vm442_vm0, %v984_v42  ;;  %1080 = vst.msk [vmem:[%s2008_s4 + $0x170] sm:$0xff] %vm442_vm0, %v1016_v43  ;;  %v985_v46 = vmax.f32 %v921_v44, 0.0  ;;  %v1017_v47 = vmax.f32 %v953_v45, 0.0 }
 0x138   :  { %v637_v48 = vpop.f32.mrb[32].mxu0  ;;  %v765_v49 = vpop.f32.mrb[32].mxu1 }
 0x139   :  { %1049 = vst.msk [vmem:[%s2008_s4 + $0x78] sm:$0xff] %vm442_vm0, %v985_v46  ;;  %1081 = vst.msk [vmem:[%s2008_s4 + $0x178] sm:$0xff] %vm442_vm0, %v1017_v47  ;;  %v851_v50 = vmul.f32 %v1613_v10, %v637_v48  ;;  %v883_v51 = vmul.f32 %v1613_v10, %v765_v49  ;;  %v639_v52 = vpop.f32.mrb[33].mxu0  ;;  %v767_v53 = vpop.f32.mrb[33].mxu1 }
 0x13a   :  { %v640_v54 = vpop.f32.mrb[34].mxu0  ;;  %v768_v55 = vpop.f32.mrb[34].mxu1 }
 0x13b   :  { %v922_v56 = vadd.f32 %v1618_v12, %v851_v50  ;;  %v954_v57 = vadd.f32 %v1618_v12, %v883_v51  ;;  %v852_v58 = vmul.f32 %v1613_v10, %v640_v54  ;;  %v884_v59 = vmul.f32 %v1613_v10, %v768_v55  ;;  %v642_v60 = vpop.f32.mrb[35].mxu0  ;;  %v770_v61 = vpop.f32.mrb[35].mxu1 }
 0x13d   :  { %v986_v62 = vmax.f32 %v922_v56, 0.0  ;;  %v1018_v63 = vmax.f32 %v954_v57, 0.0  ;;  %v923_v0 = vadd.f32 %v1618_v12, %v852_v58  ;;  %v955_v1 = vadd.f32 %v1618_v12, %v884_v59 }
 0x13f   :  { %1050 = vst.msk [vmem:[%s2008_s4 + $0x80] sm:$0xff] %vm442_vm0, %v986_v62  ;;  %1082 = vst.msk [vmem:[%s2008_s4 + $0x180] sm:$0xff] %vm442_vm0, %v1018_v63  ;;  %v987_v2 = vmax.f32 %v923_v0, 0.0  ;;  %v1019_v3 = vmax.f32 %v955_v1, 0.0 }
 0x140   :  { %v645_v4 = vpop.f32.mrb[36].mxu0  ;;  %v773_v5 = vpop.f32.mrb[36].mxu1 }
 0x141   :  { %1051 = vst.msk [vmem:[%s2008_s4 + $0x88] sm:$0xff] %vm442_vm0, %v987_v2  ;;  %1083 = vst.msk [vmem:[%s2008_s4 + $0x188] sm:$0xff] %vm442_vm0, %v1019_v3  ;;  %v853_v6 = vmul.f32 %v1613_v10, %v645_v4  ;;  %v885_v7 = vmul.f32 %v1613_v10, %v773_v5  ;;  %v647_v8 = vpop.f32.mrb[37].mxu0  ;;  %v775_v9 = vpop.f32.mrb[37].mxu1 }
 0x142   :  { %v648_v11 = vpop.f32.mrb[38].mxu0  ;;  %v776_v13 = vpop.f32.mrb[38].mxu1 }
 0x143   :  { %v924_v14 = vadd.f32 %v1618_v12, %v853_v6  ;;  %v956_v15 = vadd.f32 %v1618_v12, %v885_v7  ;;  %v854_v16 = vmul.f32 %v1613_v10, %v648_v11  ;;  %v886_v17 = vmul.f32 %v1613_v10, %v776_v13  ;;  %v650_v18 = vpop.f32.mrb[39].mxu0  ;;  %v778_v19 = vpop.f32.mrb[39].mxu1 }
 0x145   :  { %v988_v20 = vmax.f32 %v924_v14, 0.0  ;;  %v1020_v21 = vmax.f32 %v956_v15, 0.0  ;;  %v925_v22 = vadd.f32 %v1618_v12, %v854_v16  ;;  %v957_v23 = vadd.f32 %v1618_v12, %v886_v17 }
 0x147   :  { %1052 = vst.msk [vmem:[%s2008_s4 + $0x90] sm:$0xff] %vm442_vm0, %v988_v20  ;;  %1084 = vst.msk [vmem:[%s2008_s4 + $0x190] sm:$0xff] %vm442_vm0, %v1020_v21  ;;  %v989_v24 = vmax.f32 %v925_v22, 0.0  ;;  %v1021_v25 = vmax.f32 %v957_v23, 0.0 }
 0x148   :  { %v653_v26 = vpop.f32.mrb[40].mxu0  ;;  %v781_v27 = vpop.f32.mrb[40].mxu1 }
 0x149   :  { %1053 = vst.msk [vmem:[%s2008_s4 + $0x98] sm:$0xff] %vm442_vm0, %v989_v24  ;;  %1085 = vst.msk [vmem:[%s2008_s4 + $0x198] sm:$0xff] %vm442_vm0, %v1021_v25  ;;  %v855_v28 = vmul.f32 %v1613_v10, %v653_v26  ;;  %v887_v29 = vmul.f32 %v1613_v10, %v781_v27  ;;  %v655_v30 = vpop.f32.mrb[41].mxu0  ;;  %v783_v31 = vpop.f32.mrb[41].mxu1 }
 0x14a   :  { %v656_v32 = vpop.f32.mrb[42].mxu0  ;;  %v784_v33 = vpop.f32.mrb[42].mxu1 }
 0x14b   :  { %v926_v34 = vadd.f32 %v1618_v12, %v855_v28  ;;  %v958_v35 = vadd.f32 %v1618_v12, %v887_v29  ;;  %v856_v36 = vmul.f32 %v1613_v10, %v656_v32  ;;  %v888_v37 = vmul.f32 %v1613_v10, %v784_v33  ;;  %v658_v38 = vpop.f32.mrb[43].mxu0  ;;  %v786_v39 = vpop.f32.mrb[43].mxu1 }
 0x14d   :  { %v990_v40 = vmax.f32 %v926_v34, 0.0  ;;  %v1022_v41 = vmax.f32 %v958_v35, 0.0  ;;  %v927_v42 = vadd.f32 %v1618_v12, %v856_v36  ;;  %v959_v43 = vadd.f32 %v1618_v12, %v888_v37 }
 0x14f   :  { %1054 = vst.msk [vmem:[%s2008_s4 + $0xa0] sm:$0xff] %vm442_vm0, %v990_v40  ;;  %1086 = vst.msk [vmem:[%s2008_s4 + $0x1a0] sm:$0xff] %vm442_vm0, %v1022_v41  ;;  %v991_v44 = vmax.f32 %v927_v42, 0.0  ;;  %v1023_v45 = vmax.f32 %v959_v43, 0.0 }
 0x150   :  { %v661_v46 = vpop.f32.mrb[44].mxu0  ;;  %v789_v47 = vpop.f32.mrb[44].mxu1 }
 0x151   :  { %1055 = vst.msk [vmem:[%s2008_s4 + $0xa8] sm:$0xff] %vm442_vm0, %v991_v44  ;;  %1087 = vst.msk [vmem:[%s2008_s4 + $0x1a8] sm:$0xff] %vm442_vm0, %v1023_v45  ;;  %v857_v48 = vmul.f32 %v1613_v10, %v661_v46  ;;  %v889_v49 = vmul.f32 %v1613_v10, %v789_v47  ;;  %v663_v50 = vpop.f32.mrb[45].mxu0  ;;  %v791_v51 = vpop.f32.mrb[45].mxu1 }
 0x152   :  { %v664_v52 = vpop.f32.mrb[46].mxu0  ;;  %v792_v53 = vpop.f32.mrb[46].mxu1 }
 0x153   :  { %v928_v54 = vadd.f32 %v1618_v12, %v857_v48  ;;  %v960_v55 = vadd.f32 %v1618_v12, %v889_v49  ;;  %v858_v56 = vmul.f32 %v1613_v10, %v664_v52  ;;  %v890_v57 = vmul.f32 %v1613_v10, %v792_v53  ;;  %v666_v58 = vpop.f32.mrb[47].mxu0  ;;  %v794_v59 = vpop.f32.mrb[47].mxu1 }
 0x155   :  { %v992_v60 = vmax.f32 %v928_v54, 0.0  ;;  %v1024_v61 = vmax.f32 %v960_v55, 0.0  ;;  %v929_v62 = vadd.f32 %v1618_v12, %v858_v56  ;;  %v961_v63 = vadd.f32 %v1618_v12, %v890_v57 }
 0x157   :  { %1056 = vst.msk [vmem:[%s2008_s4 + $0xb0] sm:$0xff] %vm442_vm0, %v992_v60  ;;  %1088 = vst.msk [vmem:[%s2008_s4 + $0x1b0] sm:$0xff] %vm442_vm0, %v1024_v61  ;;  %v993_v0 = vmax.f32 %v929_v62, 0.0  ;;  %v1025_v1 = vmax.f32 %v961_v63, 0.0 }
 0x158   :  { %v669_v2 = vpop.f32.mrb[48].mxu0  ;;  %v797_v3 = vpop.f32.mrb[48].mxu1 }
 0x159   :  { %1057 = vst.msk [vmem:[%s2008_s4 + $0xb8] sm:$0xff] %vm442_vm0, %v993_v0  ;;  %1089 = vst.msk [vmem:[%s2008_s4 + $0x1b8] sm:$0xff] %vm442_vm0, %v1025_v1  ;;  %v859_v4 = vmul.f32 %v1613_v10, %v669_v2  ;;  %v891_v5 = vmul.f32 %v1613_v10, %v797_v3  ;;  %v671_v6 = vpop.f32.mrb[49].mxu0  ;;  %v799_v7 = vpop.f32.mrb[49].mxu1 }
 0x15a   :  { %v672_v8 = vpop.f32.mrb[50].mxu0  ;;  %v800_v9 = vpop.f32.mrb[50].mxu1 }
 0x15b   :  { %v930_v11 = vadd.f32 %v1618_v12, %v859_v4  ;;  %v962_v13 = vadd.f32 %v1618_v12, %v891_v5  ;;  %v860_v14 = vmul.f32 %v1613_v10, %v672_v8  ;;  %v892_v15 = vmul.f32 %v1613_v10, %v800_v9  ;;  %v674_v16 = vpop.f32.mrb[51].mxu0  ;;  %v802_v17 = vpop.f32.mrb[51].mxu1 }
 0x15d   :  { %v994_v18 = vmax.f32 %v930_v11, 0.0  ;;  %v1026_v19 = vmax.f32 %v962_v13, 0.0  ;;  %v931_v20 = vadd.f32 %v1618_v12, %v860_v14  ;;  %v963_v21 = vadd.f32 %v1618_v12, %v892_v15 }
 0x15f   :  { %1058 = vst.msk [vmem:[%s2008_s4 + $0xc0] sm:$0xff] %vm442_vm0, %v994_v18  ;;  %1090 = vst.msk [vmem:[%s2008_s4 + $0x1c0] sm:$0xff] %vm442_vm0, %v1026_v19  ;;  %v995_v22 = vmax.f32 %v931_v20, 0.0  ;;  %v1027_v23 = vmax.f32 %v963_v21, 0.0 }
 0x160   :  { %v677_v24 = vpop.f32.mrb[52].mxu0  ;;  %v805_v25 = vpop.f32.mrb[52].mxu1 }
 0x161   :  { %1059 = vst.msk [vmem:[%s2008_s4 + $0xc8] sm:$0xff] %vm442_vm0, %v995_v22  ;;  %1091 = vst.msk [vmem:[%s2008_s4 + $0x1c8] sm:$0xff] %vm442_vm0, %v1027_v23  ;;  %v861_v26 = vmul.f32 %v1613_v10, %v677_v24  ;;  %v893_v27 = vmul.f32 %v1613_v10, %v805_v25  ;;  %v679_v28 = vpop.f32.mrb[53].mxu0  ;;  %v807_v29 = vpop.f32.mrb[53].mxu1 }
 0x162   :  { %v680_v30 = vpop.f32.mrb[54].mxu0  ;;  %v808_v31 = vpop.f32.mrb[54].mxu1 }
 0x163   :  { %v932_v32 = vadd.f32 %v1618_v12, %v861_v26  ;;  %v964_v33 = vadd.f32 %v1618_v12, %v893_v27  ;;  %v862_v34 = vmul.f32 %v1613_v10, %v680_v30  ;;  %v894_v35 = vmul.f32 %v1613_v10, %v808_v31  ;;  %v682_v36 = vpop.f32.mrb[55].mxu0  ;;  %v810_v37 = vpop.f32.mrb[55].mxu1 }
 0x165   :  { %v996_v38 = vmax.f32 %v932_v32, 0.0  ;;  %v1028_v39 = vmax.f32 %v964_v33, 0.0  ;;  %v933_v40 = vadd.f32 %v1618_v12, %v862_v34  ;;  %v965_v41 = vadd.f32 %v1618_v12, %v894_v35 }
 0x167   :  { %1060 = vst.msk [vmem:[%s2008_s4 + $0xd0] sm:$0xff] %vm442_vm0, %v996_v38  ;;  %1092 = vst.msk [vmem:[%s2008_s4 + $0x1d0] sm:$0xff] %vm442_vm0, %v1028_v39  ;;  %v997_v42 = vmax.f32 %v933_v40, 0.0  ;;  %v1029_v43 = vmax.f32 %v965_v41, 0.0 }
 0x168   :  { %v685_v44 = vpop.f32.mrb[56].mxu0  ;;  %v813_v45 = vpop.f32.mrb[56].mxu1 }
 0x169   :  { %1061 = vst.msk [vmem:[%s2008_s4 + $0xd8] sm:$0xff] %vm442_vm0, %v997_v42  ;;  %1093 = vst.msk [vmem:[%s2008_s4 + $0x1d8] sm:$0xff] %vm442_vm0, %v1029_v43  ;;  %v863_v46 = vmul.f32 %v1613_v10, %v685_v44  ;;  %v895_v47 = vmul.f32 %v1613_v10, %v813_v45  ;;  %v687_v48 = vpop.f32.mrb[57].mxu0  ;;  %v815_v49 = vpop.f32.mrb[57].mxu1 }
 0x16a   :  { %v688_v50 = vpop.f32.mrb[58].mxu0  ;;  %v816_v51 = vpop.f32.mrb[58].mxu1 }
 0x16b   :  { %v934_v52 = vadd.f32 %v1618_v12, %v863_v46  ;;  %v966_v53 = vadd.f32 %v1618_v12, %v895_v47  ;;  %v864_v54 = vmul.f32 %v1613_v10, %v688_v50  ;;  %v896_v55 = vmul.f32 %v1613_v10, %v816_v51  ;;  %v690_v56 = vpop.f32.mrb[59].mxu0  ;;  %v818_v57 = vpop.f32.mrb[59].mxu1 }
 0x16d   :  { %v998_v58 = vmax.f32 %v934_v52, 0.0  ;;  %v1030_v59 = vmax.f32 %v966_v53, 0.0  ;;  %v935_v60 = vadd.f32 %v1618_v12, %v864_v54  ;;  %v967_v61 = vadd.f32 %v1618_v12, %v896_v55 }
 0x16f   :  { %1062 = vst.msk [vmem:[%s2008_s4 + $0xe0] sm:$0xff] %vm442_vm0, %v998_v58  ;;  %1094 = vst.msk [vmem:[%s2008_s4 + $0x1e0] sm:$0xff] %vm442_vm0, %v1030_v59  ;;  %v999_v62 = vmax.f32 %v935_v60, 0.0  ;;  %v1031_v63 = vmax.f32 %v967_v61, 0.0 }
 0x170   :  { %v693_v0 = vpop.f32.mrb[60].mxu0  ;;  %v821_v1 = vpop.f32.mrb[60].mxu1 }
 0x171   :  { %1063 = vst.msk [vmem:[%s2008_s4 + $0xe8] sm:$0xff] %vm442_vm0, %v999_v62  ;;  %1095 = vst.msk [vmem:[%s2008_s4 + $0x1e8] sm:$0xff] %vm442_vm0, %v1031_v63  ;;  %v865_v2 = vmul.f32 %v1613_v10, %v693_v0  ;;  %v897_v3 = vmul.f32 %v1613_v10, %v821_v1  ;;  %v695_v4 = vpop.f32.mrb[61].mxu0  ;;  %v823_v5 = vpop.f32.mrb[61].mxu1 }
 0x172   :  { %v696_v6 = vpop.f32.mrb[62].mxu0  ;;  %v824_v7 = vpop.f32.mrb[62].mxu1 }
 0x173   :  { %v936_v8 = vadd.f32 %v1618_v12, %v865_v2  ;;  %v968_v9 = vadd.f32 %v1618_v12, %v897_v3  ;;  %v866_v11 = vmul.f32 %v1613_v10, %v696_v6  ;;  %v898_v13 = vmul.f32 %v1613_v10, %v824_v7  ;;  %v698_v14 = vpop.f32.mrb[63].mxu0  ;;  %v826_v15 = vpop.f32.mrb[63].mxu1 }
 0x175   :  { %v1000_v16 = vmax.f32 %v936_v8, 0.0  ;;  %v1032_v17 = vmax.f32 %v968_v9, 0.0  ;;  %v937_v18 = vadd.f32 %v1618_v12, %v866_v11  ;;  %v969_v19 = vadd.f32 %v1618_v12, %v898_v13 }
 0x177   :  { %1064 = vst.msk [vmem:[%s2008_s4 + $0xf0] sm:$0xff] %vm442_vm0, %v1000_v16  ;;  %1096 = vst.msk [vmem:[%s2008_s4 + $0x1f0] sm:$0xff] %vm442_vm0, %v1032_v17  ;;  %v1001_v20 = vmax.f32 %v937_v18, 0.0  ;;  %v1033_v10 = vmax.f32 %v969_v19, 0.0 }
 0x179   :  { %1065 = vst.msk [vmem:[%s2008_s4 + $0xf8] sm:$0xff] %vm442_vm0, %v1001_v20  ;;  %1097 = vst.msk [vmem:[%s2008_s4 + $0x1f8] sm:$0xff] %vm442_vm0, %v1033_v10 }

// kernel: _lambda_.18
= control target key start
LH: loop header
LB: loop body
LE: loop exit
PB: predicated region body
PF: predicated region fallthrough
CT: control target
= control target key end

     0   :  { %vm76_vm0 = vcmask 130048   ;;  %vm198_vm1 = vcmask 261120   ;;  %s388_s1 = inlined_call_operand.vmem [shape: bf16[16,32], index: 1, kind: input, shape index: {}]   ;;  %s389_s0 = inlined_call_operand.vmem [shape: bf16[128,16], index: 0, kind: input, shape index: {}]   ;;  %s390_s2 = inlined_call_operand.vmem [shape: f32[128,32], index: 2, kind: output, shape index: {}]  }
   0x1   :  { %v265_v0 = vld [vmem:[%s388_s1] sm:$0xff]   ;;  %v268_v3 = vld [vmem:[%s389_s0 + $0x8] sm:$0xff]   ;;  %v270_v5 = vld [vmem:[%s389_s0 + $0x10] sm:$0xff]  }
   0x2   :  { %v266_v1 = vld [vmem:[%s389_s0] sm:$0xff]   ;;  %245 = vmatprep.subr.bf16.mxu0 %v265_v0  ;;  %263 = vmatprep.subr.bf16.mxu1 %v265_v0  ;;  %v269_v4 = vld [vmem:[%s389_s0 + $0x28] sm:$0xff]   ;;  %v271_v6 = vld [vmem:[%s389_s0 + $0x30] sm:$0xff]  }
   0x3   :  { %v267_v2 = vld [vmem:[%s389_s0 + $0x20] sm:$0xff]   ;;  %246 = vmatpush3.bf16.msra.mxu0 %v265_v0  ;;  %264 = vmatpush3.bf16.msra.mxu1 %v265_v0  ;;  %v272_v7 = vld [vmem:[%s389_s0 + $0x18] sm:$0xff]  }
   0x4   :  { %247 = vmatprep.mubr.msk.bf16.mxu0 %vm76_vm0, %v266_v1  ;;  %255 = vmatprep.mubr.msk.bf16.mxu1 %vm76_vm0, %v267_v2  ;;  %v273_v8 = vld [vmem:[%s389_s0 + $0x38] sm:$0xff]  }
   0x6   :  { %248 = vmatmul.mubr.msk.bf16.vlgmr.msra.gmra.mrb[0].mxu0 %vm76_vm0, %v268_v3  ;;  %256 = vmatmul.mubr.msk.bf16.vlgmr.msra.gmra.mrb[0].mxu1 %vm76_vm0, %v269_v4 }
   0x7   :  { %251 = vmatprep.mubr.msk.bf16.mxu0 %vm76_vm0, %v270_v5  ;;  %259 = vmatprep.mubr.msk.bf16.mxu1 %vm76_vm0, %v271_v6 }
   0xe   :  { %252 = vmatmul.mubr.msk.bf16.gmra.mrb[4].mxu0 %vm76_vm0, %v272_v7  ;;  %260 = vmatmul.mubr.msk.bf16.gmra.mrb[4].mxu1 %vm76_vm0, %v273_v8 }
  0xd9   :  { %v249_v9 = vpop.f32.mrb[0].mxu0  ;;  %v257_v10 = vpop.f32.mrb[0].mxu1 }
  0xda   :  { %201 = vst.msk [vmem:[%s390_s2 + $0x10] sm:$0xff] %vm198_vm1, %v249_v9  ;;  %209 = vst.msk [vmem:[%s390_s2 + $0x50] sm:$0xff] %vm198_vm1, %v257_v10  ;;  %v135_v11 = vpop.f32.mrb[1].mxu0  ;;  %v167_v12 = vpop.f32.mrb[1].mxu1 }
  0xdb   :  { %199 = vst.msk [vmem:[%s390_s2] sm:$0xff] %vm198_vm1, %v135_v11  ;;  %207 = vst.msk [vmem:[%s390_s2 + $0x40] sm:$0xff] %vm198_vm1, %v167_v12  ;;  %v250_v13 = vpop.f32.mrb[2].mxu0  ;;  %v258_v14 = vpop.f32.mrb[2].mxu1 }
  0xdc   :  { %202 = vst.msk [vmem:[%s390_s2 + $0x18] sm:$0xff] %vm198_vm1, %v250_v13  ;;  %210 = vst.msk [vmem:[%s390_s2 + $0x58] sm:$0xff] %vm198_vm1, %v258_v14  ;;  %v138_v15 = vpop.f32.mrb[3].mxu0  ;;  %v170_v16 = vpop.f32.mrb[3].mxu1 }
  0xdd   :  { %200 = vst.msk [vmem:[%s390_s2 + $0x8] sm:$0xff] %vm198_vm1, %v138_v15  ;;  %208 = vst.msk [vmem:[%s390_s2 + $0x48] sm:$0xff] %vm198_vm1, %v170_v16 }
  0xe1   :  { %v253_v17 = vpop.f32.mrb[4].mxu0  ;;  %v261_v18 = vpop.f32.mrb[4].mxu1 }
  0xe2   :  { %205 = vst.msk [vmem:[%s390_s2 + $0x30] sm:$0xff] %vm198_vm1, %v253_v17  ;;  %213 = vst.msk [vmem:[%s390_s2 + $0x70] sm:$0xff] %vm198_vm1, %v261_v18  ;;  %v151_v19 = vpop.f32.mrb[5].mxu0  ;;  %v183_v20 = vpop.f32.mrb[5].mxu1 }
  0xe3   :  { %203 = vst.msk [vmem:[%s390_s2 + $0x20] sm:$0xff] %vm198_vm1, %v151_v19  ;;  %211 = vst.msk [vmem:[%s390_s2 + $0x60] sm:$0xff] %vm198_vm1, %v183_v20  ;;  %v254_v21 = vpop.f32.mrb[6].mxu0  ;;  %v262_v22 = vpop.f32.mrb[6].mxu1 }
  0xe4   :  { %206 = vst.msk [vmem:[%s390_s2 + $0x38] sm:$0xff] %vm198_vm1, %v254_v21  ;;  %214 = vst.msk [vmem:[%s390_s2 + $0x78] sm:$0xff] %vm198_vm1, %v262_v22  ;;  %v154_v23 = vpop.f32.mrb[7].mxu0  ;;  %v186_v24 = vpop.f32.mrb[7].mxu1 }
  0xe5   :  { %204 = vst.msk [vmem:[%s390_s2 + $0x28] sm:$0xff] %vm198_vm1, %v154_v23  ;;  %212 = vst.msk [vmem:[%s390_s2 + $0x68] sm:$0xff] %vm198_vm1, %v186_v24 }

// kernel: _lambda_.19
= control target key start
LH: loop header
LB: loop body
LE: loop exit
PB: predicated region body
PF: predicated region fallthrough
CT: control target
= control target key end

     0   :  { %s647_s15 = smov 0   ;;  %s724_s0 = inlined_call_operand.vmem [shape: bf16[2,64,144], index: 0, kind: input, shape index: {}]   ;;  %s725_s1 = inlined_call_operand.vmem [shape: bf16[2,144,64], index: 1, kind: input, shape index: {}]   ;;  %s726_s2 = inlined_call_operand.vmem [shape: f32[1,64], index: 2, kind: input, shape index: {}]   ;;  %s727_s3 = inlined_call_operand.vmem [shape: f32[1,64], index: 3, kind: input, shape index: {}]   ;;  %s728_s4 = inlined_call_operand.vmem [shape: f32[2,64,64], index: 4, kind: output, shape index: {}]  }
   0x1 LB: > { %s527_s16 = sadd.s32 4294967295, %s619_s15   ;;  %p531_p0 = scmp.ge.s32.totalorder %s619_s15, 1  ;;  %s619_s15 = sphi %s647_s15, %s14_s15  }
   0x2   : > { %p172_p1 = scmp.lt.s32.totalorder %s619_s15, 3 }
   0x4   : > { %p173_p2 = pnand %p531_p0, %p172_p1 }
   0x5   : > { %p203_p3 = scmp.lt.s32.totalorder (!%p173_p2), %s527_s16, 1  ;;  %v621_v0 = vmov (!%p173_p2), 0   ;;  %vm335_vm0 = vcmask (!%p173_p2), 130048   ;;  %v558_v18 = vld [vmem:[%s726_s2] ss:$0 sm:$0xff] (!%p173_p2)  ;;  %vm451_vm1 = vcmask (!%p173_p2), 523264  }
   0x6   : > { %176 = sbr.rel (%p173_p2) target bundleno = 282 (0x11a), region = 36  ;;  %348 = vmatprep.subr.bf16.mxu0 (!%p173_p2), %v621_v0  ;;  %564 = vmatprep.subr.bf16.mxu1 (!%p173_p2), %v621_v0  ;;  %v559_v20 = vld [vmem:[%s727_s3] ss:$0 sm:$0xff] (!%p173_p2) }
   0xd   : > { %s730_s16 = smov (!%p203_p3, %s527_s16), 1 }
   0xe   : > { %s582_s17 = smul.u32 72, %s730_s16  ;;  %s562_s18 = sshll.u32 %s730_s16, 6 }
   0xf   : > { %s664_s21 = scalar_lea.vmem %s724_s0, %s562_s18  ;;  %s703_s5 = scalar_lea.vmem %s728_s4, %s562_s18 }
  0x10   : > { %s669_s24 = scalar_lea.vmem %s725_s1, %s582_s17  ;;  %v603_v4 = vld [vmem:[%s664_s21 + $0x4] ss:$8 sps:$4 sm:$0xff]   ;;  %v601_v12 = vld [vmem:[%s664_s21] ss:$8 sps:$4 sm:$0xff]   ;;  %v607_v14 = vld [vmem:[%s664_s21 + $0x14] ss:$8 sps:$4 sm:$0xff]  }
  0x11   : > { %v592_v1 = vld [vmem:[%s669_s24] sm:$0xff]   ;;  %v593_v2 = vld [vmem:[%s669_s24 + $0x8] sm:$0xff]   ;;  %v594_v3 = vld [vmem:[%s669_s24 + $0x10] sm:$0xff]   ;;  %554 = vmatprep.mubr.msk.bf16.mxu0 %vm335_vm0, %v603_v4 }
  0x12   : > { %349 = vmatpush1.bf16.msra.mxu0 %v592_v1  ;;  %573 = vmatpush1.bf16.msra.mxu1 %v592_v1  ;;  %v595_v5 = vld [vmem:[%s669_s24 + $0x18] sm:$0xff]   ;;  %v606_v6 = vld [vmem:[%s664_s21 + $0x24] ss:$8 sps:$4 sm:$0xff]   ;;  %v598_v9 = vld [vmem:[%s669_s24 + $0x30] sm:$0xff]  }
  0x13   : > { %350 = vmatprep.subr.bf16.mxu0 %v621_v0  ;;  %565 = vmatprep.subr.bf16.mxu1 %v621_v0  ;;  %v596_v7 = vld [vmem:[%s669_s24 + $0x20] sm:$0xff]   ;;  %v597_v8 = vld [vmem:[%s669_s24 + $0x28] sm:$0xff]   ;;  %v599_v10 = vld [vmem:[%s669_s24 + $0x38] sm:$0xff]  }
  0x14   : > { %556 = vmatprep.mubr.msk.bf16.mxu1 %vm335_vm0, %v606_v6  ;;  %v600_v11 = vld [vmem:[%s669_s24 + $0x40] sm:$0xff]   ;;  %v609_v15 = vld [vmem:[%s664_s21 + $0x34] ss:$8 sps:$4 sm:$0xff]   ;;  %v611_v16 = vld [vmem:[%s664_s21 + $0x10] ss:$8 sps:$4 sm:$0xff]  }
  0x15   : > { %v604_v13 = vld [vmem:[%s664_s21 + $0x20] ss:$8 sps:$4 sm:$0xff]   ;;  %v612_v17 = vld [vmem:[%s664_s21 + $0x30] ss:$8 sps:$4 sm:$0xff]  }
  0x16   : > { %351 = vmatpush1.bf16.msra.mxu0 %v593_v2  ;;  %574 = vmatpush1.bf16.msra.mxu1 %v593_v2 }
  0x17   : > { %352 = vmatprep.subr.bf16.mxu0 %v621_v0  ;;  %566 = vmatprep.subr.bf16.mxu1 %v621_v0 }
  0x1a   : > { %353 = vmatpush1.bf16.msra.mxu0 %v594_v3  ;;  %575 = vmatpush1.bf16.msra.mxu1 %v594_v3 }
  0x1b   : > { %354 = vmatprep.subr.bf16.mxu0 %v621_v0  ;;  %567 = vmatprep.subr.bf16.mxu1 %v621_v0 }
  0x1e   : > { %355 = vmatpush1.bf16.msra.mxu0 %v595_v5  ;;  %576 = vmatpush1.bf16.msra.mxu1 %v595_v5 }
  0x1f   : > { %356 = vmatprep.subr.bf16.mxu0 %v621_v0  ;;  %568 = vmatprep.subr.bf16.mxu1 %v621_v0 }
  0x22   : > { %357 = vmatpush1.bf16.msra.mxu0 %v596_v7  ;;  %577 = vmatpush1.bf16.msra.mxu1 %v596_v7 }
  0x23   : > { %358 = vmatprep.subr.bf16.mxu0 %v621_v0  ;;  %569 = vmatprep.subr.bf16.mxu1 %v621_v0 }
  0x26   : > { %359 = vmatpush1.bf16.msra.mxu0 %v597_v8  ;;  %578 = vmatpush1.bf16.msra.mxu1 %v597_v8 }
  0x27   : > { %360 = vmatprep.subr.bf16.mxu0 %v621_v0  ;;  %570 = vmatprep.subr.bf16.mxu1 %v621_v0 }
  0x2a   : > { %361 = vmatpush1.bf16.msra.mxu0 %v598_v9  ;;  %579 = vmatpush1.bf16.msra.mxu1 %v598_v9 }
  0x2b   : > { %362 = vmatprep.subr.bf16.mxu0 %v621_v0  ;;  %571 = vmatprep.subr.bf16.mxu1 %v621_v0 }
  0x2e   : > { %363 = vmatpush1.bf16.msra.mxu0 %v599_v10  ;;  %580 = vmatpush1.bf16.msra.mxu1 %v599_v10 }
  0x2f   : > { %364 = vmatprep.subr.bf16.mxu0 %v621_v0  ;;  %572 = vmatprep.subr.bf16.mxu1 %v621_v0 }
  0x32   : > { %365 = vmatpush1.bf16.msra.mxu0 %v600_v11  ;;  %581 = vmatpush1.bf16.msra.mxu1 %v600_v11 }
  0x35   : > { %381 = vmatmul.mubr.bf16.vlgmr.msra.gmra.mrb[0].mxu0 %v601_v12  ;;  %397 = vmatmul.mubr.bf16.vlgmr.msra.gmra.mrb[0].mxu1 %v604_v13 }
  0x36   : > { %555 = vmatprep.mubr.msk.bf16.mxu0 %vm335_vm0, %v607_v14  ;;  %557 = vmatprep.mubr.msk.bf16.mxu1 %vm335_vm0, %v609_v15 }
  0x3d   : > { %389 = vmatmul.mubr.bf16.gmra.mrb[4].mxu0 %v611_v16  ;;  %405 = vmatmul.mubr.bf16.gmra.mrb[4].mxu1 %v612_v17 }
 0x108   : > { %v382_v19 = vpop.f32.mrb[0].mxu0  ;;  %v398_v21 = vpop.f32.mrb[0].mxu1 }
 0x109   : > { %v420_v22 = vmul.f32 %v558_v18, %v382_v19  ;;  %v424_v23 = vmul.f32 %v558_v18, %v398_v21  ;;  %v384_v24 = vpop.f32.mrb[1].mxu0  ;;  %v400_v25 = vpop.f32.mrb[1].mxu1 }
 0x10a   : > { %v385_v26 = vpop.f32.mrb[2].mxu0  ;;  %v401_v27 = vpop.f32.mrb[2].mxu1 }
 0x10b   : > { %v435_v28 = vadd.f32 %v559_v20, %v420_v22  ;;  %v439_v29 = vadd.f32 %v559_v20, %v424_v23  ;;  %v421_v30 = vmul.f32 %v558_v18, %v385_v26  ;;  %v425_v31 = vmul.f32 %v558_v18, %v401_v27  ;;  %v387_v32 = vpop.f32.mrb[3].mxu0  ;;  %v403_v33 = vpop.f32.mrb[3].mxu1 }
 0x10d   : > { %v443_v34 = vmax.f32 %v435_v28, 0.0  ;;  %v447_v35 = vmax.f32 %v439_v29, 0.0  ;;  %v436_v36 = vadd.f32 %v559_v20, %v421_v30  ;;  %v440_v37 = vadd.f32 %v559_v20, %v425_v31 }
 0x10f   : > { %452 = vst.msk [vmem:[%s703_s5] sm:$0xff] %vm451_vm1, %v443_v34  ;;  %456 = vst.msk [vmem:[%s703_s5 + $0x20] sm:$0xff] %vm451_vm1, %v447_v35  ;;  %v444_v38 = vmax.f32 %v436_v36, 0.0  ;;  %v448_v39 = vmax.f32 %v440_v37, 0.0 }
 0x110   : > { %v390_v40 = vpop.f32.mrb[4].mxu0  ;;  %v406_v41 = vpop.f32.mrb[4].mxu1 }
 0x111   : > { %453 = vst.msk [vmem:[%s703_s5 + $0x8] sm:$0xff] %vm451_vm1, %v444_v38  ;;  %457 = vst.msk [vmem:[%s703_s5 + $0x28] sm:$0xff] %vm451_vm1, %v448_v39  ;;  %v422_v42 = vmul.f32 %v558_v18, %v390_v40  ;;  %v426_v43 = vmul.f32 %v558_v18, %v406_v41  ;;  %v392_v44 = vpop.f32.mrb[5].mxu0  ;;  %v408_v45 = vpop.f32.mrb[5].mxu1 }
 0x112   : > { %v393_v46 = vpop.f32.mrb[6].mxu0  ;;  %v409_v47 = vpop.f32.mrb[6].mxu1 }
 0x113   : > { %v437_v48 = vadd.f32 %v559_v20, %v422_v42  ;;  %v441_v49 = vadd.f32 %v559_v20, %v426_v43  ;;  %v423_v50 = vmul.f32 %v558_v18, %v393_v46  ;;  %v427_v51 = vmul.f32 %v558_v18, %v409_v47  ;;  %v395_v52 = vpop.f32.mrb[7].mxu0  ;;  %v411_v53 = vpop.f32.mrb[7].mxu1 }
 0x115   : > { %v445_v54 = vmax.f32 %v437_v48, 0.0  ;;  %v449_v55 = vmax.f32 %v441_v49, 0.0  ;;  %v438_v56 = vadd.f32 %v559_v20, %v423_v50  ;;  %v442_v57 = vadd.f32 %v559_v20, %v427_v51 }
 0x117   : > { %454 = vst.msk [vmem:[%s703_s5 + $0x10] sm:$0xff] %vm451_vm1, %v445_v54  ;;  %458 = vst.msk [vmem:[%s703_s5 + $0x30] sm:$0xff] %vm451_vm1, %v449_v55  ;;  %v446_v58 = vmax.f32 %v438_v56, 0.0  ;;  %v450_v59 = vmax.f32 %v442_v57, 0.0 }
 0x119   : > { %455 = vst.msk [vmem:[%s703_s5 + $0x18] sm:$0xff] %vm451_vm1, %v446_v58  ;;  %459 = vst.msk [vmem:[%s703_s5 + $0x38] sm:$0xff] %vm451_vm1, %v450_v59 }
 0x11a PF: > { %s14_s15 = sadd.s32 1, %s619_s15  }
 0x11b   : > { %p11_p4 = scmp.ge.s32.totalorder %s14_s15, 4  }
 0x11d   :  { %13 = sbr.rel (!%p11_p4) target bundleno = 1 (0x1), region = 69 }

// kernel: _lambda_.20
= control target key start
LH: loop header
LB: loop body
LE: loop exit
PB: predicated region body
PF: predicated region fallthrough
CT: control target
= control target key end

     0   :  { %s958_s12 = smov 0   ;;  %s1059_s0 = inlined_call_operand.vmem [shape: bf16[4,64,288], index: 0, kind: input, shape index: {}]   ;;  %s1060_s1 = inlined_call_operand.vmem [shape: bf16[4,288,32], index: 1, kind: input, shape index: {}]   ;;  %s1061_s2 = inlined_call_operand.vmem [shape: f32[2,64,32], index: 2, kind: input, shape index: {}]   ;;  %s1062_s3 = inlined_call_operand.vmem [shape: f32[4,64,32], index: 3, kind: output, shape index: {}]  }
   0x1 LB: > { %s964_s13 = sadd.s32 4294967295, %s936_s12   ;;  %p764_p0 = scmp.ge.s32.totalorder %s936_s12, 1  ;;  %s936_s12 = sphi %s958_s12, %s13_s12  }
   0x2   : > { %p205_p1 = scmp.lt.s32.totalorder %s936_s12, 5 }
   0x4   : > { %p206_p2 = pnand %p764_p0, %p205_p1 }
   0x5   : > { %p251_p3 = scmp.lt.s32.totalorder (!%p206_p2), %s964_s13, 3  ;;  %vm524_vm0 = vcmask (!%p206_p2), 261120   ;;  %s262_s23 = ssub.s32 (!%p206_p2), 0, %s964_s13 }
   0x6   : > { %209 = sbr.rel (%p206_p2) target bundleno = 289 (0x121), region = 32  ;;  %s767_s24 = smin.u32 (!%p206_p2), %s964_s13, %s262_s23 }
   0x7   : > { %s264_s25 = sand.u32 (!%p206_p2), 1, %s767_s24   ;;  %p261_p4 = scmp.lt.s32.totalorder (!%p206_p2), %s964_s13, 0 }
   0x8   : > { %s265_s26 = ssub.s32 (!%p206_p2), 0, %s264_s25 }
   0xd   : > { %s970_s14 = scalar_select %p251_p3, %s964_s13, 3 }
   0xe   : > { %s1064_s26 = smov (!%p261_p4, %s265_s26), %s264_s25 }
   0xf   : > { %s887_s15 = smul.u32 144, %s970_s14  ;;  %p769_p5 = scmp.lt.s32.totalorder %s1064_s26, 0 }
  0x10   : > { %s886_s19 = smul.u32 96, %s970_s14  ;;  %s271_s27 = sadd.s32 2, %s1064_s26 }
  0x11   : > { %s976_s18 = scalar_lea.vmem %s1060_s1, %s887_s15  ;;  %s1066_s27 = smov (!%p769_p5, %s271_s27), %s1064_s26 }
  0x12   : > { %v896_v0 = vld [vmem:[%s976_s18 + $0x40] sm:$0xff]   ;;  %v898_v2 = vld [vmem:[%s976_s18 + $0x48] sm:$0xff]   ;;  %v900_v4 = vld [vmem:[%s976_s18 + $0x50] sm:$0xff]   ;;  %s991_s22 = scalar_lea.vmem %s1059_s0, %s886_s19  ;;  %p273_p6 = scmp.lt.s32.totalorder %s1066_s27, 1 }
  0x13   : > { %v897_v1 = vld [vmem:[%s976_s18] sm:$0xff]   ;;  %812 = vmatprep.subr.bf16.mxu0 %v896_v0  ;;  %870 = vmatprep.subr.bf16.mxu1 %v896_v0  ;;  %v899_v3 = vld [vmem:[%s976_s18 + $0x8] sm:$0xff]   ;;  %v901_v5 = vld [vmem:[%s976_s18 + $0x10] sm:$0xff]   ;;  %s811_s5 = sshll.u32 %s970_s14, 6 }
  0x14   : > { %813 = vmatpush3.bf16.msra.mxu0 %v897_v1  ;;  %878 = vmatpush3.bf16.msra.mxu1 %v897_v1  ;;  %v902_v6 = vld [vmem:[%s976_s18 + $0x58] sm:$0xff]   ;;  %v904_v8 = vld [vmem:[%s976_s18 + $0x60] sm:$0xff]   ;;  %v906_v10 = vld [vmem:[%s976_s18 + $0x68] sm:$0xff]   ;;  %s1068_s27 = smov (!%p273_p6, %s1066_s27), 1  ;;  %s1032_s8 = scalar_lea.vmem %s1062_s3, %s811_s5 }
  0x15   : > { %814 = vmatprep.subr.bf16.mxu0 %v898_v2  ;;  %871 = vmatprep.subr.bf16.mxu1 %v898_v2  ;;  %v903_v7 = vld [vmem:[%s976_s18 + $0x18] sm:$0xff]   ;;  %v905_v9 = vld [vmem:[%s976_s18 + $0x20] sm:$0xff]   ;;  %v907_v13 = vld [vmem:[%s976_s18 + $0x28] sm:$0xff]   ;;  %s810_s28 = sshll.u32 %s1068_s27, 6 }
  0x16   : > { %v914_v11 = vld [vmem:[%s991_s22 + $0x4] ss:$12 sps:$4 sm:$0xff]   ;;  %v917_v12 = vld [vmem:[%s991_s22 + $0x4c] ss:$12 sps:$4 sm:$0xff]   ;;  %v915_v20 = vld [vmem:[%s991_s22 + $0x48] ss:$12 sps:$4 sm:$0xff]   ;;  %s1024_s4 = scalar_lea.vmem %s1061_s2, %s810_s28 }
  0x17   : > { %v908_v14 = vld [vmem:[%s976_s18 + $0x70] sm:$0xff]   ;;  %569 = vmatprep.mubr.bf16.mxu0 %v914_v11  ;;  %593 = vmatprep.mubr.bf16.mxu1 %v917_v12  ;;  %v910_v16 = vld [vmem:[%s976_s18 + $0x78] sm:$0xff]   ;;  %v918_v18 = vld [vmem:[%s976_s18 + $0x80] sm:$0xff]  }
  0x18   : > { %815 = vmatpush3.bf16.msra.mxu0 %v899_v3  ;;  %879 = vmatpush3.bf16.msra.mxu1 %v899_v3  ;;  %v909_v15 = vld [vmem:[%s976_s18 + $0x30] sm:$0xff]   ;;  %v911_v17 = vld [vmem:[%s976_s18 + $0x38] sm:$0xff]   ;;  %v912_v19 = vld [vmem:[%s991_s22] ss:$12 sps:$4 sm:$0xff]  }
  0x19   : > { %816 = vmatprep.subr.bf16.mxu0 %v900_v4  ;;  %872 = vmatprep.subr.bf16.mxu1 %v900_v4  ;;  %v920_v21 = vld [vmem:[%s991_s22 + $0x1c] ss:$12 sps:$4 sm:$0xff]   ;;  %v923_v24 = vld [vmem:[%s991_s22 + $0x18] ss:$12 sps:$4 sm:$0xff]   ;;  %v924_v25 = vld [vmem:[%s991_s22 + $0x20] ss:$12 sps:$4 sm:$0xff]  }
  0x1a   : > { %v919_v22 = vld [vmem:[%s976_s18 + $0x88] sm:$0xff]   ;;  %v925_v26 = vld [vmem:[%s991_s22 + $0x34] ss:$12 sps:$4 sm:$0xff]   ;;  %v927_v27 = vld [vmem:[%s991_s22 + $0x38] ss:$12 sps:$4 sm:$0xff]  }
  0x1b   : > { %v922_v23 = vld [vmem:[%s991_s22 + $0x8] ss:$12 sps:$4 sm:$0xff]   ;;  %v928_v28 = vld [vmem:[%s991_s22 + $0x30] ss:$12 sps:$4 sm:$0xff]   ;;  %v348_v42 = vld [vmem:[%s1024_s4] sm:$0xff] }
  0x1c   : > { %817 = vmatpush3.bf16.msra.mxu0 %v901_v5  ;;  %880 = vmatpush3.bf16.msra.mxu1 %v901_v5  ;;  %v929_v29 = vld [vmem:[%s991_s22 + $0x50] ss:$12 sps:$4 sm:$0xff]   ;;  %v349_v43 = vld [vmem:[%s1024_s4 + $0x8] sm:$0xff] }
  0x1d   : > { %818 = vmatprep.subr.bf16.mxu0 %v902_v6  ;;  %873 = vmatprep.subr.bf16.mxu1 %v902_v6  ;;  %v350_v47 = vld [vmem:[%s1024_s4 + $0x10] sm:$0xff]  ;;  %v351_v55 = vld [vmem:[%s1024_s4 + $0x18] sm:$0xff] }
  0x1e   : > { %v354_v61 = vld [vmem:[%s1024_s4 + $0x30] sm:$0xff]  ;;  %v355_v0 = vld [vmem:[%s1024_s4 + $0x38] sm:$0xff] }
  0x20   : > { %819 = vmatpush3.bf16.msra.mxu0 %v903_v7  ;;  %881 = vmatpush3.bf16.msra.mxu1 %v903_v7  ;;  %v352_v7 = vld [vmem:[%s1024_s4 + $0x20] sm:$0xff] }
  0x21   : > { %820 = vmatprep.subr.bf16.mxu0 %v904_v8  ;;  %874 = vmatprep.subr.bf16.mxu1 %v904_v8 }
  0x24   : > { %821 = vmatpush3.bf16.msra.mxu0 %v905_v9  ;;  %882 = vmatpush3.bf16.msra.mxu1 %v905_v9 }
  0x25   : > { %822 = vmatprep.subr.bf16.mxu0 %v906_v10  ;;  %875 = vmatprep.subr.bf16.mxu1 %v906_v10 }
  0x28   : > { %823 = vmatpush3.bf16.msra.mxu0 %v907_v13  ;;  %883 = vmatpush3.bf16.msra.mxu1 %v907_v13 }
  0x29   : > { %824 = vmatprep.subr.bf16.mxu0 %v908_v14  ;;  %876 = vmatprep.subr.bf16.mxu1 %v908_v14 }
  0x2c   : > { %825 = vmatpush3.bf16.msra.mxu0 %v909_v15  ;;  %884 = vmatpush3.bf16.msra.mxu1 %v909_v15  ;;  %v353_v15 = vld [vmem:[%s1024_s4 + $0x28] sm:$0xff] }
  0x2d   : > { %826 = vmatprep.subr.bf16.mxu0 %v910_v16  ;;  %877 = vmatprep.subr.bf16.mxu1 %v910_v16 }
  0x30   : > { %827 = vmatpush3.bf16.msra.mxu0 %v911_v17  ;;  %885 = vmatpush3.bf16.msra.mxu1 %v911_v17 }
  0x31   : > { %858 = vmatprep.subr.bf16.mxu1 %v918_v18 }
  0x33   : > { %570 = vmatmul.mubr.bf16.vlgmr.msra.gmra.mrb[0].mxu0 %v912_v19  ;;  %594 = vmatmul.mubr.bf16.vlgmr.msra.gmra.mrb[0].mxu1 %v915_v20 }
  0x34   : > { %859 = vmatpush3.bf16.msra.mxu1 %v918_v18  ;;  %577 = vmatprep.mubr.bf16.mxu0 %v920_v21 }
  0x35   : > { %860 = vmatprep.subr.bf16.mxu1 %v919_v22  ;;  %862 = vmatprep.mubr.msk.bf16.mxu1 %vm524_vm0, %v922_v23 }
  0x38   : > { %861 = vmatpush3.bf16.msra.mxu1 %v919_v22 }
  0x3b   : > { %578 = vmatmul.mubr.bf16.gmra.mrb[4].mxu0 %v923_v24  ;;  %863 = vmatmul.mubr.msk.bf16.vlgmr.msra.gmra.mrb[4].mxu1 %vm524_vm0, %v924_v25 }
  0x3c   : > { %585 = vmatprep.mubr.bf16.mxu0 %v925_v26  ;;  %866 = vmatprep.mubr.msk.bf16.mxu1 %vm524_vm0, %v927_v27 }
  0x43   : > { %586 = vmatmul.mubr.bf16.gmra.mrb[8].mxu0 %v928_v28  ;;  %867 = vmatmul.mubr.msk.bf16.gmra.mrb[8].mxu1 %vm524_vm0, %v929_v29 }
 0x106   : > { %v828_v30 = vpop.f32.mrb[0].mxu0  ;;  %v846_v31 = vpop.f32.mrb[0].mxu1 }
 0x107   : > { %v829_v32 = vpop.f32.mrb[1].mxu0  ;;  %v847_v33 = vpop.f32.mrb[1].mxu1 }
 0x108   : > { %v830_v34 = vadd.f32 %v829_v32, %v828_v30  ;;  %v831_v35 = vpop.f32.mrb[2].mxu0  ;;  %v848_v36 = vadd.f32 %v847_v33, %v846_v31  ;;  %v849_v37 = vpop.f32.mrb[2].mxu1 }
 0x109   : > { %v832_v38 = vpop.f32.mrb[3].mxu0  ;;  %v850_v39 = vpop.f32.mrb[3].mxu1 }
 0x10a   : > { %v833_v40 = vadd.f32 %v832_v38, %v831_v35  ;;  %v851_v41 = vadd.f32 %v850_v39, %v849_v37  ;;  %v572_v46 = vadd.f32 %v830_v34, %v348_v42  ;;  %v596_v1 = vadd.f32 %v848_v36, %v354_v61 }
 0x10c   : > { %v575_v54 = vadd.f32 %v833_v40, %v349_v43  ;;  %v599_v9 = vadd.f32 %v851_v41, %v355_v0 }
 0x10e   : > { %v834_v44 = vpop.f32.mrb[4].mxu0  ;;  %v864_v45 = vpop.f32.mrb[4].mxu1 }
 0x10f   : > { %v835_v48 = vpop.f32.mrb[5].mxu0  ;;  %v636_v49 = vpop.f32.mrb[5].mxu1 }
 0x110   : > { %v836_v50 = vadd.f32 %v835_v48, %v834_v44  ;;  %v637_v51 = vadd.f32 %v636_v49, %v572_v46  ;;  %v837_v52 = vpop.f32.mrb[6].mxu0  ;;  %v865_v53 = vpop.f32.mrb[6].mxu1 }
 0x111   : > { %v838_v56 = vpop.f32.mrb[7].mxu0  ;;  %v639_v57 = vpop.f32.mrb[7].mxu1 }
 0x112   : > { %v580_v58 = vadd.f32 %v836_v50, %v350_v47  ;;  %667 = vst.msk [vmem:[%s1032_s8] sm:$0xff] %vm524_vm0, %v637_v51  ;;  %v839_v59 = vadd.f32 %v838_v56, %v837_v52  ;;  %v640_v60 = vadd.f32 %v639_v57, %v575_v54 }
 0x114   : > { %v645_v62 = vadd.f32 %v864_v45, %v580_v58  ;;  %v583_v63 = vadd.f32 %v839_v59, %v351_v55  ;;  %668 = vst.msk [vmem:[%s1032_s8 + $0x8] sm:$0xff] %vm524_vm0, %v640_v60 }
 0x116   : > { %669 = vst.msk [vmem:[%s1032_s8 + $0x10] sm:$0xff] %vm524_vm0, %v645_v62  ;;  %v648_v2 = vadd.f32 %v865_v53, %v583_v63  ;;  %v840_v3 = vpop.f32.mrb[8].mxu0  ;;  %v868_v4 = vpop.f32.mrb[8].mxu1 }
 0x117   : > { %v661_v5 = vadd.f32 %v868_v4, %v596_v1  ;;  %v841_v6 = vpop.f32.mrb[9].mxu0  ;;  %v652_v8 = vpop.f32.mrb[9].mxu1 }
 0x118   : > { %670 = vst.msk [vmem:[%s1032_s8 + $0x18] sm:$0xff] %vm524_vm0, %v648_v2  ;;  %v842_v10 = vadd.f32 %v841_v6, %v840_v3  ;;  %v843_v11 = vpop.f32.mrb[10].mxu0  ;;  %v869_v12 = vpop.f32.mrb[10].mxu1 }
 0x119   : > { %673 = vst.msk [vmem:[%s1032_s8 + $0x30] sm:$0xff] %vm524_vm0, %v661_v5  ;;  %v664_v13 = vadd.f32 %v869_v12, %v599_v9  ;;  %v844_v14 = vpop.f32.mrb[11].mxu0  ;;  %v655_v16 = vpop.f32.mrb[11].mxu1 }
 0x11a   : > { %v588_v17 = vadd.f32 %v842_v10, %v352_v7  ;;  %v845_v18 = vadd.f32 %v844_v14, %v843_v11 }
 0x11b   : > { %674 = vst.msk [vmem:[%s1032_s8 + $0x38] sm:$0xff] %vm524_vm0, %v664_v13 }
 0x11c   : > { %v653_v19 = vadd.f32 %v652_v8, %v588_v17  ;;  %v591_v20 = vadd.f32 %v845_v18, %v353_v15 }
 0x11e   : > { %671 = vst.msk [vmem:[%s1032_s8 + $0x20] sm:$0xff] %vm524_vm0, %v653_v19  ;;  %v656_v21 = vadd.f32 %v655_v16, %v591_v20 }
 0x120   : > { %672 = vst.msk [vmem:[%s1032_s8 + $0x28] sm:$0xff] %vm524_vm0, %v656_v21 }
 0x121 PF: > { %s13_s12 = sadd.s32 1, %s936_s12  }
 0x122   : > { %p10_p7 = scmp.ge.s32.totalorder %s13_s12, 6  }
 0x124   :  { %12 = sbr.rel (!%p10_p7) target bundleno = 1 (0x1), region = 68 }

// kernel: _lambda_.21
= control target key start
LH: loop header
LB: loop body
LE: loop exit
PB: predicated region body
PF: predicated region fallthrough
CT: control target
= control target key end

     0   :  { %vm92_vm0 = vcmask 261120   ;;  %s271_s0 = inlined_call_operand.vmem [shape: f32[128,32], index: 0, kind: input, shape index: {}]   ;;  %s272_s1 = inlined_call_operand.vmem [shape: f32[1,32], index: 1, kind: input, shape index: {}]   ;;  %s273_s2 = inlined_call_operand.vmem [shape: f32[1,32], index: 2, kind: input, shape index: {}]   ;;  %s274_s3 = inlined_call_operand.vmem [shape: f32[128,32], index: 3, kind: output, shape index: {}]  }
   0x1   :  { %v14_v0 = vld [vmem:[%s271_s0] sm:$0xff]  ;;  %v15_v4 = vld [vmem:[%s271_s0 + $0x8] sm:$0xff]  ;;  %v16_v5 = vld [vmem:[%s271_s0 + $0x10] sm:$0xff] }
   0x2   :  { %v113_v1 = vld [vmem:[%s272_s1] ss:$0 sm:$0xff]  ;;  %v17_v6 = vld [vmem:[%s271_s0 + $0x18] sm:$0xff]  ;;  %v19_v11 = vld [vmem:[%s271_s0 + $0x28] sm:$0xff] }
   0x3   :  { %v144_v2 = vld [vmem:[%s273_s2] ss:$0 sm:$0xff]  ;;  %v37_v3 = vmul.f32 %v113_v1, %v14_v0  ;;  %v38_v7 = vmul.f32 %v113_v1, %v15_v4  ;;  %v39_v8 = vmul.f32 %v113_v1, %v16_v5  ;;  %v40_v9 = vmul.f32 %v113_v1, %v17_v6  ;;  %v20_v12 = vld [vmem:[%s271_s0 + $0x30] sm:$0xff]  ;;  %v21_v17 = vld [vmem:[%s271_s0 + $0x38] sm:$0xff] }
   0x4   :  { %v18_v10 = vld [vmem:[%s271_s0 + $0x20] sm:$0xff]  ;;  %v42_v15 = vmul.f32 %v113_v1, %v19_v11  ;;  %v43_v16 = vmul.f32 %v113_v1, %v20_v12  ;;  %v44_v21 = vmul.f32 %v113_v1, %v21_v17  ;;  %v23_v27 = vld [vmem:[%s271_s0 + $0x48] sm:$0xff]  ;;  %v24_v28 = vld [vmem:[%s271_s0 + $0x50] sm:$0xff] }
   0x5   :  { %v60_v13 = vadd.f32 %v144_v2, %v37_v3  ;;  %v41_v14 = vmul.f32 %v113_v1, %v18_v10  ;;  %v61_v18 = vadd.f32 %v144_v2, %v38_v7  ;;  %v62_v19 = vadd.f32 %v144_v2, %v39_v8  ;;  %v22_v22 = vld [vmem:[%s271_s0 + $0x40] sm:$0xff]  ;;  %v25_v29 = vld [vmem:[%s271_s0 + $0x58] sm:$0xff]  ;;  %v27_v35 = vld [vmem:[%s271_s0 + $0x68] sm:$0xff] }
   0x6   :  { %v63_v20 = vadd.f32 %v144_v2, %v40_v9  ;;  %v65_v25 = vadd.f32 %v144_v2, %v42_v15  ;;  %v66_v26 = vadd.f32 %v144_v2, %v43_v16  ;;  %v67_v33 = vadd.f32 %v144_v2, %v44_v21  ;;  %v26_v34 = vld [vmem:[%s271_s0 + $0x60] sm:$0xff]  ;;  %v28_v36 = vld [vmem:[%s271_s0 + $0x70] sm:$0xff]  ;;  %v29_v41 = vld [vmem:[%s271_s0 + $0x78] sm:$0xff] }
   0x7   :  { %v76_v23 = vmax.f32 %v60_v13, 0.0  ;;  %v64_v24 = vadd.f32 %v144_v2, %v41_v14  ;;  %v77_v30 = vmax.f32 %v61_v18, 0.0  ;;  %v78_v31 = vmax.f32 %v62_v19, 0.0 }
   0x8   :  { %v79_v32 = vmax.f32 %v63_v20, 0.0  ;;  %v81_v38 = vmax.f32 %v65_v25, 0.0  ;;  %v82_v39 = vmax.f32 %v66_v26, 0.0  ;;  %v45_v40 = vmul.f32 %v113_v1, %v22_v22 }
   0x9   :  { %93 = vst.msk [vmem:[%s274_s3] sm:$0xff] %vm92_vm0, %v76_v23  ;;  %v80_v37 = vmax.f32 %v64_v24, 0.0  ;;  %94 = vst.msk [vmem:[%s274_s3 + $0x8] sm:$0xff] %vm92_vm0, %v77_v30  ;;  %v83_v42 = vmax.f32 %v67_v33, 0.0  ;;  %v46_v43 = vmul.f32 %v113_v1, %v23_v27  ;;  %v47_v44 = vmul.f32 %v113_v1, %v24_v28 }
   0xa   :  { %95 = vst.msk [vmem:[%s274_s3 + $0x10] sm:$0xff] %vm92_vm0, %v78_v31  ;;  %96 = vst.msk [vmem:[%s274_s3 + $0x18] sm:$0xff] %vm92_vm0, %v79_v32  ;;  %v48_v45 = vmul.f32 %v113_v1, %v25_v29  ;;  %v68_v46 = vadd.f32 %v144_v2, %v45_v40  ;;  %v49_v47 = vmul.f32 %v113_v1, %v26_v34 }
   0xb   :  { %97 = vst.msk [vmem:[%s274_s3 + $0x20] sm:$0xff] %vm92_vm0, %v80_v37  ;;  %98 = vst.msk [vmem:[%s274_s3 + $0x28] sm:$0xff] %vm92_vm0, %v81_v38  ;;  %v50_v48 = vmul.f32 %v113_v1, %v27_v35  ;;  %v51_v49 = vmul.f32 %v113_v1, %v28_v36  ;;  %v69_v50 = vadd.f32 %v144_v2, %v46_v43 }
   0xc   :  { %99 = vst.msk [vmem:[%s274_s3 + $0x30] sm:$0xff] %vm92_vm0, %v82_v39  ;;  %100 = vst.msk [vmem:[%s274_s3 + $0x38] sm:$0xff] %vm92_vm0, %v83_v42  ;;  %v70_v51 = vadd.f32 %v144_v2, %v47_v44  ;;  %v71_v52 = vadd.f32 %v144_v2, %v48_v45  ;;  %v52_v53 = vmul.f32 %v113_v1, %v29_v41  ;;  %v84_v54 = vmax.f32 %v68_v46, 0.0 }
   0xd   :  { %v72_v55 = vadd.f32 %v144_v2, %v49_v47  ;;  %v73_v56 = vadd.f32 %v144_v2, %v50_v48  ;;  %v74_v57 = vadd.f32 %v144_v2, %v51_v49  ;;  %v85_v58 = vmax.f32 %v69_v50, 0.0 }
   0xe   :  { %v86_v59 = vmax.f32 %v70_v51, 0.0  ;;  %v87_v60 = vmax.f32 %v71_v52, 0.0  ;;  %v75_v61 = vadd.f32 %v144_v2, %v52_v53  ;;  %101 = vst.msk [vmem:[%s274_s3 + $0x40] sm:$0xff] %vm92_vm0, %v84_v54 }
   0xf   :  { %v88_v62 = vmax.f32 %v72_v55, 0.0  ;;  %v89_v63 = vmax.f32 %v73_v56, 0.0  ;;  %v90_v0 = vmax.f32 %v74_v57, 0.0  ;;  %102 = vst.msk [vmem:[%s274_s3 + $0x48] sm:$0xff] %vm92_vm0, %v85_v58 }
  0x10   :  { %103 = vst.msk [vmem:[%s274_s3 + $0x50] sm:$0xff] %vm92_vm0, %v86_v59  ;;  %104 = vst.msk [vmem:[%s274_s3 + $0x58] sm:$0xff] %vm92_vm0, %v87_v60  ;;  %v91_v1 = vmax.f32 %v75_v61, 0.0 }
  0x11   :  { %105 = vst.msk [vmem:[%s274_s3 + $0x60] sm:$0xff] %vm92_vm0, %v88_v62  ;;  %106 = vst.msk [vmem:[%s274_s3 + $0x68] sm:$0xff] %vm92_vm0, %v89_v63 }
  0x12   :  { %107 = vst.msk [vmem:[%s274_s3 + $0x70] sm:$0xff] %vm92_vm0, %v90_v0  ;;  %108 = vst.msk [vmem:[%s274_s3 + $0x78] sm:$0xff] %vm92_vm0, %v91_v1 }

// kernel: _lambda_.22
= control target key start
LH: loop header
LB: loop body
LE: loop exit
PB: predicated region body
PF: predicated region fallthrough
CT: control target
= control target key end

     0   :  { %vm42_vm0 = vcmask 261120   ;;  %vm98_vm1 = vcmask 523264   ;;  %s168_s1 = inlined_call_operand.vmem [shape: bf16[32,64], index: 1, kind: input, shape index: {}]   ;;  %s169_s0 = inlined_call_operand.vmem [shape: bf16[32,32], index: 0, kind: input, shape index: {}]   ;;  %s170_s2 = inlined_call_operand.vmem [shape: f32[32,64], index: 2, kind: output, shape index: {}]  }
   0x1   :  { %v125_v0 = vld [vmem:[%s168_s1] sm:$0xff]   ;;  %v126_v1 = vld [vmem:[%s168_s1 + $0x8] sm:$0xff]  }
   0x2   :  { %117 = vmatprep.subr.bf16.mxu0 %v125_v0  ;;  %v127_v2 = vld [vmem:[%s169_s0] sm:$0xff]   ;;  %v128_v3 = vld [vmem:[%s169_s0 + $0x8] sm:$0xff]  }
   0x3   :  { %118 = vmatpush3.bf16.msra.mxu0 %v125_v0  ;;  %121 = vmatprep.mubr.msk.bf16.mxu0 %vm42_vm0, %v127_v2 }
   0x4   :  { %119 = vmatprep.subr.bf16.mxu0 %v126_v1 }
   0x7   :  { %120 = vmatpush3.bf16.msra.mxu0 %v126_v1 }
   0xa   :  { %122 = vmatmul.mubr.msk.bf16.vlgmr.msra.gmra.mrb[0].mxu0 %vm42_vm0, %v128_v3 }
  0xdd   :  { %v123_v4 = vpop.f32.mrb[0].mxu0 }
  0xde   :  { %101 = vst.msk [vmem:[%s170_s2 + $0x10] sm:$0xff] %vm98_vm1, %v123_v4  ;;  %v83_v5 = vpop.f32.mrb[1].mxu0 }
  0xdf   :  { %99 = vst.msk [vmem:[%s170_s2] sm:$0xff] %vm98_vm1, %v83_v5  ;;  %v124_v6 = vpop.f32.mrb[2].mxu0 }
  0xe0   :  { %102 = vst.msk [vmem:[%s170_s2 + $0x18] sm:$0xff] %vm98_vm1, %v124_v6  ;;  %v86_v7 = vpop.f32.mrb[3].mxu0 }
  0xe1   :  { %100 = vst.msk [vmem:[%s170_s2 + $0x8] sm:$0xff] %vm98_vm1, %v86_v7 }

// kernel: _lambda_.23
= control target key start
LH: loop header
LB: loop body
LE: loop exit
PB: predicated region body
PF: predicated region fallthrough
CT: control target
= control target key end

     0   :  { %vm200_vm0 = vcmask 261120   ;;  %vm331_vm1 = vcmask 523264   ;;  %s553_s1 = inlined_call_operand.vmem [shape: bf16[288,64], index: 1, kind: input, shape index: {}]   ;;  %s554_s0 = inlined_call_operand.vmem [shape: bf16[32,288], index: 0, kind: input, shape index: {}]   ;;  %s555_s2 = inlined_call_operand.vmem [shape: f32[1,64], index: 2, kind: input, shape index: {}]   ;;  %s556_s3 = inlined_call_operand.vmem [shape: f32[1,64], index: 3, kind: input, shape index: {}]   ;;  %s557_s4 = inlined_call_operand.vmem [shape: f32[32,64], index: 4, kind: output, shape index: {}]  }
   0x1   :  { %v408_v0 = vld [vmem:[%s553_s1 + $0x40] sm:$0xff]   ;;  %v410_v2 = vld [vmem:[%s553_s1 + $0x48] sm:$0xff]   ;;  %v412_v4 = vld [vmem:[%s553_s1 + $0x50] sm:$0xff]  }
   0x2   :  { %v409_v1 = vld [vmem:[%s553_s1] sm:$0xff]   ;;  %368 = vmatprep.subr.bf16.mxu0 %v408_v0  ;;  %v411_v3 = vld [vmem:[%s553_s1 + $0x8] sm:$0xff]   ;;  %v413_v5 = vld [vmem:[%s553_s1 + $0x10] sm:$0xff]  }
   0x3   :  { %369 = vmatpush3.bf16.msra.mxu0 %v409_v1  ;;  %v414_v6 = vld [vmem:[%s553_s1 + $0x58] sm:$0xff]   ;;  %v416_v8 = vld [vmem:[%s553_s1 + $0x60] sm:$0xff]   ;;  %v418_v11 = vld [vmem:[%s553_s1 + $0x68] sm:$0xff]  }
   0x4   :  { %370 = vmatprep.subr.bf16.mxu0 %v410_v2  ;;  %v415_v7 = vld [vmem:[%s553_s1 + $0x18] sm:$0xff]   ;;  %v422_v9 = vld [vmem:[%s553_s1 + $0x80] sm:$0xff]   ;;  %v419_v12 = vld [vmem:[%s553_s1 + $0x28] sm:$0xff]  }
   0x5   :  { %v417_v10 = vld [vmem:[%s553_s1 + $0x20] sm:$0xff]   ;;  %400 = vmatprep.subr.bf16.mxu1 %v422_v9  ;;  %v425_v13 = vld [vmem:[%s553_s1 + $0x88] sm:$0xff]   ;;  %v420_v14 = vld [vmem:[%s553_s1 + $0x70] sm:$0xff]  }
   0x6   :  { %401 = vmatpush3.bf16.msra.mxu1 %v422_v9  ;;  %v428_v15 = vld [vmem:[%s554_s0 + $0x4] ss:$12 sps:$4 sm:$0xff]   ;;  %v429_v16 = vld [vmem:[%s554_s0 + $0x8] ss:$12 sps:$4 sm:$0xff]   ;;  %v430_v17 = vld [vmem:[%s554_s0 + $0x20] ss:$12 sps:$4 sm:$0xff]  }
   0x7   :  { %371 = vmatpush3.bf16.msra.mxu0 %v411_v3  ;;  %402 = vmatprep.subr.bf16.mxu1 %v425_v13  ;;  %v421_v18 = vld [vmem:[%s553_s1 + $0x30] sm:$0xff]   ;;  %v423_v19 = vld [vmem:[%s553_s1 + $0x78] sm:$0xff]   ;;  %v426_v21 = vld [vmem:[%s554_s0] ss:$12 sps:$4 sm:$0xff]  }
   0x8   :  { %372 = vmatprep.subr.bf16.mxu0 %v412_v4  ;;  %239 = vmatprep.mubr.bf16.mxu0 %v428_v15  ;;  %v424_v20 = vld [vmem:[%s553_s1 + $0x38] sm:$0xff]   ;;  %v366_v33 = vld [vmem:[%s555_s2] ss:$0 sm:$0xff] }
   0x9   :  { %404 = vmatprep.mubr.msk.bf16.mxu1 %vm200_vm0, %v429_v16  ;;  %v431_v22 = vld [vmem:[%s554_s0 + $0x1c] ss:$12 sps:$4 sm:$0xff]   ;;  %v433_v23 = vld [vmem:[%s554_s0 + $0x18] ss:$12 sps:$4 sm:$0xff]   ;;  %v367_v36 = vld [vmem:[%s556_s3] ss:$0 sm:$0xff] }
   0xa   :  { %403 = vmatpush3.bf16.msra.mxu1 %v425_v13 }
   0xb   :  { %373 = vmatpush3.bf16.msra.mxu0 %v413_v5 }
   0xc   :  { %374 = vmatprep.subr.bf16.mxu0 %v414_v6 }
   0xd   :  { %405 = vmatmul.mubr.msk.bf16.vlgmr.msra.gmra.mrb[0].mxu1 %vm200_vm0, %v430_v17 }
   0xf   :  { %375 = vmatpush3.bf16.msra.mxu0 %v415_v7 }
  0x10   :  { %376 = vmatprep.subr.bf16.mxu0 %v416_v8 }
  0x13   :  { %377 = vmatpush3.bf16.msra.mxu0 %v417_v10 }
  0x14   :  { %378 = vmatprep.subr.bf16.mxu0 %v418_v11 }
  0x17   :  { %379 = vmatpush3.bf16.msra.mxu0 %v419_v12 }
  0x18   :  { %380 = vmatprep.subr.bf16.mxu0 %v420_v14 }
  0x1b   :  { %381 = vmatpush3.bf16.msra.mxu0 %v421_v18 }
  0x1c   :  { %382 = vmatprep.subr.bf16.mxu0 %v423_v19 }
  0x1f   :  { %383 = vmatpush3.bf16.msra.mxu0 %v424_v20 }
  0x22   :  { %240 = vmatmul.mubr.bf16.vlgmr.msra.gmra.mrb[0].mxu0 %v426_v21 }
  0x23   :  { %247 = vmatprep.mubr.bf16.mxu0 %v431_v22 }
  0x2a   :  { %248 = vmatmul.mubr.bf16.gmra.mrb[4].mxu0 %v433_v23 }
  0xe0   :  { %v406_v24 = vpop.f32.mrb[0].mxu1 }
  0xe1   :  { %v290_v25 = vpop.f32.mrb[1].mxu1 }
  0xe2   :  { %v407_v26 = vpop.f32.mrb[2].mxu1 }
  0xe3   :  { %v293_v27 = vpop.f32.mrb[3].mxu1 }
  0xf5   :  { %v384_v28 = vpop.f32.mrb[0].mxu0 }
  0xf6   :  { %v385_v29 = vpop.f32.mrb[1].mxu0 }
  0xf7   :  { %v386_v30 = vadd.f32 %v385_v29, %v384_v28  ;;  %v387_v31 = vpop.f32.mrb[2].mxu0 }
  0xf8   :  { %v388_v32 = vpop.f32.mrb[3].mxu0 }
  0xf9   :  { %v389_v34 = vadd.f32 %v388_v32, %v387_v31  ;;  %v291_v35 = vadd.f32 %v386_v30, %v290_v25 }
  0xfb   :  { %v312_v37 = vmul.f32 %v366_v33, %v291_v35  ;;  %v294_v38 = vadd.f32 %v389_v34, %v293_v27 }
  0xfd   :  { %v323_v39 = vadd.f32 %v367_v36, %v312_v37  ;;  %v313_v40 = vmul.f32 %v366_v33, %v294_v38  ;;  %v390_v41 = vpop.f32.mrb[4].mxu0 }
  0xfe   :  { %v391_v42 = vpop.f32.mrb[5].mxu0 }
  0xff   :  { %v327_v43 = vmax.f32 %v323_v39, 0.0  ;;  %v324_v44 = vadd.f32 %v367_v36, %v313_v40  ;;  %v392_v45 = vadd.f32 %v391_v42, %v390_v41  ;;  %v393_v46 = vpop.f32.mrb[6].mxu0 }
 0x100   :  { %v394_v47 = vpop.f32.mrb[7].mxu0 }
 0x101   :  { %332 = vst.msk [vmem:[%s557_s4] sm:$0xff] %vm331_vm1, %v327_v43  ;;  %v328_v48 = vmax.f32 %v324_v44, 0.0  ;;  %v299_v49 = vadd.f32 %v406_v24, %v392_v45  ;;  %v395_v50 = vadd.f32 %v394_v47, %v393_v46 }
 0x103   :  { %333 = vst.msk [vmem:[%s557_s4 + $0x8] sm:$0xff] %vm331_vm1, %v328_v48  ;;  %v314_v51 = vmul.f32 %v366_v33, %v299_v49  ;;  %v302_v52 = vadd.f32 %v407_v26, %v395_v50 }
 0x105   :  { %v325_v53 = vadd.f32 %v367_v36, %v314_v51  ;;  %v315_v54 = vmul.f32 %v366_v33, %v302_v52 }
 0x107   :  { %v329_v55 = vmax.f32 %v325_v53, 0.0  ;;  %v326_v56 = vadd.f32 %v367_v36, %v315_v54 }
 0x109   :  { %334 = vst.msk [vmem:[%s557_s4 + $0x10] sm:$0xff] %vm331_vm1, %v329_v55  ;;  %v330_v57 = vmax.f32 %v326_v56, 0.0 }
 0x10b   :  { %335 = vst.msk [vmem:[%s557_s4 + $0x18] sm:$0xff] %vm331_vm1, %v330_v57 }

// kernel: _lambda_.24
= control target key start
LH: loop header
LB: loop body
LE: loop exit
PB: predicated region body
PF: predicated region fallthrough
CT: control target
= control target key end

     0   :  { %vm369_vm0 = vcmask 523264   ;;  %s891_s1 = inlined_call_operand.vmem [shape: bf16[576,64], index: 1, kind: input, shape index: {}]   ;;  %s892_s0 = inlined_call_operand.vmem [shape: bf16[32,576], index: 0, kind: input, shape index: {}]   ;;  %s893_s2 = inlined_call_operand.vmem [shape: f32[32,64], index: 2, kind: input, shape index: {}]   ;;  %s894_s3 = inlined_call_operand.vmem [shape: f32[32,64], index: 3, kind: output, shape index: {}]  }
   0x1   :  { %v653_v0 = vld [vmem:[%s891_s1 + $0x40] sm:$0xff]   ;;  %v657_v4 = vld [vmem:[%s891_s1 + $0x48] sm:$0xff]   ;;  %v661_v8 = vld [vmem:[%s891_s1 + $0x50] sm:$0xff]  }
   0x2   :  { %v654_v1 = vld [vmem:[%s891_s1] sm:$0xff]   ;;  %579 = vmatprep.subr.bf16.mxu0 %v653_v0  ;;  %v658_v5 = vld [vmem:[%s891_s1 + $0x8] sm:$0xff]   ;;  %v662_v9 = vld [vmem:[%s891_s1 + $0x10] sm:$0xff]  }
   0x3   :  { %v655_v2 = vld [vmem:[%s891_s1 + $0xc0] sm:$0xff]   ;;  %580 = vmatpush3.bf16.msra.mxu0 %v654_v1  ;;  %v659_v6 = vld [vmem:[%s891_s1 + $0xc8] sm:$0xff]   ;;  %v663_v10 = vld [vmem:[%s891_s1 + $0xd0] sm:$0xff]  }
   0x4   :  { %v656_v3 = vld [vmem:[%s891_s1 + $0x80] sm:$0xff]   ;;  %607 = vmatprep.subr.bf16.mxu1 %v655_v2  ;;  %581 = vmatprep.subr.bf16.mxu0 %v657_v4  ;;  %v660_v7 = vld [vmem:[%s891_s1 + $0x88] sm:$0xff]   ;;  %v664_v11 = vld [vmem:[%s891_s1 + $0x90] sm:$0xff]  }
   0x5   :  { %608 = vmatpush3.bf16.msra.mxu1 %v656_v3  ;;  %v665_v12 = vld [vmem:[%s891_s1 + $0x58] sm:$0xff]   ;;  %v669_v16 = vld [vmem:[%s891_s1 + $0x60] sm:$0xff]   ;;  %v673_v20 = vld [vmem:[%s891_s1 + $0x68] sm:$0xff]  }
   0x6   :  { %609 = vmatprep.subr.bf16.mxu1 %v659_v6  ;;  %v666_v13 = vld [vmem:[%s891_s1 + $0x18] sm:$0xff]   ;;  %v670_v17 = vld [vmem:[%s891_s1 + $0x20] sm:$0xff]   ;;  %v674_v21 = vld [vmem:[%s891_s1 + $0x28] sm:$0xff]  }
   0x7   :  { %582 = vmatpush3.bf16.msra.mxu0 %v658_v5  ;;  %v667_v14 = vld [vmem:[%s891_s1 + $0xd8] sm:$0xff]   ;;  %v671_v18 = vld [vmem:[%s891_s1 + $0xe0] sm:$0xff]   ;;  %v675_v22 = vld [vmem:[%s891_s1 + $0xe8] sm:$0xff]  }
   0x8   :  { %583 = vmatprep.subr.bf16.mxu0 %v661_v8  ;;  %v668_v15 = vld [vmem:[%s891_s1 + $0x98] sm:$0xff]   ;;  %v672_v19 = vld [vmem:[%s891_s1 + $0xa0] sm:$0xff]   ;;  %v676_v23 = vld [vmem:[%s891_s1 + $0xa8] sm:$0xff]  }
   0x9   :  { %610 = vmatpush3.bf16.msra.mxu1 %v660_v7  ;;  %v677_v24 = vld [vmem:[%s891_s1 + $0x70] sm:$0xff]   ;;  %v681_v28 = vld [vmem:[%s891_s1 + $0x78] sm:$0xff]   ;;  %v688_v34 = vld [vmem:[%s891_s1 + $0x100] sm:$0xff]  }
   0xa   :  { %611 = vmatprep.subr.bf16.mxu1 %v663_v10  ;;  %v678_v25 = vld [vmem:[%s891_s1 + $0x30] sm:$0xff]   ;;  %v682_v29 = vld [vmem:[%s891_s1 + $0x38] sm:$0xff]   ;;  %v691_v36 = vld [vmem:[%s892_s0 + $0xc] ss:$20 sps:$4 sm:$0xff]  }
   0xb   :  { %584 = vmatpush3.bf16.msra.mxu0 %v662_v9  ;;  %v679_v26 = vld [vmem:[%s891_s1 + $0xf0] sm:$0xff]   ;;  %v683_v30 = vld [vmem:[%s891_s1 + $0xf8] sm:$0xff]   ;;  %v692_v37 = vld [vmem:[%s891_s1 + $0x108] sm:$0xff]   ;;  %457 = vmatprep.mubr.bf16.mxu1 %v691_v36 }
   0xc   :  { %585 = vmatprep.subr.bf16.mxu0 %v665_v12  ;;  %v680_v27 = vld [vmem:[%s891_s1 + $0xb0] sm:$0xff]   ;;  %v686_v32 = vld [vmem:[%s892_s0 + $0x4] ss:$20 sps:$4 sm:$0xff]   ;;  %v689_v35 = vld [vmem:[%s892_s0 + $0x8] ss:$20 sps:$4 sm:$0xff]  }
   0xd   :  { %612 = vmatpush3.bf16.msra.mxu1 %v664_v11  ;;  %v684_v31 = vld [vmem:[%s892_s0] ss:$20 sps:$4 sm:$0xff]   ;;  %v687_v33 = vld [vmem:[%s891_s1 + $0xb8] sm:$0xff]   ;;  %408 = vmatprep.mubr.bf16.mxu0 %v686_v32  ;;  %v699_v42 = vld [vmem:[%s892_s0 + $0x30] ss:$20 sps:$4 sm:$0xff]  }
   0xe   :  { %613 = vmatprep.subr.bf16.mxu1 %v667_v14  ;;  %v693_v38 = vld [vmem:[%s892_s0 + $0x2c] ss:$20 sps:$4 sm:$0xff]   ;;  %v695_v39 = vld [vmem:[%s892_s0 + $0x28] ss:$20 sps:$4 sm:$0xff]   ;;  %v696_v40 = vld [vmem:[%s891_s1 + $0x110] sm:$0xff]  }
   0xf   :  { %586 = vmatpush3.bf16.msra.mxu0 %v666_v13  ;;  %v697_v41 = vld [vmem:[%s892_s0 + $0x34] ss:$20 sps:$4 sm:$0xff]   ;;  %v700_v43 = vld [vmem:[%s891_s1 + $0x118] sm:$0xff]   ;;  %v701_v44 = vld [vmem:[%s892_s0 + $0x10] ss:$20 sps:$4 sm:$0xff]  }
  0x10   :  { %587 = vmatprep.subr.bf16.mxu0 %v669_v16  ;;  %v702_v45 = vld [vmem:[%s892_s0 + $0x38] ss:$20 sps:$4 sm:$0xff]   ;;  %v99_v47 = vld [vmem:[%s893_s2] sm:$0xff]  ;;  %v101_v0 = vld [vmem:[%s893_s2 + $0x10] sm:$0xff] }
  0x11   :  { %614 = vmatpush3.bf16.msra.mxu1 %v668_v15  ;;  %v100_v52 = vld [vmem:[%s893_s2 + $0x8] sm:$0xff]  ;;  %v102_v6 = vld [vmem:[%s893_s2 + $0x18] sm:$0xff] }
  0x12   :  { %615 = vmatprep.subr.bf16.mxu1 %v671_v18 }
  0x13   :  { %588 = vmatpush3.bf16.msra.mxu0 %v670_v17 }
  0x14   :  { %589 = vmatprep.subr.bf16.mxu0 %v673_v20 }
  0x15   :  { %616 = vmatpush3.bf16.msra.mxu1 %v672_v19 }
  0x16   :  { %617 = vmatprep.subr.bf16.mxu1 %v675_v22 }
  0x17   :  { %590 = vmatpush3.bf16.msra.mxu0 %v674_v21 }
  0x18   :  { %591 = vmatprep.subr.bf16.mxu0 %v677_v24 }
  0x19   :  { %618 = vmatpush3.bf16.msra.mxu1 %v676_v23 }
  0x1a   :  { %619 = vmatprep.subr.bf16.mxu1 %v679_v26 }
  0x1b   :  { %592 = vmatpush3.bf16.msra.mxu0 %v678_v25 }
  0x1c   :  { %593 = vmatprep.subr.bf16.mxu0 %v681_v28 }
  0x1d   :  { %620 = vmatpush3.bf16.msra.mxu1 %v680_v27 }
  0x1e   :  { %621 = vmatprep.subr.bf16.mxu1 %v683_v30 }
  0x1f   :  { %594 = vmatpush3.bf16.msra.mxu0 %v682_v29 }
  0x20   :  { %641 = vmatprep.subr.bf16.mxu0 %v688_v34 }
  0x21   :  { %622 = vmatpush3.bf16.msra.mxu1 %v687_v33 }
  0x22   :  { %409 = vmatmul.mubr.bf16.vlgmr.msra.gmra.mrb[0].mxu0 %v684_v31 }
  0x23   :  { %642 = vmatpush3.bf16.msra.mxu0 %v688_v34  ;;  %416 = vmatprep.mubr.bf16.mxu0 %v693_v38 }
  0x24   :  { %458 = vmatmul.mubr.bf16.vlgmr.msra.gmra.mrb[0].mxu1 %v689_v35  ;;  %643 = vmatprep.subr.bf16.mxu0 %v692_v37 }
  0x25   :  { %465 = vmatprep.mubr.bf16.mxu1 %v697_v41 }
  0x27   :  { %644 = vmatpush3.bf16.msra.mxu0 %v692_v37 }
  0x28   :  { %645 = vmatprep.subr.bf16.mxu0 %v696_v40 }
  0x2a   :  { %417 = vmatmul.mubr.bf16.gmra.mrb[4].mxu0 %v695_v39 }
  0x2b   :  { %649 = vmatprep.mubr.msk.bf16.mxu0 %vm369_vm0, %v701_v44  ;;  %646 = vmatpush3.bf16.msra.mxu0 %v696_v40 }
  0x2c   :  { %466 = vmatmul.mubr.bf16.gmra.mrb[4].mxu1 %v699_v42  ;;  %647 = vmatprep.subr.bf16.mxu0 %v700_v43 }
  0x2f   :  { %648 = vmatpush3.bf16.msra.mxu0 %v700_v43 }
  0x32   :  { %650 = vmatmul.mubr.msk.bf16.vlgmr.msra.gmra.mrb[8].mxu0 %vm369_vm0, %v702_v45 }
  0xf5   :  { %v595_v46 = vpop.f32.mrb[0].mxu0 }
  0xf6   :  { %v596_v48 = vpop.f32.mrb[1].mxu0 }
  0xf7   :  { %v597_v49 = vadd.f32 %v596_v48, %v595_v46  ;;  %v598_v50 = vpop.f32.mrb[2].mxu0  ;;  %v623_v51 = vpop.f32.mrb[0].mxu1 }
  0xf8   :  { %v599_v53 = vpop.f32.mrb[3].mxu0  ;;  %v624_v56 = vpop.f32.mrb[1].mxu1 }
  0xf9   :  { %v411_v54 = vadd.f32 %v597_v49, %v99_v47  ;;  %v600_v55 = vadd.f32 %v599_v53, %v598_v50  ;;  %v625_v57 = vadd.f32 %v624_v56, %v623_v51  ;;  %v626_v58 = vpop.f32.mrb[2].mxu1 }
  0xfa   :  { %v627_v60 = vpop.f32.mrb[3].mxu1 }
  0xfb   :  { %v414_v59 = vadd.f32 %v600_v55, %v100_v52  ;;  %v628_v61 = vadd.f32 %v627_v60, %v626_v58  ;;  %v460_v62 = vadd.f32 %v625_v57, %v411_v54 }
  0xfd   :  { %v601_v63 = vpop.f32.mrb[4].mxu0  ;;  %v463_v2 = vadd.f32 %v628_v61, %v414_v59 }
  0xfe   :  { %v602_v1 = vpop.f32.mrb[5].mxu0 }
  0xff   :  { %v603_v3 = vadd.f32 %v602_v1, %v601_v63  ;;  %v604_v4 = vpop.f32.mrb[6].mxu0  ;;  %v629_v5 = vpop.f32.mrb[4].mxu1 }
 0x100   :  { %v605_v7 = vpop.f32.mrb[7].mxu0  ;;  %v630_v10 = vpop.f32.mrb[5].mxu1 }
 0x101   :  { %v419_v8 = vadd.f32 %v603_v3, %v101_v0  ;;  %v606_v9 = vadd.f32 %v605_v7, %v604_v4  ;;  %v631_v11 = vadd.f32 %v630_v10, %v629_v5  ;;  %v632_v12 = vpop.f32.mrb[6].mxu1 }
 0x102   :  { %v633_v14 = vpop.f32.mrb[7].mxu1 }
 0x103   :  { %v422_v13 = vadd.f32 %v606_v9, %v102_v6  ;;  %v634_v15 = vadd.f32 %v633_v14, %v632_v12  ;;  %v468_v16 = vadd.f32 %v631_v11, %v419_v8 }
 0x105   :  { %v651_v17 = vpop.f32.mrb[8].mxu0  ;;  %v471_v18 = vadd.f32 %v634_v15, %v422_v13 }
 0x106   :  { %v517_v19 = vadd.f32 %v651_v17, %v468_v16  ;;  %v508_v20 = vpop.f32.mrb[9].mxu0 }
 0x107   :  { %v509_v21 = vadd.f32 %v508_v20, %v460_v62  ;;  %v652_v22 = vpop.f32.mrb[10].mxu0 }
 0x108   :  { %525 = vst.msk [vmem:[%s894_s3 + $0x10] sm:$0xff] %vm369_vm0, %v517_v19  ;;  %v520_v23 = vadd.f32 %v652_v22, %v471_v18  ;;  %v511_v24 = vpop.f32.mrb[11].mxu0 }
 0x109   :  { %523 = vst.msk [vmem:[%s894_s3] sm:$0xff] %vm369_vm0, %v509_v21  ;;  %v512_v25 = vadd.f32 %v511_v24, %v463_v2 }
 0x10a   :  { %526 = vst.msk [vmem:[%s894_s3 + $0x18] sm:$0xff] %vm369_vm0, %v520_v23 }
 0x10b   :  { %524 = vst.msk [vmem:[%s894_s3 + $0x8] sm:$0xff] %vm369_vm0, %v512_v25 }

// kernel: _lambda_.25
= control target key start
LH: loop header
LB: loop body
LE: loop exit
PB: predicated region body
PF: predicated region fallthrough
CT: control target
= control target key end

     0   :  { %s298_s12 = smov 0   ;;  %s321_s0 = inlined_call_operand.vmem [shape: f32[2,16,64], index: 0, kind: input, shape index: {}]   ;;  %s322_s1 = inlined_call_operand.vmem [shape: f32[1,64], index: 1, kind: input, shape index: {}]   ;;  %s323_s2 = inlined_call_operand.vmem [shape: f32[1,64], index: 2, kind: input, shape index: {}]   ;;  %s324_s3 = inlined_call_operand.vmem [shape: f32[2,1,64], index: 3, kind: output, shape index: {}]  }
   0x1 LB: > { %s250_s13 = sadd.s32 4294967295, %s276_s12   ;;  %p254_p0 = scmp.ge.s32.totalorder %s276_s12, 1  ;;  %s276_s12 = sphi %s298_s12, %s13_s12  }
   0x2   : > { %p137_p1 = scmp.lt.s32.totalorder %s276_s12, 3 }
   0x4   : > { %p138_p2 = pnand %p254_p0, %p137_p1 }
   0x5   : > { %p159_p3 = scmp.lt.s32.totalorder (!%p138_p2), %s250_s13, 1  ;;  %v257_v0 = vld [vmem:[%s322_s1] ss:$0 sm:$0xff] (!%p138_p2)  ;;  %vm189_vm0 = vcmask (!%p138_p2), 523264   ;;  %vm201_vm1 = vcmask (!%p138_p2), 516096  }
   0x6   : > { %141 = sbr.rel (%p138_p2) target bundleno = 41 (0x29), region = 32  ;;  %v258_v3 = vld [vmem:[%s323_s2] ss:$0 sm:$0xff] (!%p138_p2) }
   0xd   : > { %s326_s13 = smov (!%p159_p3, %s250_s13), 1 }
   0xe   : > { %s261_s14 = sshll.u32 %s326_s13, 4  ;;  %s166_s24 = scalar_lea.vmem %s324_s3, %s326_s13 }
   0xf   : > { %s163_s19 = scalar_lea.vmem %s321_s0, %s261_s14 }
  0x10   : > { %v167_v1 = vld [vmem:[%s163_s19] sm:$0xff]  ;;  %v168_v2 = vld [vmem:[%s163_s19 + $0x8] sm:$0xff] }
  0x11   : > { %v176_v4 = vmul.f32 %v257_v0, %v167_v1  ;;  %v177_v5 = vmul.f32 %v257_v0, %v168_v2 }
  0x13   : > { %v185_v6 = vadd.f32 %v258_v3, %v176_v4  ;;  %v186_v7 = vadd.f32 %v258_v3, %v177_v5 }
  0x15   : > { %v187_v8 = vmax.f32 %v185_v6, 0.0  ;;  %v188_v9 = vmax.f32 %v186_v7, 0.0 }
  0x17   : > { %v190_v10 = vsel %vm189_vm0, %v187_v8, 0.0  ;;  %v191_v11 = vsel %vm189_vm0, %v188_v9, 0.0 }
  0x18   : > { %v192_v12 = vadd.f32 %v191_v11, %v190_v10 }
  0x1a   : > { %v193_v13 = vrot.slane %v192_v12, 4 }
  0x1c   : > { %v194_v14 = vadd.f32 %v193_v13, %v192_v12 }
  0x1e   : > { %v195_v15 = vrot.slane %v194_v14, 2 }
  0x20   : > { %v196_v16 = vadd.f32 %v195_v15, %v194_v14 }
  0x22   : > { %v197_v17 = vrot.slane %v196_v16, 1 }
  0x24   : > { %v198_v18 = vadd.f32 %v197_v17, %v196_v16 }
  0x26   : > { %v200_v19 = vmul.f32 0.0625, %v198_v18 }
  0x28   : > { %202 = vst.msk [vmem:[%s166_s24] sm:$0x1] %vm201_vm1, %v200_v19 }
  0x29 PF: > { %s13_s12 = sadd.s32 1, %s276_s12  }
  0x2a   : > { %p10_p4 = scmp.ge.s32.totalorder %s13_s12, 4  }
  0x2c   :  { %12 = sbr.rel (!%p10_p4) target bundleno = 1 (0x1), region = 62 }

</bundles_post_ra>
